<compile_context>
chip_gen: v6e
topology: v6e:2x2x1
jax: 0.10.0
libtpu: 0.0.40
codegen_flags: <defaults>
</compile_context>

<pallas_src>
import jax
import jax.numpy as jnp
from jax.experimental import pallas as pl
from jax.experimental.pallas import tpu as pltpu

# Layer sizes: 784 -> 128 -> 64 -> 12 -> 3 -> 12 -> 64 -> 128 -> 784
DIMS = [28 * 28, 128, 64, 12, 3, 12, 64, 128, 28 * 28]
# MACs per row (12->3->12 folded into a single 12->12): used for the cost estimate.
_MACS_PER_ROW = (784 * 128 + 128 * 64 + 64 * 12 + 12 * 12
                 + 12 * 64 + 64 * 128 + 128 * 784)  # = 218768


def autoencoder_kernel(x_ref,
                       w1, b1, w2, b2, w3, b3, w45, b45,   # encoder (+ folded 12->3->12)
                       w6, b6, w7, b7, w8, b8,             # decoder
                       o_ref):
    """Whole forward pass for one batch tile, all in VMEM."""
    cdt = w1.dtype  # MXU operand dtype (bf16 on the fast path)

    # In-kernel cast of the input (no-op if the producer already handed us bf16).
    h = x_ref[...].astype(cdt)

    def lin_relu(h, w, b):
        y = jnp.dot(h, w[...], preferred_element_type=jnp.float32) + b[...]
        return jnp.maximum(y, 0.0).astype(cdt)

    h = lin_relu(h, w1, b1)       # 784 -> 128
    h = lin_relu(h, w2, b2)       # 128 -> 64
    h = lin_relu(h, w3, b3)       # 64  -> 12
    h = lin_relu(h, w45, b45)     # folded 12 -> 3 -> 12 (no activation in between)
    h = lin_relu(h, w6, b6)       # 12  -> 64
    h = lin_relu(h, w7, b7)       # 64  -> 128

    y = jnp.dot(h, w8[...], preferred_element_type=jnp.float32) + b8[...]  # 128 -> 784
    o_ref[...] = jnp.tanh(y).astype(o_ref.dtype)


def init_params(key):
    """Deterministic PyTorch-style uniform(-1/sqrt(fan_in), 1/sqrt(fan_in)) init.

    Weights are stored transposed relative to torch.nn.Linear, i.e. shape (in, out).
    Biases are stored as (1, out) so they stay 2-D inside the kernel.
    """
    params = []
    for fan_in, fan_out in zip(DIMS[:-1], DIMS[1:]):
        key, kw, kb = jax.random.split(key, 3)
        bound = 1.0 / jnp.sqrt(jnp.float32(fan_in))
        w = jax.random.uniform(kw, (fan_in, fan_out), jnp.float32, -bound, bound)
        b = jax.random.uniform(kb, (1, fan_out), jnp.float32, -bound, bound)
        params += [w, b]
    return params


def prepare_params(params, use_bf16=True):
    """One-time param prep: fold the activation-free 12->3->12 pair and (optionally)
    cast all weights to bf16 (every dot accumulates in f32 on the MXU; v5e has no
    native f32 MXU path so bf16 everywhere also avoids multi-pass emulation there).
    Biases stay f32 (they are added to the f32 accumulators)."""
    w = params[0::2]
    b = params[1::2]
    # (h @ w4 + b4) @ w5 + b5  ==  h @ (w4 @ w5) + (b4 @ w5 + b5)   [no ReLU between]
    w45 = w[3] @ w[4]
    b45 = b[3] @ w[4] + b[4]
    ws = [w[0], w[1], w[2], w45, w[5], w[6], w[7]]
    bs = [b[0], b[1], b[2], b45, b[5], b[6], b[7]]
    if use_bf16:
        ws = [wi.astype(jnp.bfloat16) for wi in ws]
    prepared = []
    for wi, bi in zip(ws, bs):
        prepared += [wi, bi]
    return prepared


def _choose_bt(B, batch_tile):
    """Pick the per-grid-step batch tile.

    Rules (see review):
      * multiple of 16 (bf16 sublane packing), preferring multiples of 256 (MXU M);
      * capped at 1024 so double-buffered x(f32)/out tiles stay well under the
        32 MiB scoped-VMEM default even on v7x (64 MiB physical);
      * at most ~B/2 when B allows, so the grid has >= 2 steps and
        dimension_semantics=("parallel",) can use both v7x TensorCores;
      * prefer a tile that divides B exactly, avoiding the pad + out[:B] passes.
    """
    align = 256 if B >= 512 else 16
    bt = (int(batch_tile) // align) * align
    bt = max(align, min(bt, 1024, ((B + align - 1) // align) * align))
    if B >= 2 * align:                      # leave >= 2 grid steps when possible
        bt = min(bt, max(align, (B // 2) // align * align))
    t = bt                                  # prefer an exact divisor of B
    while t >= align:
        if B % t == 0:
            return t
        t -= align
    return bt


def autoencoder_forward(x, prepared_params, *, batch_tile=1024, out_dtype=jnp.float32):
    """Forward pass. `prepared_params` comes from prepare_params().

    batch_tile: requested rows per grid step (see _choose_bt for how it is clamped).
    out_dtype:  jnp.float32 for exact module semantics, jnp.bfloat16 to halve the
                output writeback bytes (tanh output is bounded, |err| <= ~4e-3).
    """
    B, D = x.shape
    assert D == 28 * 28

    bt = _choose_bt(B, batch_tile)
    B_pad = pl.cdiv(B, bt) * bt
    if B_pad != B:
        # Fallback only: _choose_bt prefers a divisor of B so this path is rare.
        x = jnp.pad(x, ((0, B_pad - B), (0, 0)))

    # Input / output: tiled over batch. The input keeps its native dtype (f32 or
    # bf16); the cast to the compute dtype happens inside the kernel.
    x_spec = pl.BlockSpec((bt, D), lambda i: (i, 0))
    # Weights & biases: full array per grid step (block_shape == full dims satisfies
    # the (8,128) rule even for the tiny 12-wide layers). Constant index_map means
    # each is DMA'd once and stays resident across steps — no extra buffering needed.
    param_specs = [pl.BlockSpec(p.shape, lambda i: (0, 0)) for p in prepared_params]
    out_spec = pl.BlockSpec((bt, D), lambda i: (i, 0))

    w_bytes = sum(int(p.size) * p.dtype.itemsize for p in prepared_params)
    cost = pl.CostEstimate(
        flops=2 * B_pad * _MACS_PER_ROW,
        transcendentals=B_pad * D,                           # tanh on the output
        bytes_accessed=int(x.size) * x.dtype.itemsize
                       + B_pad * D * jnp.dtype(out_dtype).itemsize
                       + w_bytes,
    )

    out = pl.pallas_call(
        autoencoder_kernel,
        out_shape=jax.ShapeDtypeStruct((B_pad, D), out_dtype),
        grid_spec=pltpu.PrefetchScalarGridSpec(
            num_scalar_prefetch=0,
            grid=(B_pad // bt,),
            in_specs=[x_spec] + param_specs,
            out_specs=out_spec,
        ),
        compiler_params=pltpu.CompilerParams(
            dimension_semantics=("parallel",),   # shards batch steps across TCs on v7x
            vmem_limit_bytes=32 * 1024 * 1024,   # bt<=1024 fits comfortably on all gens
        ),
        cost_estimate=cost,
    )(x, *prepared_params)

    return out[:B] if B_pad != B else out


def reference_forward_prepared(x, prepared):
    """Plain-JAX reference mirroring the kernel math (folded pair + bf16 operands,
    f32 accumulation, f32 tanh)."""
    cdt = prepared[0].dtype
    h = x.astype(cdt)
    n = len(prepared) // 2
    for li in range(n):
        w, b = prepared[2 * li], prepared[2 * li + 1]
        h = jnp.dot(h, w, preferred_element_type=jnp.float32) + b
        if li < n - 1:
            h = jnp.maximum(h, 0.0).astype(cdt)
    return jnp.tanh(h)


def reference_forward_f32(x, params):
    """Full-precision reference matching the original PyTorch module exactly."""
    h = x
    for li in range(8):
        w, b = params[2 * li], params[2 * li + 1]
        h = h @ w + b
        if li in (0, 1, 2, 4, 5, 6):   # ReLU after layers 0,1,2 and 4,5,6
            h = jnp.maximum(h, 0.0)
    return jnp.tanh(h)


if __name__ == "__main__":
    key = jax.random.PRNGKey(0)
    kp, kx = jax.random.split(key)

    params = init_params(kp)
    prepared = prepare_params(params, use_bf16=True)

    B = 512
    x = jax.random.uniform(kx, (B, 28 * 28), jnp.float32, -1.0, 1.0)

    fwd = jax.jit(autoencoder_forward, static_argnames=("batch_tile", "out_dtype"))

    # Performance path: bf16 output, bt=256 -> grid=(2,) so both v7x TCs are used.
    out_bf16 = jax.block_until_ready(fwd(x, prepared, batch_tile=1024,
                                         out_dtype=jnp.bfloat16))
    assert out_bf16.shape == (B, 28 * 28) and out_bf16.dtype == jnp.bfloat16

    # Exact-semantics path: f32 output.
    out = jax.block_until_ready(fwd(x, prepared, batch_tile=1024,
                                    out_dtype=jnp.float32))
    assert out.shape == (B, 28 * 28) and out.dtype == jnp.float32

    # Kernel vs a plain-JAX reference computing the same mixed-precision math.
    ref_mixed = reference_forward_prepared(x, prepared)
    assert jnp.allclose(out, ref_mixed, atol=2e-3, rtol=2e-3), \
        "mismatch vs mixed-precision reference"

    # Semantics check vs the exact f32 PyTorch-equivalent forward (bf16 rounding only).
    ref_f32 = reference_forward_f32(x, params)
    assert jnp.allclose(out, ref_f32, atol=5e-2), "mismatch vs f32 reference"
    assert jnp.allclose(out_bf16.astype(jnp.float32), ref_f32, atol=5e-2), \
        "bf16-output mismatch vs f32 reference"

    print("KERNEL_OK")
</pallas_src>

<mosaic_0001>
module attributes {stable_mosaic.version = 11 : i64} {
  func.func @autoencoder_kernel(%arg0: i32, %arg1: memref<256x784xf32, #tpu.memory_space<vmem>>, %arg2: memref<784x128xbf16, #tpu.memory_space<vmem>>, %arg3: memref<1x128xf32, #tpu.memory_space<vmem>>, %arg4: memref<128x64xbf16, #tpu.memory_space<vmem>>, %arg5: memref<1x64xf32, #tpu.memory_space<vmem>>, %arg6: memref<64x12xbf16, #tpu.memory_space<vmem>>, %arg7: memref<1x12xf32, #tpu.memory_space<vmem>>, %arg8: memref<12x12xbf16, #tpu.memory_space<vmem>>, %arg9: memref<1x12xf32, #tpu.memory_space<vmem>>, %arg10: memref<12x64xbf16, #tpu.memory_space<vmem>>, %arg11: memref<1x64xf32, #tpu.memory_space<vmem>>, %arg12: memref<64x128xbf16, #tpu.memory_space<vmem>>, %arg13: memref<1x128xf32, #tpu.memory_space<vmem>>, %arg14: memref<128x784xbf16, #tpu.memory_space<vmem>>, %arg15: memref<1x784xf32, #tpu.memory_space<vmem>>, %arg16: memref<256x784xbf16, #tpu.memory_space<vmem>>) attributes {dimension_semantics = [#tpu.dimension_semantics<parallel>], iteration_bounds = array<i64: 2>, scalar_prefetch = 0 : i64, scratch_operands = 0 : i64, tpu.core_type = #tpu.core_type<tc>, window_params = [{transform_indices = @transform_0, window_bounds = array<i64: 256, 784>}, {pipeline_mode = #tpu.pipeline_mode<synchronous>, transform_indices = @transform_1, window_bounds = array<i64: 784, 128>}, {pipeline_mode = #tpu.pipeline_mode<synchronous>, transform_indices = @transform_2, window_bounds = array<i64: 1, 128>}, {pipeline_mode = #tpu.pipeline_mode<synchronous>, transform_indices = @transform_3, window_bounds = array<i64: 128, 64>}, {pipeline_mode = #tpu.pipeline_mode<synchronous>, transform_indices = @transform_4, window_bounds = array<i64: 1, 64>}, {pipeline_mode = #tpu.pipeline_mode<synchronous>, transform_indices = @transform_5, window_bounds = array<i64: 64, 12>}, {pipeline_mode = #tpu.pipeline_mode<synchronous>, transform_indices = @transform_6, window_bounds = array<i64: 1, 12>}, {pipeline_mode = #tpu.pipeline_mode<synchronous>, transform_indices = @transform_7, window_bounds = array<i64: 12, 12>}, {pipeline_mode = #tpu.pipeline_mode<synchronous>, transform_indices = @transform_8, window_bounds = array<i64: 1, 12>}, {pipeline_mode = #tpu.pipeline_mode<synchronous>, transform_indices = @transform_9, window_bounds = array<i64: 12, 64>}, {pipeline_mode = #tpu.pipeline_mode<synchronous>, transform_indices = @transform_10, window_bounds = array<i64: 1, 64>}, {pipeline_mode = #tpu.pipeline_mode<synchronous>, transform_indices = @transform_11, window_bounds = array<i64: 64, 128>}, {pipeline_mode = #tpu.pipeline_mode<synchronous>, transform_indices = @transform_12, window_bounds = array<i64: 1, 128>}, {pipeline_mode = #tpu.pipeline_mode<synchronous>, transform_indices = @transform_13, window_bounds = array<i64: 128, 784>}, {pipeline_mode = #tpu.pipeline_mode<synchronous>, transform_indices = @transform_14, window_bounds = array<i64: 1, 784>}, {transform_indices = @transform_15, window_bounds = array<i64: 256, 784>}]} {
    %c0 = arith.constant 0 : index
    %c0_0 = arith.constant 0 : index
    %0 = vector.load %arg1[%c0, %c0_0] : memref<256x784xf32, #tpu.memory_space<vmem>>, vector<256x784xf32>
    %1 = arith.truncf %0 : vector<256x784xf32> to vector<256x784xbf16>
    %c0_1 = arith.constant 0 : index
    %c0_2 = arith.constant 0 : index
    %2 = vector.load %arg2[%c0_1, %c0_2] : memref<784x128xbf16, #tpu.memory_space<vmem>>, vector<784x128xbf16>
    %cst = arith.constant dense<0.000000e+00> : vector<256x128xf32>
    %3 = tpu.matmul %1, %2, %cst {dimension_numbers = #tpu.dot_dimension_numbers<[1], [0], [0], [1], [0, 0, 1, 1], [], []>} : vector<256x784xbf16>, vector<784x128xbf16>, vector<256x128xf32> -> vector<256x128xf32>
    %c0_3 = arith.constant 0 : index
    %c0_4 = arith.constant 0 : index
    %4 = vector.load %arg3[%c0_3, %c0_4] : memref<1x128xf32, #tpu.memory_space<vmem>>, vector<1x128xf32>
    %5 = vector.broadcast %4 : vector<1x128xf32> to vector<256x128xf32>
    %6 = arith.addf %3, %5 : vector<256x128xf32>
    %cst_5 = arith.constant 0.000000e+00 : f32
    %7 = vector.broadcast %cst_5 : f32 to vector<256x128xf32>
    %8 = arith.maximumf %6, %7 : vector<256x128xf32>
    %9 = arith.truncf %8 : vector<256x128xf32> to vector<256x128xbf16>
    %c0_6 = arith.constant 0 : index
    %c0_7 = arith.constant 0 : index
    %10 = vector.load %arg4[%c0_6, %c0_7] : memref<128x64xbf16, #tpu.memory_space<vmem>>, vector<128x64xbf16>
    %cst_8 = arith.constant dense<0.000000e+00> : vector<256x64xf32>
    %11 = tpu.matmul %9, %10, %cst_8 {dimension_numbers = #tpu.dot_dimension_numbers<[1], [0], [0], [1], [0, 0, 1, 1], [], []>} : vector<256x128xbf16>, vector<128x64xbf16>, vector<256x64xf32> -> vector<256x64xf32>
    %c0_9 = arith.constant 0 : index
    %c0_10 = arith.constant 0 : index
    %12 = vector.load %arg5[%c0_9, %c0_10] : memref<1x64xf32, #tpu.memory_space<vmem>>, vector<1x64xf32>
    %13 = vector.broadcast %12 : vector<1x64xf32> to vector<256x64xf32>
    %14 = arith.addf %11, %13 : vector<256x64xf32>
    %cst_11 = arith.constant 0.000000e+00 : f32
    %15 = vector.broadcast %cst_11 : f32 to vector<256x64xf32>
    %16 = arith.maximumf %14, %15 : vector<256x64xf32>
    %17 = arith.truncf %16 : vector<256x64xf32> to vector<256x64xbf16>
    %c0_12 = arith.constant 0 : index
    %c0_13 = arith.constant 0 : index
    %18 = vector.load %arg6[%c0_12, %c0_13] : memref<64x12xbf16, #tpu.memory_space<vmem>>, vector<64x12xbf16>
    %cst_14 = arith.constant dense<0.000000e+00> : vector<256x12xf32>
    %19 = tpu.matmul %17, %18, %cst_14 {dimension_numbers = #tpu.dot_dimension_numbers<[1], [0], [0], [1], [0, 0, 1, 1], [], []>} : vector<256x64xbf16>, vector<64x12xbf16>, vector<256x12xf32> -> vector<256x12xf32>
    %c0_15 = arith.constant 0 : index
    %c0_16 = arith.constant 0 : index
    %20 = vector.load %arg7[%c0_15, %c0_16] : memref<1x12xf32, #tpu.memory_space<vmem>>, vector<1x12xf32>
    %21 = vector.broadcast %20 : vector<1x12xf32> to vector<256x12xf32>
    %22 = arith.addf %19, %21 : vector<256x12xf32>
    %cst_17 = arith.constant 0.000000e+00 : f32
    %23 = vector.broadcast %cst_17 : f32 to vector<256x12xf32>
    %24 = arith.maximumf %22, %23 : vector<256x12xf32>
    %25 = arith.truncf %24 : vector<256x12xf32> to vector<256x12xbf16>
    %c0_18 = arith.constant 0 : index
    %c0_19 = arith.constant 0 : index
    %26 = vector.load %arg8[%c0_18, %c0_19] : memref<12x12xbf16, #tpu.memory_space<vmem>>, vector<12x12xbf16>
    %cst_20 = arith.constant dense<0.000000e+00> : vector<256x12xf32>
    %27 = tpu.matmul %25, %26, %cst_20 {dimension_numbers = #tpu.dot_dimension_numbers<[1], [0], [0], [1], [0, 0, 1, 1], [], []>} : vector<256x12xbf16>, vector<12x12xbf16>, vector<256x12xf32> -> vector<256x12xf32>
    %c0_21 = arith.constant 0 : index
    %c0_22 = arith.constant 0 : index
    %28 = vector.load %arg9[%c0_21, %c0_22] : memref<1x12xf32, #tpu.memory_space<vmem>>, vector<1x12xf32>
    %29 = vector.broadcast %28 : vector<1x12xf32> to vector<256x12xf32>
    %30 = arith.addf %27, %29 : vector<256x12xf32>
    %cst_23 = arith.constant 0.000000e+00 : f32
    %31 = vector.broadcast %cst_23 : f32 to vector<256x12xf32>
    %32 = arith.maximumf %30, %31 : vector<256x12xf32>
    %33 = arith.truncf %32 : vector<256x12xf32> to vector<256x12xbf16>
    %c0_24 = arith.constant 0 : index
    %c0_25 = arith.constant 0 : index
    %34 = vector.load %arg10[%c0_24, %c0_25] : memref<12x64xbf16, #tpu.memory_space<vmem>>, vector<12x64xbf16>
    %cst_26 = arith.constant dense<0.000000e+00> : vector<256x64xf32>
    %35 = tpu.matmul %33, %34, %cst_26 {dimension_numbers = #tpu.dot_dimension_numbers<[1], [0], [0], [1], [0, 0, 1, 1], [], []>} : vector<256x12xbf16>, vector<12x64xbf16>, vector<256x64xf32> -> vector<256x64xf32>
    %c0_27 = arith.constant 0 : index
    %c0_28 = arith.constant 0 : index
    %36 = vector.load %arg11[%c0_27, %c0_28] : memref<1x64xf32, #tpu.memory_space<vmem>>, vector<1x64xf32>
    %37 = vector.broadcast %36 : vector<1x64xf32> to vector<256x64xf32>
    %38 = arith.addf %35, %37 : vector<256x64xf32>
    %cst_29 = arith.constant 0.000000e+00 : f32
    %39 = vector.broadcast %cst_29 : f32 to vector<256x64xf32>
    %40 = arith.maximumf %38, %39 : vector<256x64xf32>
    %41 = arith.truncf %40 : vector<256x64xf32> to vector<256x64xbf16>
    %c0_30 = arith.constant 0 : index
    %c0_31 = arith.constant 0 : index
    %42 = vector.load %arg12[%c0_30, %c0_31] : memref<64x128xbf16, #tpu.memory_space<vmem>>, vector<64x128xbf16>
    %cst_32 = arith.constant dense<0.000000e+00> : vector<256x128xf32>
    %43 = tpu.matmul %41, %42, %cst_32 {dimension_numbers = #tpu.dot_dimension_numbers<[1], [0], [0], [1], [0, 0, 1, 1], [], []>} : vector<256x64xbf16>, vector<64x128xbf16>, vector<256x128xf32> -> vector<256x128xf32>
    %c0_33 = arith.constant 0 : index
    %c0_34 = arith.constant 0 : index
    %44 = vector.load %arg13[%c0_33, %c0_34] : memref<1x128xf32, #tpu.memory_space<vmem>>, vector<1x128xf32>
    %45 = vector.broadcast %44 : vector<1x128xf32> to vector<256x128xf32>
    %46 = arith.addf %43, %45 : vector<256x128xf32>
    %cst_35 = arith.constant 0.000000e+00 : f32
    %47 = vector.broadcast %cst_35 : f32 to vector<256x128xf32>
    %48 = arith.maximumf %46, %47 : vector<256x128xf32>
    %49 = arith.truncf %48 : vector<256x128xf32> to vector<256x128xbf16>
    %c0_36 = arith.constant 0 : index
    %c0_37 = arith.constant 0 : index
    %50 = vector.load %arg14[%c0_36, %c0_37] : memref<128x784xbf16, #tpu.memory_space<vmem>>, vector<128x784xbf16>
    %cst_38 = arith.constant dense<0.000000e+00> : vector<256x784xf32>
    %51 = tpu.matmul %49, %50, %cst_38 {dimension_numbers = #tpu.dot_dimension_numbers<[1], [0], [0], [1], [0, 0, 1, 1], [], []>} : vector<256x128xbf16>, vector<128x784xbf16>, vector<256x784xf32> -> vector<256x784xf32>
    %c0_39 = arith.constant 0 : index
    %c0_40 = arith.constant 0 : index
    %52 = vector.load %arg15[%c0_39, %c0_40] : memref<1x784xf32, #tpu.memory_space<vmem>>, vector<1x784xf32>
    %53 = vector.broadcast %52 : vector<1x784xf32> to vector<256x784xf32>
    %54 = arith.addf %51, %53 : vector<256x784xf32>
    %55 = math.tanh %54 : vector<256x784xf32>
    %56 = arith.truncf %55 : vector<256x784xf32> to vector<256x784xbf16>
    %c0_41 = arith.constant 0 : index
    %c0_42 = arith.constant 0 : index
    %57 = vector.load %arg16[%c0_41, %c0_42] : memref<256x784xbf16, #tpu.memory_space<vmem>>, vector<256x784xbf16>
    tpu.vector_store %arg16[%c0_41, %c0_42], %56 {strides = array<i32>} : memref<256x784xbf16, #tpu.memory_space<vmem>>, vector<256x784xbf16>,
    return
  }
  func.func @transform_0(%arg0: i32) -> (i32, i32) {
    %c0_i32 = arith.constant 0 : i32
    %c0_i32_0 = arith.constant 0 : i32
    return %arg0, %c0_i32 : i32, i32
  }
  func.func @transform_1(%arg0: i32) -> (i32, i32) {
    %c0_i32 = arith.constant 0 : i32
    %c0_i32_0 = arith.constant 0 : i32
    %c0_i32_1 = arith.constant 0 : i32
    return %c0_i32, %c0_i32_0 : i32, i32
  }
  func.func @transform_2(%arg0: i32) -> (i32, i32) {
    %c0_i32 = arith.constant 0 : i32
    %c0_i32_0 = arith.constant 0 : i32
    %c0_i32_1 = arith.constant 0 : i32
    return %c0_i32, %c0_i32_0 : i32, i32
  }
  func.func @transform_3(%arg0: i32) -> (i32, i32) {
    %c0_i32 = arith.constant 0 : i32
    %c0_i32_0 = arith.constant 0 : i32
    %c0_i32_1 = arith.constant 0 : i32
    return %c0_i32, %c0_i32_0 : i32, i32
  }
  func.func @transform_4(%arg0: i32) -> (i32, i32) {
    %c0_i32 = arith.constant 0 : i32
    %c0_i32_0 = arith.constant 0 : i32
    %c0_i32_1 = arith.constant 0 : i32
    return %c0_i32, %c0_i32_0 : i32, i32
  }
  func.func @transform_5(%arg0: i32) -> (i32, i32) {
    %c0_i32 = arith.constant 0 : i32
    %c0_i32_0 = arith.constant 0 : i32
    %c0_i32_1 = arith.constant 0 : i32
    return %c0_i32, %c0_i32_0 : i32, i32
  }
  func.func @transform_6(%arg0: i32) -> (i32, i32) {
    %c0_i32 = arith.constant 0 : i32
    %c0_i32_0 = arith.constant 0 : i32
    %c0_i32_1 = arith.constant 0 : i32
    return %c0_i32, %c0_i32_0 : i32, i32
  }
  func.func @transform_7(%arg0: i32) -> (i32, i32) {
    %c0_i32 = arith.constant 0 : i32
    %c0_i32_0 = arith.constant 0 : i32
    %c0_i32_1 = arith.constant 0 : i32
    return %c0_i32, %c0_i32_0 : i32, i32
  }
  func.func @transform_8(%arg0: i32) -> (i32, i32) {
    %c0_i32 = arith.constant 0 : i32
    %c0_i32_0 = arith.constant 0 : i32
    %c0_i32_1 = arith.constant 0 : i32
    return %c0_i32, %c0_i32_0 : i32, i32
  }
  func.func @transform_9(%arg0: i32) -> (i32, i32) {
    %c0_i32 = arith.constant 0 : i32
    %c0_i32_0 = arith.constant 0 : i32
    %c0_i32_1 = arith.constant 0 : i32
    return %c0_i32, %c0_i32_0 : i32, i32
  }
  func.func @transform_10(%arg0: i32) -> (i32, i32) {
    %c0_i32 = arith.constant 0 : i32
    %c0_i32_0 = arith.constant 0 : i32
    %c0_i32_1 = arith.constant 0 : i32
    return %c0_i32, %c0_i32_0 : i32, i32
  }
  func.func @transform_11(%arg0: i32) -> (i32, i32) {
    %c0_i32 = arith.constant 0 : i32
    %c0_i32_0 = arith.constant 0 : i32
    %c0_i32_1 = arith.constant 0 : i32
    return %c0_i32, %c0_i32_0 : i32, i32
  }
  func.func @transform_12(%arg0: i32) -> (i32, i32) {
    %c0_i32 = arith.constant 0 : i32
    %c0_i32_0 = arith.constant 0 : i32
    %c0_i32_1 = arith.constant 0 : i32
    return %c0_i32, %c0_i32_0 : i32, i32
  }
  func.func @transform_13(%arg0: i32) -> (i32, i32) {
    %c0_i32 = arith.constant 0 : i32
    %c0_i32_0 = arith.constant 0 : i32
    %c0_i32_1 = arith.constant 0 : i32
    return %c0_i32, %c0_i32_0 : i32, i32
  }
  func.func @transform_14(%arg0: i32) -> (i32, i32) {
    %c0_i32 = arith.constant 0 : i32
    %c0_i32_0 = arith.constant 0 : i32
    %c0_i32_1 = arith.constant 0 : i32
    return %c0_i32, %c0_i32_0 : i32, i32
  }
  func.func @transform_15(%arg0: i32) -> (i32, i32) {
    %c0_i32 = arith.constant 0 : i32
    %c0_i32_0 = arith.constant 0 : i32
    return %arg0, %c0_i32 : i32, i32
  }
}

</mosaic_0001>

<bundles_post_ra>
// kernel: autoencoder_forward.1
= control target key start
LH: loop header
LB: loop body
LE: loop exit
PB: predicated region body
PF: predicated region fallthrough
CT: control target
= control target key end

     0   :  { %s7590_s18 = smov 0   ;;  %s9377_s0 = inlined_call_operand.vmem [shape: f32[512,784], index: 0, kind: input, shape index: {}]   ;;  %s9378_s1 = inlined_call_operand.vmem [shape: bf16[784,128], index: 1, kind: input, shape index: {}]   ;;  %s9379_s2 = inlined_call_operand.vmem [shape: f32[1,128], index: 2, kind: input, shape index: {}]   ;;  %s9380_s3 = inlined_call_operand.vmem [shape: bf16[128,64], index: 3, kind: input, shape index: {}]   ;;  %s9381_s4 = inlined_call_operand.vmem [shape: f32[1,64], index: 4, kind: input, shape index: {}]   ;;  %s9382_s5 = inlined_call_operand.vmem [shape: bf16[64,12], index: 5, kind: input, shape index: {}]   ;;  %s9383_s6 = inlined_call_operand.vmem [shape: f32[1,12], index: 6, kind: input, shape index: {}]   ;;  %s9384_s7 = inlined_call_operand.vmem [shape: bf16[12,12], index: 7, kind: input, shape index: {}]   ;;  %s9385_s8 = inlined_call_operand.vmem [shape: f32[1,12], index: 8, kind: input, shape index: {}]   ;;  %s9386_s9 = inlined_call_operand.vmem [shape: bf16[12,64], index: 9, kind: input, shape index: {}]   ;;  %s9387_s10 = inlined_call_operand.vmem [shape: f32[1,64], index: 10, kind: input, shape index: {}]   ;;  %s9388_s11 = inlined_call_operand.vmem [shape: bf16[64,128], index: 11, kind: input, shape index: {}]   ;;  %s9389_s12 = inlined_call_operand.vmem [shape: f32[1,128], index: 12, kind: input, shape index: {}]   ;;  %s9390_s13 = inlined_call_operand.vmem [shape: bf16[128,784], index: 13, kind: input, shape index: {}]   ;;  %s9391_s14 = inlined_call_operand.vmem [shape: f32[1,784], index: 14, kind: input, shape index: {}]   ;;  %s9392_s15 = inlined_call_operand.vmem [shape: bf16[512,784], index: 15, kind: output, shape index: {}]  }
   0x1 LB: > { %s5647_s19 = sadd.s32 4294967295, %s7507_s18   ;;  %p5651_p0 = scmp.ge.s32.totalorder %s7507_s18, 1  ;;  %s7507_s18 = sphi %s7590_s18, %s25_s18  }
   0x2   : > { %p439_p1 = scmp.lt.s32.totalorder %s7507_s18, 3 }
   0x4   : > { %p440_p2 = pnand %p5651_p0, %p439_p1 }
   0x6   : > { %443 = sbr.rel (%p440_p2) target bundleno = 1905 (0x771), region = 80 }
   0xb   : > { %v6905_v0 = vld [vmem:[%s9378_s1 + $0x78] sm:$0xff]   ;;  %s5652_s22 = sshll.u32 %s5647_s19, 5  ;;  %v6907_v2 = vld [vmem:[%s9378_s1 + $0x70] sm:$0xff]   ;;  %v6909_v4 = vld [vmem:[%s9378_s1 + $0x68] sm:$0xff]   ;;  %vm1239_vm0 = vcmask 130048   ;;  %vm2620_vm1 = vcmask 1045504  }
   0xc   : > { %v6906_v1 = vld [vmem:[%s9378_s1 + $0x38] sm:$0xff]   ;;  %p490_p3 = scmp.lt.s32.totalorder %s5652_s22, 63  ;;  %6123 = vmatprep.subr.bf16.mxu0 %v6905_v0  ;;  %6876 = vmatprep.subr.bf16.mxu1 %v6905_v0  ;;  %v6908_v3 = vld [vmem:[%s9378_s1 + $0x30] sm:$0xff]   ;;  %v6910_v5 = vld [vmem:[%s9378_s1 + $0x28] sm:$0xff]   ;;  %vm2299_vm2 = vcmask 523264   ;;  %vm2571_vm3 = vcmask 97280  }
   0xd   : > { %6124 = vmatpush3.bf16.msra.mxu0 %v6906_v1  ;;  %6884 = vmatpush3.bf16.msra.mxu1 %v6906_v1  ;;  %v6911_v6 = vld [vmem:[%s9378_s1 + $0x60] sm:$0xff]   ;;  %v6913_v8 = vld [vmem:[%s9378_s1 + $0x58] sm:$0xff]   ;;  %v6915_v10 = vld [vmem:[%s9378_s1 + $0x50] sm:$0xff]   ;;  %vm5463_vm4 = vcmask 125952  }
   0xe   : > { %6125 = vmatprep.subr.bf16.mxu0 %v6907_v2  ;;  %6877 = vmatprep.subr.bf16.mxu1 %v6907_v2  ;;  %s9418_s22 = smov (!%p490_p3, %s5652_s22), 63  ;;  %v6912_v7 = vld [vmem:[%s9378_s1 + $0x20] sm:$0xff]   ;;  %v6914_v9 = vld [vmem:[%s9378_s1 + $0x18] sm:$0xff]   ;;  %v6916_v17 = vld [vmem:[%s9378_s1 + $0x10] sm:$0xff]  }
   0xf   : > { %s6894_s21 = smul.u32 56, %s9418_s22  ;;  %v6917_v18 = vld [vmem:[%s9378_s1 + $0x48] sm:$0xff]   ;;  %v6919_v20 = vld [vmem:[%s9378_s1 + $0x40] sm:$0xff]   ;;  %v6921_v26 = vld [vmem:[%s9378_s1 + $0xf8] sm:$0xff]  }
  0x10   : > { %v6918_v19 = vld [vmem:[%s9378_s1 + $0x8] sm:$0xff]   ;;  %v6920_v21 = vld [vmem:[%s9378_s1] sm:$0xff]   ;;  %v6922_v33 = vld [vmem:[%s9378_s1 + $0xb8] sm:$0xff]   ;;  %s6895_s17 = smul.u32 28, %s9418_s22 }
  0x11   : > { %6126 = vmatpush3.bf16.msra.mxu0 %v6908_v3  ;;  %6885 = vmatpush3.bf16.msra.mxu1 %v6908_v3  ;;  %s7631_s29 = scalar_lea.vmem %s9377_s0, %s6894_s21  ;;  %v6923_v35 = vld [vmem:[%s9378_s1 + $0xf0] sm:$0xff]   ;;  %v6925_v42 = vld [vmem:[%s9378_s1 + $0xe8] sm:$0xff]   ;;  %v6927_v51 = vld [vmem:[%s9378_s1 + $0xe0] sm:$0xff]  }
  0x12   : > { %6127 = vmatprep.subr.bf16.mxu0 %v6909_v4  ;;  %6878 = vmatprep.subr.bf16.mxu1 %v6909_v4  ;;  %v505_v11 = vld [vmem:[%s7631_s29 + $0x8] sm:$0xff]  ;;  %v512_v12 = vld [vmem:[%s7631_s29 + $0x40] sm:$0xff]  ;;  %v511_v23 = vld [vmem:[%s7631_s29 + $0x38] sm:$0xff]  ;;  %s8985_s20 = scalar_lea.vmem %s9392_s15, %s6895_s17 }
  0x13   : > { %v673_v13 = vld [vmem:[%s7631_s29 + $0x548] sm:$0xff]  ;;  %v729_v14 = vpack.c.bf16 %v512_v12, %v505_v11  ;;  %v680_v15 = vld [vmem:[%s7631_s29 + $0x580] sm:$0xff]  ;;  %v679_v25 = vld [vmem:[%s7631_s29 + $0x578] sm:$0xff] }
  0x14   : > { %v813_v16 = vpack.c.bf16 %v680_v15, %v673_v13  ;;  %v504_v22 = vld [vmem:[%s7631_s29] sm:$0xff]  ;;  %v519_v27 = vld [vmem:[%s7631_s29 + $0x78] sm:$0xff]  ;;  %v526_v28 = vld [vmem:[%s7631_s29 + $0xb0] sm:$0xff] }
  0x15   : > { %6128 = vmatpush3.bf16.msra.mxu0 %v6910_v5  ;;  %6886 = vmatpush3.bf16.msra.mxu1 %v6910_v5  ;;  %v672_v24 = vld [vmem:[%s7631_s29 + $0x540] sm:$0xff]  ;;  %v687_v29 = vld [vmem:[%s7631_s29 + $0x5b8] sm:$0xff]  ;;  %v694_v30 = vld [vmem:[%s7631_s29 + $0x5f0] sm:$0xff]  ;;  %v728_v31 = vpack.c.bf16 %v511_v23, %v504_v22  ;;  %v736_v34 = vpack.c.bf16 %v526_v28, %v519_v27 }
  0x16   : > { %6129 = vmatprep.subr.bf16.mxu0 %v6911_v6  ;;  %6879 = vmatprep.subr.bf16.mxu1 %v6911_v6  ;;  %v812_v32 = vpack.c.bf16 %v679_v25, %v672_v24  ;;  %v820_v36 = vpack.c.bf16 %v694_v30, %v687_v29  ;;  %v6924_v37 = vld [vmem:[%s9378_s1 + $0xb0] sm:$0xff]   ;;  %v525_v39 = vld [vmem:[%s7631_s29 + $0xa8] sm:$0xff]  ;;  %v540_v44 = vld [vmem:[%s7631_s29 + $0x120] sm:$0xff] }
  0x17   : > { %1320 = vmatprep.mubr.bf16.mxu0 %v729_v14  ;;  %1416 = vmatprep.mubr.bf16.mxu1 %v813_v16  ;;  %v518_v38 = vld [vmem:[%s7631_s29 + $0x70] sm:$0xff]  ;;  %v693_v41 = vld [vmem:[%s7631_s29 + $0x5e8] sm:$0xff]  ;;  %v708_v46 = vld [vmem:[%s7631_s29 + $0x660] sm:$0xff] }
  0x18   : > { %v686_v40 = vld [vmem:[%s7631_s29 + $0x5b0] sm:$0xff]  ;;  %v533_v43 = vld [vmem:[%s7631_s29 + $0xe8] sm:$0xff]  ;;  %v735_v47 = vpack.c.bf16 %v525_v39, %v518_v38  ;;  %v6928_v53 = vld [vmem:[%s9378_s1 + $0xa0] sm:$0xff]  }
  0x19   : > { %6130 = vmatpush3.bf16.msra.mxu0 %v6912_v7  ;;  %6887 = vmatpush3.bf16.msra.mxu1 %v6912_v7  ;;  %v701_v45 = vld [vmem:[%s7631_s29 + $0x628] sm:$0xff]  ;;  %v819_v48 = vpack.c.bf16 %v693_v41, %v686_v40  ;;  %v743_v50 = vpack.c.bf16 %v540_v44, %v533_v43  ;;  %v532_v54 = vld [vmem:[%s7631_s29 + $0xe0] sm:$0xff]  ;;  %v539_v55 = vld [vmem:[%s7631_s29 + $0x118] sm:$0xff] }
  0x1a   : > { %6131 = vmatprep.subr.bf16.mxu0 %v6913_v8  ;;  %6880 = vmatprep.subr.bf16.mxu1 %v6913_v8  ;;  %v6926_v49 = vld [vmem:[%s9378_s1 + $0xa8] sm:$0xff]   ;;  %v827_v52 = vpack.c.bf16 %v708_v46, %v701_v45  ;;  %v700_v56 = vld [vmem:[%s7631_s29 + $0x620] sm:$0xff]  ;;  %v707_v57 = vld [vmem:[%s7631_s29 + $0x658] sm:$0xff]  ;;  %v742_v63 = vpack.c.bf16 %v539_v55, %v532_v54 }
  0x1b   : > { %v6929_v58 = vld [vmem:[%s9378_s1 + $0xd8] sm:$0xff]   ;;  %v554_v60 = vld [vmem:[%s7631_s29 + $0x190] sm:$0xff]  ;;  %v826_v0 = vpack.c.bf16 %v707_v57, %v700_v56  ;;  %v553_v7 = vld [vmem:[%s7631_s29 + $0x188] sm:$0xff] }
  0x1c   : > { %v547_v59 = vld [vmem:[%s7631_s29 + $0x158] sm:$0xff]  ;;  %v722_v62 = vld [vmem:[%s7631_s29 + $0x6d0] sm:$0xff]  ;;  %v561_v11 = vld [vmem:[%s7631_s29 + $0x1c8] sm:$0xff] }
  0x1d   : > { %6132 = vmatpush3.bf16.msra.mxu0 %v6914_v9  ;;  %6888 = vmatpush3.bf16.msra.mxu1 %v6914_v9  ;;  %v715_v61 = vld [vmem:[%s7631_s29 + $0x698] sm:$0xff]  ;;  %v750_v2 = vpack.c.bf16 %v554_v60, %v547_v59  ;;  %v6931_v3 = vld [vmem:[%s9378_s1 + $0xd0] sm:$0xff]   ;;  %v721_v9 = vld [vmem:[%s7631_s29 + $0x6c8] sm:$0xff] }
  0x1e   : > { %6133 = vmatprep.subr.bf16.mxu0 %v6915_v10  ;;  %6881 = vmatprep.subr.bf16.mxu1 %v6915_v10  ;;  %v6930_v1 = vld [vmem:[%s9378_s1 + $0x98] sm:$0xff]   ;;  %v834_v4 = vpack.c.bf16 %v722_v62, %v715_v61  ;;  %v6932_v5 = vld [vmem:[%s9378_s1 + $0x90] sm:$0xff]   ;;  %v6933_v10 = vld [vmem:[%s9378_s1 + $0xc8] sm:$0xff]  }
  0x1f   : > { %v546_v6 = vld [vmem:[%s7631_s29 + $0x150] sm:$0xff]  ;;  %v568_v12 = vld [vmem:[%s7631_s29 + $0x200] sm:$0xff]  ;;  %v507_v13 = vld [vmem:[%s7631_s29 + $0x18] sm:$0xff] }
  0x20   : > { %v714_v8 = vld [vmem:[%s7631_s29 + $0x690] sm:$0xff]  ;;  %v6938_v14 = vld [vmem:[%s9378_s1 + $0x178] sm:$0xff]   ;;  %v6936_v23 = vld [vmem:[%s9378_s1 + $0x80] sm:$0xff]  }
  0x21   : > { %6134 = vmatpush3.bf16.msra.mxu0 %v6916_v17  ;;  %6889 = vmatpush3.bf16.msra.mxu1 %v6916_v17  ;;  %v514_v15 = vld [vmem:[%s7631_s29 + $0x50] sm:$0xff]  ;;  %v6939_v16 = vld [vmem:[%s9378_s1 + $0x138] sm:$0xff]   ;;  %v749_v17 = vpack.c.bf16 %v553_v7, %v546_v6  ;;  %v560_v24 = vld [vmem:[%s7631_s29 + $0x1c0] sm:$0xff] }
  0x22   : > { %6135 = vmatprep.subr.bf16.mxu0 %v6917_v18  ;;  %6882 = vmatprep.subr.bf16.mxu1 %v6917_v18  ;;  %v833_v18 = vpack.c.bf16 %v721_v9, %v714_v8  ;;  %v731_v22 = vpack.c.bf16 %v514_v15, %v507_v13  ;;  %v567_v25 = vld [vmem:[%s7631_s29 + $0x1f8] sm:$0xff]  ;;  %v513_v27 = vld [vmem:[%s7631_s29 + $0x48] sm:$0xff]  ;;  %v6937_v28 = vld [vmem:[%s9378_s1 + $0x180] sm:$0xff]  }
  0x23   : > { %v575_v29 = vld [vmem:[%s7631_s29 + $0x238] sm:$0xff]  ;;  %v582_v30 = vld [vmem:[%s7631_s29 + $0x270] sm:$0xff]  ;;  %v6942_v39 = vld [vmem:[%s9378_s1 + $0x168] sm:$0xff]  }
  0x24   : > { %v574_v40 = vld [vmem:[%s7631_s29 + $0x230] sm:$0xff]  ;;  %v581_v41 = vld [vmem:[%s7631_s29 + $0x268] sm:$0xff]  ;;  %v6944_v44 = vld [vmem:[%s9378_s1 + $0x160] sm:$0xff]  }
  0x25   : > { %6136 = vmatpush3.bf16.msra.mxu0 %v6918_v19  ;;  %6890 = vmatpush3.bf16.msra.mxu1 %v6918_v19  ;;  %v6934_v19 = vld [vmem:[%s9378_s1 + $0x88] sm:$0xff]   ;;  %v527_v45 = vld [vmem:[%s7631_s29 + $0xb8] sm:$0xff]  ;;  %v588_v57 = vld [vmem:[%s7631_s29 + $0x2a0] sm:$0xff] }
  0x26   : > { %6137 = vmatprep.subr.bf16.mxu0 %v6919_v20  ;;  %6883 = vmatprep.subr.bf16.mxu1 %v6919_v20  ;;  %v757_v20 = vpack.c.bf16 %v568_v12, %v561_v11  ;;  %v6943_v43 = vld [vmem:[%s9378_s1 + $0x128] sm:$0xff]   ;;  %v6946_v55 = vld [vmem:[%s9378_s1 + $0x158] sm:$0xff]   ;;  %v6948_v59 = vld [vmem:[%s9378_s1 + $0x150] sm:$0xff]  }
  0x27   : > { %v589_v46 = vld [vmem:[%s7631_s29 + $0x2a8] sm:$0xff]  ;;  %v6947_v56 = vld [vmem:[%s9378_s1 + $0x118] sm:$0xff]   ;;  %v534_v60 = vld [vmem:[%s7631_s29 + $0xf0] sm:$0xff] }
  0x28   : > { %v541_v61 = vld [vmem:[%s7631_s29 + $0x128] sm:$0xff]  ;;  %v603_v62 = vld [vmem:[%s7631_s29 + $0x318] sm:$0xff]  ;;  %v602_v9 = vld [vmem:[%s7631_s29 + $0x310] sm:$0xff] }
  0x29   : > { %6138 = vmatpush3.bf16.msra.mxu0 %v6920_v21  ;;  %6891 = vmatpush3.bf16.msra.mxu1 %v6920_v21  ;;  %v6935_v21 = vld [vmem:[%s9378_s1 + $0xc0] sm:$0xff]   ;;  %v6950_v7 = vld [vmem:[%s9378_s1 + $0x148] sm:$0xff]   ;;  %v555_v13 = vld [vmem:[%s7631_s29 + $0x198] sm:$0xff] }
  0x2a   : > { %6235 = vmatprep.subr.bf16.mxu1 %v6921_v26  ;;  %6347 = vmatprep.subr.bf16.mxu0 %v6938_v14  ;;  %v506_v26 = vld [vmem:[%s7631_s29 + $0x10] sm:$0xff]  ;;  %v6951_v8 = vld [vmem:[%s9378_s1 + $0x108] sm:$0xff]   ;;  %v6952_v11 = vld [vmem:[%s9378_s1 + $0x140] sm:$0xff]  }
  0x2b   : > { %v548_v12 = vld [vmem:[%s7631_s29 + $0x160] sm:$0xff]  ;;  %v617_v14 = vld [vmem:[%s7631_s29 + $0x388] sm:$0xff] }
  0x2c   : > { %1321 = vmatmul.mubr.bf16.vlgmr.msra.gmra.mxu0 %v728_v31  ;;  %1417 = vmatmul.mubr.bf16.vlgmr.msra.gmra.mxu1 %v812_v32  ;;  %v6940_v31 = vld [vmem:[%s9378_s1 + $0x170] sm:$0xff]   ;;  %v624_v15 = vld [vmem:[%s7631_s29 + $0x3c0] sm:$0xff] }
  0x2d   : > { %6236 = vmatpush3.bf16.msra.mxu1 %v6922_v33  ;;  %1328 = vmatprep.mubr.bf16.mxu0 %v736_v34  ;;  %v6941_v32 = vld [vmem:[%s9378_s1 + $0x130] sm:$0xff]   ;;  %v521_v33 = vld [vmem:[%s7631_s29 + $0x88] sm:$0xff]  ;;  %v528_v34 = vld [vmem:[%s7631_s29 + $0xc0] sm:$0xff] }
  0x2e   : > { %6237 = vmatprep.subr.bf16.mxu1 %v6923_v35  ;;  %1424 = vmatprep.mubr.bf16.mxu1 %v820_v36  ;;  %v756_v35 = vpack.c.bf16 %v567_v25, %v560_v24  ;;  %v730_v36 = vpack.c.bf16 %v513_v27, %v506_v26  ;;  %v738_v38 = vpack.c.bf16 %v528_v34, %v521_v33  ;;  %v623_v24 = vld [vmem:[%s7631_s29 + $0x3b8] sm:$0xff]  ;;  %v562_v25 = vld [vmem:[%s7631_s29 + $0x1d0] sm:$0xff]  ;;  %v569_v26 = vld [vmem:[%s7631_s29 + $0x208] sm:$0xff] }
  0x2f   : > { %6348 = vmatpush3.bf16.msra.mxu0 %v6939_v16  ;;  %v563_v16 = vld [vmem:[%s7631_s29 + $0x1d8] sm:$0xff] }
  0x30   : > { %6349 = vmatprep.subr.bf16.mxu0 %v6940_v31  ;;  %v631_v27 = vld [vmem:[%s7631_s29 + $0x3f8] sm:$0xff] }
  0x31   : > { %6238 = vmatpush3.bf16.msra.mxu1 %v6924_v37  ;;  %v764_v37 = vpack.c.bf16 %v582_v30, %v575_v29  ;;  %v577_v29 = vld [vmem:[%s7631_s29 + $0x248] sm:$0xff]  ;;  %v584_v30 = vld [vmem:[%s7631_s29 + $0x280] sm:$0xff] }
  0x32   : > { %6239 = vmatprep.subr.bf16.mxu1 %v6925_v42  ;;  %v520_v42 = vld [vmem:[%s7631_s29 + $0x80] sm:$0xff]  ;;  %v766_v34 = vpack.c.bf16 %v584_v30, %v577_v29 }
  0x33   : > { %6350 = vmatpush3.bf16.msra.mxu0 %v6941_v32  ;;  %v758_v32 = vpack.c.bf16 %v569_v26, %v562_v25  ;;  %v537_v25 = vld [vmem:[%s7631_s29 + $0x108] sm:$0xff]  ;;  %v544_v26 = vld [vmem:[%s7631_s29 + $0x140] sm:$0xff] }
  0x34   : > { %1329 = vmatmul.mubr.bf16.gmra.mxu0 %v735_v47  ;;  %1425 = vmatmul.mubr.bf16.gmra.mxu1 %v819_v48  ;;  %v596_v47 = vld [vmem:[%s7631_s29 + $0x2e0] sm:$0xff]  ;;  %v535_v48 = vld [vmem:[%s7631_s29 + $0xf8] sm:$0xff]  ;;  %v747_v30 = vpack.c.bf16 %v544_v26, %v537_v25 }
  0x35   : > { %6240 = vmatpush3.bf16.msra.mxu1 %v6926_v49  ;;  %1336 = vmatprep.mubr.bf16.mxu0 %v743_v50  ;;  %v542_v49 = vld [vmem:[%s7631_s29 + $0x130] sm:$0xff]  ;;  %v6945_v50 = vld [vmem:[%s9378_s1 + $0x120] sm:$0xff]  }
  0x36   : > { %6241 = vmatprep.subr.bf16.mxu1 %v6927_v51  ;;  %1432 = vmatprep.mubr.bf16.mxu1 %v827_v52  ;;  %v763_v51 = vpack.c.bf16 %v581_v41, %v574_v40  ;;  %v737_v52 = vpack.c.bf16 %v527_v45, %v520_v42  ;;  %v745_v54 = vpack.c.bf16 %v542_v49, %v535_v48  ;;  %v652_v40 = vld [vmem:[%s7631_s29 + $0x4a0] sm:$0xff]  ;;  %v591_v41 = vld [vmem:[%s7631_s29 + $0x2b8] sm:$0xff]  ;;  %v598_v42 = vld [vmem:[%s7631_s29 + $0x2f0] sm:$0xff] }
  0x37   : > { %6351 = vmatprep.subr.bf16.mxu0 %v6942_v39  ;;  %v645_v39 = vld [vmem:[%s7631_s29 + $0x468] sm:$0xff]  ;;  %v651_v48 = vld [vmem:[%s7631_s29 + $0x498] sm:$0xff]  ;;  %v590_v49 = vld [vmem:[%s7631_s29 + $0x2b0] sm:$0xff] }
  0x38   : > { %6352 = vmatpush3.bf16.msra.mxu0 %v6943_v43  ;;  %v799_v45 = vpack.c.bf16 %v652_v40, %v645_v39 }
  0x39   : > { %6242 = vmatpush3.bf16.msra.mxu1 %v6928_v53  ;;  %6353 = vmatprep.subr.bf16.mxu0 %v6944_v44  ;;  %v771_v53 = vpack.c.bf16 %v596_v47, %v589_v46  ;;  %v773_v46 = vpack.c.bf16 %v598_v42, %v591_v41  ;;  %v644_v47 = vld [vmem:[%s7631_s29 + $0x460] sm:$0xff] }
  0x3a   : > { %6243 = vmatprep.subr.bf16.mxu1 %v6929_v58  ;;  %v595_v58 = vld [vmem:[%s7631_s29 + $0x2d8] sm:$0xff] }
  0x3c   : > { %1337 = vmatmul.mubr.bf16.gmra.mxu0 %v742_v63  ;;  %1433 = vmatmul.mubr.bf16.gmra.mxu1 %v826_v0  ;;  %v610_v63 = vld [vmem:[%s7631_s29 + $0x350] sm:$0xff]  ;;  %v549_v0 = vld [vmem:[%s7631_s29 + $0x168] sm:$0xff] }
  0x3d   : > { %6244 = vmatpush3.bf16.msra.mxu1 %v6930_v1  ;;  %1344 = vmatprep.mubr.bf16.mxu0 %v750_v2  ;;  %v556_v1 = vld [vmem:[%s7631_s29 + $0x1a0] sm:$0xff]  ;;  %v6949_v2 = vld [vmem:[%s9378_s1 + $0x110] sm:$0xff]  }
  0x3e   : > { %6245 = vmatprep.subr.bf16.mxu1 %v6931_v3  ;;  %1440 = vmatprep.mubr.bf16.mxu1 %v834_v4  ;;  %v770_v3 = vpack.c.bf16 %v595_v58, %v588_v57  ;;  %v744_v4 = vpack.c.bf16 %v541_v61, %v534_v60  ;;  %v752_v6 = vpack.c.bf16 %v556_v1, %v549_v0  ;;  %v665_v60 = vld [vmem:[%s7631_s29 + $0x508] sm:$0xff]  ;;  %v604_v61 = vld [vmem:[%s7631_s29 + $0x320] sm:$0xff]  ;;  %v626_v0 = vld [vmem:[%s7631_s29 + $0x3d0] sm:$0xff] }
  0x3f   : > { %6354 = vmatpush3.bf16.msra.mxu0 %v6945_v50  ;;  %v597_v50 = vld [vmem:[%s7631_s29 + $0x2e8] sm:$0xff] }
  0x40   : > { %6355 = vmatprep.subr.bf16.mxu0 %v6946_v55  ;;  %v798_v55 = vpack.c.bf16 %v651_v48, %v644_v47  ;;  %v509_v1 = vld [vmem:[%s7631_s29 + $0x28] sm:$0xff]  ;;  %v675_v47 = vld [vmem:[%s7631_s29 + $0x558] sm:$0xff]  ;;  %v682_v48 = vld [vmem:[%s7631_s29 + $0x590] sm:$0xff] }
  0x41   : > { %6246 = vmatpush3.bf16.msra.mxu1 %v6932_v5  ;;  %v778_v5 = vpack.c.bf16 %v610_v63, %v603_v62  ;;  %v611_v62 = vld [vmem:[%s7631_s29 + $0x358] sm:$0xff] }
  0x42   : > { %6247 = vmatprep.subr.bf16.mxu1 %v6933_v10  ;;  %v609_v10 = vld [vmem:[%s7631_s29 + $0x348] sm:$0xff]  ;;  %v619_v63 = vld [vmem:[%s7631_s29 + $0x398] sm:$0xff] }
  0x43   : > { %6356 = vmatpush3.bf16.msra.mxu0 %v6947_v56  ;;  %v772_v56 = vpack.c.bf16 %v597_v50, %v590_v49  ;;  %v565_v49 = vld [vmem:[%s7631_s29 + $0x1e8] sm:$0xff]  ;;  %v572_v50 = vld [vmem:[%s7631_s29 + $0x220] sm:$0xff] }
  0x44   : > { %1345 = vmatmul.mubr.bf16.gmra.mxu0 %v749_v17  ;;  %1441 = vmatmul.mubr.bf16.gmra.mxu1 %v833_v18  ;;  %v570_v17 = vld [vmem:[%s7631_s29 + $0x210] sm:$0xff]  ;;  %v6953_v18 = vld [vmem:[%s9378_s1 + $0x100] sm:$0xff]  }
  0x45   : > { %6248 = vmatpush3.bf16.msra.mxu1 %v6934_v19  ;;  %1352 = vmatprep.mubr.bf16.mxu0 %v757_v20  ;;  %v777_v19 = vpack.c.bf16 %v609_v10, %v602_v9  ;;  %v751_v20 = vpack.c.bf16 %v555_v13, %v548_v12  ;;  %v508_v9 = vld [vmem:[%s7631_s29 + $0x20] sm:$0xff]  ;;  %v515_v10 = vld [vmem:[%s7631_s29 + $0x58] sm:$0xff] }
  0x46   : > { %6249 = vmatprep.subr.bf16.mxu1 %v6935_v21  ;;  %1481 = vmatprep.mubr.bf16.mxu1 %v731_v22  ;;  %v785_v21 = vpack.c.bf16 %v624_v15, %v617_v14  ;;  %v759_v22 = vpack.c.bf16 %v570_v17, %v563_v16  ;;  %v640_v12 = vld [vmem:[%s7631_s29 + $0x440] sm:$0xff]  ;;  %v523_v13 = vld [vmem:[%s7631_s29 + $0x98] sm:$0xff]  ;;  %v530_v14 = vld [vmem:[%s7631_s29 + $0xd0] sm:$0xff]  ;;  %v732_v16 = vpack.c.bf16 %v515_v10, %v508_v9 }
  0x47   : > { %6357 = vmatprep.subr.bf16.mxu0 %v6948_v59  ;;  %v658_v59 = vld [vmem:[%s7631_s29 + $0x4d0] sm:$0xff]  ;;  %v593_v9 = vld [vmem:[%s7631_s29 + $0x2c8] sm:$0xff]  ;;  %v600_v10 = vld [vmem:[%s7631_s29 + $0x300] sm:$0xff] }
  0x48   : > { %6358 = vmatpush3.bf16.msra.mxu0 %v6949_v2  ;;  %v516_v2 = vld [vmem:[%s7631_s29 + $0x60] sm:$0xff] }
  0x49   : > { %6250 = vmatpush3.bf16.msra.mxu1 %v6936_v23  ;;  %6359 = vmatprep.subr.bf16.mxu0 %v6950_v7  ;;  %v616_v23 = vld [vmem:[%s7631_s29 + $0x380] sm:$0xff]  ;;  %v618_v7 = vld [vmem:[%s7631_s29 + $0x390] sm:$0xff] }
  0x4a   : > { %6598 = vmatprep.subr.bf16.mxu1 %v6937_v28  ;;  %v784_v31 = vpack.c.bf16 %v623_v24, %v616_v23  ;;  %v647_v23 = vld [vmem:[%s7631_s29 + $0x478] sm:$0xff]  ;;  %v654_v24 = vld [vmem:[%s7631_s29 + $0x4b0] sm:$0xff] }
  0x4b   : > { %v801_v29 = vpack.c.bf16 %v654_v24, %v647_v23 }
  0x4c   : > { %1353 = vmatmul.mubr.bf16.gmra.mxu0 %v756_v35  ;;  %1482 = vmatmul.mubr.bf16.vlgmr.msra.gmra.mxu1 %v730_v36  ;;  %v630_v35 = vld [vmem:[%s7631_s29 + $0x3f0] sm:$0xff]  ;;  %v637_v36 = vld [vmem:[%s7631_s29 + $0x428] sm:$0xff] }
  0x4d   : > { %6599 = vmatpush3.bf16.msra.mxu1 %v6937_v28  ;;  %1360 = vmatprep.mubr.bf16.mxu0 %v764_v37  ;;  %v638_v28 = vld [vmem:[%s7631_s29 + $0x430] sm:$0xff]  ;;  %v576_v37 = vld [vmem:[%s7631_s29 + $0x240] sm:$0xff]  ;;  %v791_v43 = vpack.c.bf16 %v637_v36, %v630_v35  ;;  %v661_v35 = vld [vmem:[%s7631_s29 + $0x4e8] sm:$0xff] }
  0x4e   : > { %1489 = vmatprep.mubr.bf16.mxu1 %v738_v38  ;;  %6360 = vmatpush3.bf16.msra.mxu0 %v6951_v8  ;;  %v792_v33 = vpack.c.bf16 %v638_v28, %v631_v27  ;;  %v583_v38 = vld [vmem:[%s7631_s29 + $0x278] sm:$0xff]  ;;  %v625_v8 = vld [vmem:[%s7631_s29 + $0x3c8] sm:$0xff]  ;;  %v668_v36 = vld [vmem:[%s7631_s29 + $0x520] sm:$0xff] }
  0x4f   : > { %6361 = vmatprep.subr.bf16.mxu0 %v6952_v11  ;;  %v765_v44 = vpack.c.bf16 %v583_v38, %v576_v37  ;;  %v633_v11 = vld [vmem:[%s7631_s29 + $0x408] sm:$0xff]  ;;  %v786_v15 = vpack.c.bf16 %v625_v8, %v618_v7  ;;  %v551_v37 = vld [vmem:[%s7631_s29 + $0x178] sm:$0xff]  ;;  %v558_v38 = vld [vmem:[%s7631_s29 + $0x1b0] sm:$0xff]  ;;  %v808_v41 = vpack.c.bf16 %v668_v36, %v661_v35 }
  0x50   : > { %v794_v17 = vpack.c.bf16 %v640_v12, %v633_v11  ;;  %v754_v42 = vpack.c.bf16 %v558_v38, %v551_v37  ;;  %v703_v7 = vld [vmem:[%s7631_s29 + $0x638] sm:$0xff]  ;;  %v710_v8 = vld [vmem:[%s7631_s29 + $0x670] sm:$0xff] }
  0x52   : > { %6362 = vmatpush3.bf16.msra.mxu0 %v6953_v18  ;;  %v740_v18 = vpack.c.bf16 %v530_v14, %v523_v13  ;;  %v829_v13 = vpack.c.bf16 %v710_v8, %v703_v7  ;;  %v775_v14 = vpack.c.bf16 %v600_v10, %v593_v9 }
  0x54   : > { %1361 = vmatmul.mubr.bf16.gmra.mxu0 %v763_v51  ;;  %1490 = vmatmul.mubr.bf16.gmra.mxu1 %v737_v52  ;;  %v659_v51 = vld [vmem:[%s7631_s29 + $0x4d8] sm:$0xff]  ;;  %v666_v52 = vld [vmem:[%s7631_s29 + $0x510] sm:$0xff] }
  0x55   : > { %1368 = vmatprep.mubr.bf16.mxu0 %v771_v53  ;;  %1497 = vmatprep.mubr.bf16.mxu1 %v745_v54  ;;  %v605_v53 = vld [vmem:[%s7631_s29 + $0x328] sm:$0xff]  ;;  %v612_v54 = vld [vmem:[%s7631_s29 + $0x360] sm:$0xff]  ;;  %v806_v57 = vpack.c.bf16 %v666_v52, %v659_v51 }
  0x56   : > { %v780_v58 = vpack.c.bf16 %v612_v54, %v605_v53  ;;  %v815_v53 = vpack.c.bf16 %v682_v48, %v675_v47  ;;  %v761_v54 = vpack.c.bf16 %v572_v50, %v565_v49 }
  0x5c   : > { %1369 = vmatmul.mubr.bf16.gmra.mxu0 %v770_v3  ;;  %1498 = vmatmul.mubr.bf16.gmra.mxu1 %v744_v4  ;;  %v805_v3 = vpack.c.bf16 %v665_v60, %v658_v59  ;;  %v779_v4 = vpack.c.bf16 %v611_v62, %v604_v61  ;;  %v689_v59 = vld [vmem:[%s7631_s29 + $0x5c8] sm:$0xff]  ;;  %v696_v60 = vld [vmem:[%s7631_s29 + $0x600] sm:$0xff]  ;;  %v579_v61 = vld [vmem:[%s7631_s29 + $0x258] sm:$0xff] }
  0x5d   : > { %1376 = vmatprep.mubr.bf16.mxu0 %v778_v5  ;;  %1505 = vmatprep.mubr.bf16.mxu1 %v752_v6  ;;  %v787_v5 = vpack.c.bf16 %v626_v0, %v619_v63  ;;  %v733_v6 = vpack.c.bf16 %v516_v2, %v509_v1  ;;  %v586_v62 = vld [vmem:[%s7631_s29 + $0x290] sm:$0xff]  ;;  %v822_v1 = vpack.c.bf16 %v696_v60, %v689_v59 }
  0x5e   : > { %v768_v2 = vpack.c.bf16 %v586_v62, %v579_v61 }
  0x64   : > { %1377 = vmatmul.mubr.bf16.gmra.mxu0 %v777_v19  ;;  %1506 = vmatmul.mubr.bf16.gmra.mxu1 %v751_v20  ;;  %v632_v19 = vld [vmem:[%s7631_s29 + $0x400] sm:$0xff]  ;;  %v639_v20 = vld [vmem:[%s7631_s29 + $0x438] sm:$0xff] }
  0x65   : > { %1384 = vmatprep.mubr.bf16.mxu0 %v785_v21  ;;  %1513 = vmatprep.mubr.bf16.mxu1 %v759_v22  ;;  %v522_v21 = vld [vmem:[%s7631_s29 + $0x90] sm:$0xff]  ;;  %v529_v22 = vld [vmem:[%s7631_s29 + $0xc8] sm:$0xff]  ;;  %v793_v27 = vpack.c.bf16 %v639_v20, %v632_v19  ;;  %v724_v20 = vld [vmem:[%s7631_s29 + $0x6e0] sm:$0xff] }
  0x66   : > { %v739_v28 = vpack.c.bf16 %v529_v22, %v522_v21  ;;  %v717_v19 = vld [vmem:[%s7631_s29 + $0x6a8] sm:$0xff]  ;;  %v607_v21 = vld [vmem:[%s7631_s29 + $0x338] sm:$0xff]  ;;  %v614_v22 = vld [vmem:[%s7631_s29 + $0x370] sm:$0xff] }
  0x67   : > { %v836_v25 = vpack.c.bf16 %v724_v20, %v717_v19  ;;  %v782_v26 = vpack.c.bf16 %v614_v22, %v607_v21  ;;  %v629_v19 = vld [vmem:[%s7631_s29 + $0x3e8] sm:$0xff] }
  0x6c   : > { %1385 = vmatmul.mubr.bf16.gmra.mxu0 %v784_v31  ;;  %1514 = vmatmul.mubr.bf16.gmra.mxu1 %v758_v32  ;;  %v646_v31 = vld [vmem:[%s7631_s29 + $0x470] sm:$0xff]  ;;  %v653_v32 = vld [vmem:[%s7631_s29 + $0x4a8] sm:$0xff] }
  0x6d   : > { %1392 = vmatprep.mubr.bf16.mxu0 %v792_v33  ;;  %1521 = vmatprep.mubr.bf16.mxu1 %v766_v34  ;;  %v536_v33 = vld [vmem:[%s7631_s29 + $0x100] sm:$0xff]  ;;  %v543_v34 = vld [vmem:[%s7631_s29 + $0x138] sm:$0xff]  ;;  %v800_v39 = vpack.c.bf16 %v653_v32, %v646_v31  ;;  %v621_v31 = vld [vmem:[%s7631_s29 + $0x3a8] sm:$0xff] }
  0x6e   : > { %v746_v40 = vpack.c.bf16 %v543_v34, %v536_v33  ;;  %v628_v32 = vld [vmem:[%s7631_s29 + $0x3e0] sm:$0xff]  ;;  %v510_v33 = vld [vmem:[%s7631_s29 + $0x30] sm:$0xff]  ;;  %v517_v34 = vld [vmem:[%s7631_s29 + $0x68] sm:$0xff] }
  0x6f   : > { %v789_v37 = vpack.c.bf16 %v628_v32, %v621_v31  ;;  %v734_v38 = vpack.c.bf16 %v517_v34, %v510_v33  ;;  %v650_v31 = vld [vmem:[%s7631_s29 + $0x490] sm:$0xff]  ;;  %v657_v32 = vld [vmem:[%s7631_s29 + $0x4c8] sm:$0xff] }
  0x74   : > { %1393 = vmatmul.mubr.bf16.gmra.mxu0 %v791_v43  ;;  %1522 = vmatmul.mubr.bf16.gmra.mxu1 %v765_v44  ;;  %v660_v43 = vld [vmem:[%s7631_s29 + $0x4e0] sm:$0xff]  ;;  %v667_v44 = vld [vmem:[%s7631_s29 + $0x518] sm:$0xff] }
  0x75   : > { %1400 = vmatprep.mubr.bf16.mxu0 %v799_v45  ;;  %1529 = vmatprep.mubr.bf16.mxu1 %v773_v46  ;;  %v550_v45 = vld [vmem:[%s7631_s29 + $0x170] sm:$0xff]  ;;  %v557_v46 = vld [vmem:[%s7631_s29 + $0x1a8] sm:$0xff]  ;;  %v807_v51 = vpack.c.bf16 %v667_v44, %v660_v43  ;;  %v635_v43 = vld [vmem:[%s7631_s29 + $0x418] sm:$0xff] }
  0x76   : > { %v753_v52 = vpack.c.bf16 %v557_v46, %v550_v45  ;;  %v642_v44 = vld [vmem:[%s7631_s29 + $0x450] sm:$0xff]  ;;  %v545_v46 = vld [vmem:[%s7631_s29 + $0x148] sm:$0xff] }
  0x77   : > { %v538_v45 = vld [vmem:[%s7631_s29 + $0x110] sm:$0xff]  ;;  %v796_v49 = vpack.c.bf16 %v642_v44, %v635_v43  ;;  %v705_v43 = vld [vmem:[%s7631_s29 + $0x648] sm:$0xff] }
  0x78   : > { %v748_v50 = vpack.c.bf16 %v545_v46, %v538_v45  ;;  %v6956_v44 = vld [vmem:[%s9380_s3 + $0x28] sm:$0xff]  }
  0x7c   : > { %1401 = vmatmul.mubr.bf16.gmra.mxu0 %v798_v55  ;;  %1530 = vmatmul.mubr.bf16.gmra.mxu1 %v772_v56  ;;  %v674_v55 = vld [vmem:[%s7631_s29 + $0x550] sm:$0xff]  ;;  %v681_v56 = vld [vmem:[%s7631_s29 + $0x588] sm:$0xff] }
  0x7d   : > { %1408 = vmatprep.mubr.bf16.mxu0 %v806_v57  ;;  %1537 = vmatprep.mubr.bf16.mxu1 %v780_v58  ;;  %v564_v57 = vld [vmem:[%s7631_s29 + $0x1e0] sm:$0xff]  ;;  %v571_v58 = vld [vmem:[%s7631_s29 + $0x218] sm:$0xff]  ;;  %v814_v63 = vpack.c.bf16 %v681_v56, %v674_v55  ;;  %v649_v55 = vld [vmem:[%s7631_s29 + $0x488] sm:$0xff] }
  0x7e   : > { %v760_v0 = vpack.c.bf16 %v571_v58, %v564_v57  ;;  %v656_v56 = vld [vmem:[%s7631_s29 + $0x4c0] sm:$0xff]  ;;  %v566_v57 = vld [vmem:[%s7631_s29 + $0x1f0] sm:$0xff]  ;;  %v573_v58 = vld [vmem:[%s7631_s29 + $0x228] sm:$0xff] }
  0x7f   : > { %v803_v61 = vpack.c.bf16 %v656_v56, %v649_v55  ;;  %v762_v62 = vpack.c.bf16 %v573_v58, %v566_v57 }
  0x84   : > { %1409 = vmatmul.mubr.bf16.gmra.mxu0 %v805_v3  ;;  %1538 = vmatmul.mubr.bf16.gmra.mxu1 %v779_v4  ;;  %v688_v3 = vld [vmem:[%s7631_s29 + $0x5c0] sm:$0xff]  ;;  %v695_v4 = vld [vmem:[%s7631_s29 + $0x5f8] sm:$0xff] }
  0x85   : > { %1545 = vmatprep.mubr.bf16.mxu1 %v787_v5  ;;  %1642 = vmatprep.mubr.bf16.mxu0 %v733_v6  ;;  %v578_v5 = vld [vmem:[%s7631_s29 + $0x250] sm:$0xff]  ;;  %v585_v6 = vld [vmem:[%s7631_s29 + $0x288] sm:$0xff]  ;;  %v821_v11 = vpack.c.bf16 %v695_v4, %v688_v3  ;;  %v663_v3 = vld [vmem:[%s7631_s29 + $0x4f8] sm:$0xff] }
  0x86   : > { %v767_v12 = vpack.c.bf16 %v585_v6, %v578_v5  ;;  %v670_v4 = vld [vmem:[%s7631_s29 + $0x530] sm:$0xff]  ;;  %v601_v6 = vld [vmem:[%s7631_s29 + $0x308] sm:$0xff] }
  0x87   : > { %v594_v5 = vld [vmem:[%s7631_s29 + $0x2d0] sm:$0xff]  ;;  %v810_v9 = vpack.c.bf16 %v670_v4, %v663_v3  ;;  %v6957_v3 = vld [vmem:[%s9380_s3 + $0x20] sm:$0xff]  }
  0x88   : > { %v776_v10 = vpack.c.bf16 %v601_v6, %v594_v5  ;;  %v726_v6 = vld [vmem:[%s7631_s29 + $0x6f0] sm:$0xff] }
  0x8c   : > { %1546 = vmatmul.mubr.bf16.gmra.mxu1 %v786_v15  ;;  %1643 = vmatmul.mubr.bf16.vlgmr.msra.gmra.mxu0 %v732_v16  ;;  %v702_v15 = vld [vmem:[%s7631_s29 + $0x630] sm:$0xff]  ;;  %v709_v16 = vld [vmem:[%s7631_s29 + $0x668] sm:$0xff] }
  0x8d   : > { %1553 = vmatprep.mubr.bf16.mxu1 %v794_v17  ;;  %1650 = vmatprep.mubr.bf16.mxu0 %v740_v18  ;;  %v592_v17 = vld [vmem:[%s7631_s29 + $0x2c0] sm:$0xff]  ;;  %v599_v18 = vld [vmem:[%s7631_s29 + $0x2f8] sm:$0xff]  ;;  %v828_v23 = vpack.c.bf16 %v709_v16, %v702_v15  ;;  %v677_v15 = vld [vmem:[%s7631_s29 + $0x568] sm:$0xff] }
  0x8e   : > { %v774_v24 = vpack.c.bf16 %v599_v18, %v592_v17  ;;  %v6954_v16 = vld [vmem:[%s9380_s3 + $0x38] sm:$0xff]   ;;  %v684_v17 = vld [vmem:[%s7631_s29 + $0x5a0] sm:$0xff]  ;;  %v622_v18 = vld [vmem:[%s7631_s29 + $0x3b0] sm:$0xff] }
  0x8f   : > { %6632 = vmatprep.subr.bf16.mxu1 %v6954_v16  ;;  %v817_v22 = vpack.c.bf16 %v684_v17, %v677_v15 }
  0x94   : > { %1554 = vmatmul.mubr.bf16.gmra.mxu1 %v793_v27  ;;  %1651 = vmatmul.mubr.bf16.gmra.mxu0 %v739_v28  ;;  %v716_v27 = vld [vmem:[%s7631_s29 + $0x6a0] sm:$0xff]  ;;  %v723_v28 = vld [vmem:[%s7631_s29 + $0x6d8] sm:$0xff] }
  0x95   : > { %1561 = vmatprep.mubr.bf16.mxu1 %v801_v29  ;;  %1658 = vmatprep.mubr.bf16.mxu0 %v747_v30  ;;  %v606_v29 = vld [vmem:[%s7631_s29 + $0x330] sm:$0xff]  ;;  %v613_v30 = vld [vmem:[%s7631_s29 + $0x368] sm:$0xff]  ;;  %v835_v35 = vpack.c.bf16 %v723_v28, %v716_v27  ;;  %v643_v27 = vld [vmem:[%s7631_s29 + $0x458] sm:$0xff] }
  0x96   : > { %v781_v36 = vpack.c.bf16 %v613_v30, %v606_v29  ;;  %v691_v28 = vld [vmem:[%s7631_s29 + $0x5d8] sm:$0xff]  ;;  %v6955_v29 = vld [vmem:[%s9380_s3 + $0x30] sm:$0xff]  }
  0x97   : > { %v698_v30 = vld [vmem:[%s7631_s29 + $0x610] sm:$0xff] }
  0x9c   : > { %1562 = vmatmul.mubr.bf16.gmra.mxu1 %v800_v39  ;;  %1659 = vmatmul.mubr.bf16.gmra.mxu0 %v746_v40  ;;  %v620_v39 = vld [vmem:[%s7631_s29 + $0x3a0] sm:$0xff]  ;;  %v627_v40 = vld [vmem:[%s7631_s29 + $0x3d8] sm:$0xff] }
  0x9d   : > { %1569 = vmatprep.mubr.bf16.mxu1 %v808_v41  ;;  %1666 = vmatprep.mubr.bf16.mxu0 %v754_v42  ;;  %v524_v41 = vld [vmem:[%s7631_s29 + $0xa0] sm:$0xff]  ;;  %v531_v42 = vld [vmem:[%s7631_s29 + $0xd8] sm:$0xff]  ;;  %v788_v47 = vpack.c.bf16 %v627_v40, %v620_v39  ;;  %v690_v39 = vld [vmem:[%s7631_s29 + $0x5d0] sm:$0xff] }
  0x9e   : > { %v741_v48 = vpack.c.bf16 %v531_v42, %v524_v41  ;;  %v697_v40 = vld [vmem:[%s7631_s29 + $0x608] sm:$0xff]  ;;  %v664_v41 = vld [vmem:[%s7631_s29 + $0x500] sm:$0xff]  ;;  %v671_v42 = vld [vmem:[%s7631_s29 + $0x538] sm:$0xff] }
  0x9f   : > { %v811_v55 = vpack.c.bf16 %v671_v42, %v664_v41 }
  0xa4   : > { %1570 = vmatmul.mubr.bf16.gmra.mxu1 %v807_v51  ;;  %1667 = vmatmul.mubr.bf16.gmra.mxu0 %v753_v52  ;;  %v634_v51 = vld [vmem:[%s7631_s29 + $0x410] sm:$0xff]  ;;  %v641_v52 = vld [vmem:[%s7631_s29 + $0x448] sm:$0xff] }
  0xa5   : > { %1577 = vmatprep.mubr.bf16.mxu1 %v815_v53  ;;  %1674 = vmatprep.mubr.bf16.mxu0 %v761_v54  ;;  %v552_v53 = vld [vmem:[%s7631_s29 + $0x180] sm:$0xff]  ;;  %v559_v54 = vld [vmem:[%s7631_s29 + $0x1b8] sm:$0xff]  ;;  %v795_v59 = vpack.c.bf16 %v641_v52, %v634_v51 }
  0xa6   : > { %v755_v60 = vpack.c.bf16 %v559_v54, %v552_v53  ;;  %v823_v54 = vpack.c.bf16 %v697_v40, %v690_v39 }
  0xac   : > { %1578 = vmatmul.mubr.bf16.gmra.mxu1 %v814_v63  ;;  %1675 = vmatmul.mubr.bf16.gmra.mxu0 %v760_v0  ;;  %v648_v63 = vld [vmem:[%s7631_s29 + $0x480] sm:$0xff]  ;;  %v655_v0 = vld [vmem:[%s7631_s29 + $0x4b8] sm:$0xff] }
  0xad   : > { %1585 = vmatprep.mubr.bf16.mxu1 %v822_v1  ;;  %1682 = vmatprep.mubr.bf16.mxu0 %v768_v2  ;;  %v580_v1 = vld [vmem:[%s7631_s29 + $0x260] sm:$0xff]  ;;  %v587_v2 = vld [vmem:[%s7631_s29 + $0x298] sm:$0xff]  ;;  %v802_v7 = vpack.c.bf16 %v655_v0, %v648_v63 }
  0xae   : > { %v769_v8 = vpack.c.bf16 %v587_v2, %v580_v1  ;;  %v711_v63 = vld [vmem:[%s7631_s29 + $0x678] sm:$0xff]  ;;  %v692_v0 = vld [vmem:[%s7631_s29 + $0x5e0] sm:$0xff] }
  0xaf   : > { %v699_v1 = vld [vmem:[%s7631_s29 + $0x618] sm:$0xff] }
  0xb0   : > { %v719_v2 = vld [vmem:[%s7631_s29 + $0x6b8] sm:$0xff] }
  0xb1   : > { %v838_v15 = vpack.c.bf16 %v726_v6, %v719_v2 }
  0xb4   : > { %1586 = vmatmul.mubr.bf16.gmra.mxu1 %v821_v11  ;;  %1683 = vmatmul.mubr.bf16.gmra.mxu0 %v767_v12  ;;  %v662_v11 = vld [vmem:[%s7631_s29 + $0x4f0] sm:$0xff]  ;;  %v669_v12 = vld [vmem:[%s7631_s29 + $0x528] sm:$0xff] }
  0xb5   : > { %1593 = vmatprep.mubr.bf16.mxu1 %v829_v13  ;;  %1690 = vmatprep.mubr.bf16.mxu0 %v775_v14  ;;  %v608_v13 = vld [vmem:[%s7631_s29 + $0x340] sm:$0xff]  ;;  %v615_v14 = vld [vmem:[%s7631_s29 + $0x378] sm:$0xff]  ;;  %v809_v20 = vpack.c.bf16 %v669_v12, %v662_v11 }
  0xb6   : > { %v783_v21 = vpack.c.bf16 %v615_v14, %v608_v13  ;;  %v825_v14 = vpack.c.bf16 %v699_v1, %v692_v0 }
  0xbc   : > { %1594 = vmatmul.mubr.bf16.gmra.mxu1 %v828_v23  ;;  %1691 = vmatmul.mubr.bf16.gmra.mxu0 %v774_v24  ;;  %v790_v23 = vpack.c.bf16 %v629_v19, %v622_v18  ;;  %v676_v24 = vld [vmem:[%s7631_s29 + $0x560] sm:$0xff] }
  0xbd   : > { %1601 = vmatprep.mubr.bf16.mxu1 %v836_v25  ;;  %1698 = vmatprep.mubr.bf16.mxu0 %v782_v26  ;;  %v683_v25 = vld [vmem:[%s7631_s29 + $0x598] sm:$0xff]  ;;  %v636_v26 = vld [vmem:[%s7631_s29 + $0x420] sm:$0xff] }
  0xbe   : > { %v816_v33 = vpack.c.bf16 %v683_v25, %v676_v24  ;;  %v797_v34 = vpack.c.bf16 %v643_v27, %v636_v26  ;;  %v727_v24 = vld [vmem:[%s7631_s29 + $0x6f8] sm:$0xff] }
  0xbf   : > { %v6958_v25 = vld [vmem:[%s9380_s3 + $0x18] sm:$0xff]  }
  0xc4   : > { %1602 = vmatmul.mubr.bf16.gmra.mxu1 %v835_v35  ;;  %1699 = vmatmul.mubr.bf16.gmra.mxu0 %v781_v36  ;;  %v824_v35 = vpack.c.bf16 %v698_v30, %v691_v28  ;;  %v804_v36 = vpack.c.bf16 %v657_v32, %v650_v31 }
  0xc5   : > { %1706 = vmatprep.mubr.bf16.mxu0 %v789_v37  ;;  %6600 = vmatprep.mubr.msk.bf16.mxu1 %vm1239_vm0, %v734_v38 }
  0xcc   : > { %1707 = vmatmul.mubr.bf16.gmra.mxu0 %v788_v47  ;;  %6601 = vmatmul.mubr.msk.bf16.vlgmr.msra.gmra.mxu1 %vm1239_vm0, %v741_v48  ;;  %v712_v47 = vld [vmem:[%s7631_s29 + $0x680] sm:$0xff]  ;;  %v678_v48 = vld [vmem:[%s7631_s29 + $0x570] sm:$0xff] }
  0xcd   : > { %1714 = vmatprep.mubr.bf16.mxu0 %v796_v49  ;;  %6604 = vmatprep.mubr.msk.bf16.mxu1 %vm1239_vm0, %v748_v50  ;;  %v685_v49 = vld [vmem:[%s7631_s29 + $0x5a8] sm:$0xff]  ;;  %v831_v56 = vpack.c.bf16 %v712_v47, %v705_v43  ;;  %v8056_v47 = vld [vmem:[%s9379_s2] ss:$0 sm:$0xff] }
  0xce   : > { %6633 = vmatpush3.bf16.msra.mxu1 %v6954_v16  ;;  %v818_v57 = vpack.c.bf16 %v685_v49, %v678_v48 }
  0xcf   : > { %6634 = vmatprep.subr.bf16.mxu1 %v6955_v29 }
  0xd2   : > { %6635 = vmatpush3.bf16.msra.mxu1 %v6955_v29 }
  0xd3   : > { %6636 = vmatprep.subr.bf16.mxu1 %v6956_v44 }
  0xd4   : > { %1715 = vmatmul.mubr.bf16.gmra.mxu0 %v795_v59  ;;  %6605 = vmatmul.mubr.msk.bf16.gmra.mxu1 %vm1239_vm0, %v755_v60 }
  0xd5   : > { %1722 = vmatprep.mubr.bf16.mxu0 %v803_v61  ;;  %6608 = vmatprep.mubr.msk.bf16.mxu1 %vm1239_vm0, %v762_v62  ;;  %v704_v62 = vld [vmem:[%s7631_s29 + $0x640] sm:$0xff] }
  0xd6   : > { %6637 = vmatpush3.bf16.msra.mxu1 %v6956_v44  ;;  %v830_v13 = vpack.c.bf16 %v711_v63, %v704_v62 }
  0xd7   : > { %6638 = vmatprep.subr.bf16.mxu1 %v6957_v3 }
  0xda   : > { %6639 = vmatpush3.bf16.msra.mxu1 %v6957_v3 }
  0xdb   : > { %6640 = vmatprep.subr.bf16.mxu1 %v6958_v25 }
  0xdc   : > { %1723 = vmatmul.mubr.bf16.gmra.mxu0 %v802_v7  ;;  %6609 = vmatmul.mubr.msk.bf16.gmra.mxu1 %vm1239_vm0, %v769_v8  ;;  %v706_v7 = vld [vmem:[%s7631_s29 + $0x650] sm:$0xff]  ;;  %v713_v8 = vld [vmem:[%s7631_s29 + $0x688] sm:$0xff] }
  0xdd   : > { %1730 = vmatprep.mubr.bf16.mxu0 %v810_v9  ;;  %6612 = vmatprep.mubr.msk.bf16.mxu1 %vm1239_vm0, %v776_v10  ;;  %v832_v16 = vpack.c.bf16 %v713_v8, %v706_v7 }
  0xde   : > { %6641 = vmatpush3.bf16.msra.mxu1 %v6958_v25 }
  0xe4   : > { %1731 = vmatmul.mubr.bf16.gmra.mxu0 %v809_v20  ;;  %6613 = vmatmul.mubr.msk.bf16.gmra.mxu1 %vm1239_vm0, %v783_v21  ;;  %v718_v21 = vld [vmem:[%s7631_s29 + $0x6b0] sm:$0xff] }
  0xe5   : > { %1738 = vmatprep.mubr.bf16.mxu0 %v817_v22  ;;  %6616 = vmatprep.mubr.msk.bf16.mxu1 %vm1239_vm0, %v790_v23  ;;  %v725_v22 = vld [vmem:[%s7631_s29 + $0x6e8] sm:$0xff]  ;;  %v720_v23 = vld [vmem:[%s7631_s29 + $0x6c0] sm:$0xff] }
  0xe6   : > { %v837_v32 = vpack.c.bf16 %v725_v22, %v718_v21 }
  0xec   : > { %v6139_v37 = vpop.f32.mrf.mxu0  ;;  %v6211_v38 = vpop.f32.mrf.mxu1  ;;  %1739 = vmatmul.mubr.bf16.gmra.mxu0 %v816_v33  ;;  %6617 = vmatmul.mubr.msk.bf16.gmra.mxu1 %vm1239_vm0, %v797_v34  ;;  %v839_v33 = vpack.c.bf16 %v727_v24, %v720_v23 }
  0xed   : > { %1746 = vmatprep.mubr.bf16.mxu0 %v824_v35  ;;  %6620 = vmatprep.mubr.msk.bf16.mxu1 %vm1239_vm0, %v804_v36 }
  0xee   : > { %v6140_v45 = vpop.f32.mrf.mxu0  ;;  %v6212_v46 = vpop.f32.mrf.mxu1 }
  0xef   : > { %v7985_v50 = vadd.f32 %v6140_v45, %v6139_v37  ;;  %v7987_v51 = vadd.f32 %v6212_v46, %v6211_v38  ;;  %v6959_v38 = vld [vmem:[%s9380_s3 + $0x10] sm:$0xff]  }
  0xf0   : > { %v7989_v52 = vpop.f32.mrf.mxu0  ;;  %v7991_v53 = vpop.f32.mrf.mxu1  ;;  %6642 = vmatprep.subr.bf16.mxu1 %v6959_v38 }
  0xf1   : > { %6643 = vmatpush3.bf16.msra.mxu1 %v6959_v38 }
  0xf2   : > { %v7993_v58 = vpop.f32.mrf.mxu0  ;;  %v7995_v59 = vpop.f32.mrf.mxu1 }
  0xf4   : > { %v6145_v60 = vpop.f32.mrf.mxu0  ;;  %v6217_v61 = vpop.f32.mrf.mxu1  ;;  %1747 = vmatmul.mubr.bf16.gmra.mxu0 %v823_v54  ;;  %6621 = vmatmul.mubr.msk.bf16.gmra.mxu1 %vm1239_vm0, %v811_v55  ;;  %v1323_v54 = vadd.f32 %v7985_v50, %v8056_v47  ;;  %v6144_v55 = vadd.f32 %v7993_v58, %v7989_v52 }
  0xf5   : > { %1754 = vmatprep.mubr.bf16.mxu0 %v831_v56  ;;  %6624 = vmatprep.mubr.msk.bf16.mxu1 %vm1239_vm0, %v818_v57  ;;  %v6960_v56 = vld [vmem:[%s9380_s3 + $0x8] sm:$0xff]  }
  0xf6   : > { %v6146_v4 = vpop.f32.mrf.mxu0  ;;  %v6218_v5 = vpop.f32.mrf.mxu1  ;;  %6644 = vmatprep.subr.bf16.mxu1 %v6960_v56  ;;  %v1326_v1 = vadd.f32 %v6144_v55, %v8056_v47 }
  0xf7   : > { %v8010_v9 = vadd.f32 %v6146_v4, %v6145_v60  ;;  %v8012_v10 = vadd.f32 %v6218_v5, %v6217_v61  ;;  %6645 = vmatpush3.bf16.msra.mxu1 %v6960_v56  ;;  %v6961_v5 = vld [vmem:[%s9380_s3] sm:$0xff]  }
  0xf8   : > { %v8014_v11 = vpop.f32.mrf.mxu0  ;;  %v8016_v12 = vpop.f32.mrf.mxu1  ;;  %6646 = vmatprep.subr.bf16.mxu1 %v6961_v5 }
  0xf9   : > { %v1331_v6 = vadd.f32 %v8010_v9, %v8056_v47 }
  0xfa   : > { %v8018_v17 = vpop.f32.mrf.mxu0  ;;  %v8020_v18 = vpop.f32.mrf.mxu1 }
  0xfb   : > { %v6150_v7 = vadd.f32 %v8018_v17, %v8014_v11  ;;  %6647 = vmatpush3.bf16.msra.mxu1 %v6961_v5 }
  0xfc   : > { %v6151_v19 = vpop.f32.mrf.mxu0  ;;  %v6223_v20 = vpop.f32.mrf.mxu1  ;;  %1755 = vmatmul.mubr.bf16.gmra.mxu0 %v830_v13  ;;  %6625 = vmatmul.mubr.msk.bf16.gmra.mxu1 %vm1239_vm0, %v825_v14 }
  0xfd   : > { %1762 = vmatprep.mubr.bf16.mxu0 %v838_v15  ;;  %6628 = vmatprep.mubr.msk.bf16.mxu1 %vm1239_vm0, %v832_v16  ;;  %v1334_v21 = vadd.f32 %v6150_v7, %v8056_v47 }
  0xfe   : > { %v6152_v26 = vpop.f32.mrf.mxu0  ;;  %v6224_v27 = vpop.f32.mrf.mxu1 }
  0xff   : > { %v8031_v28 = vadd.f32 %v6152_v26, %v6151_v19  ;;  %v8033_v29 = vadd.f32 %v6224_v27, %v6223_v20 }
 0x100   : > { %v8035_v30 = vpop.f32.mrf.mxu0  ;;  %v8037_v31 = vpop.f32.mrf.mxu1 }
 0x101   : > { %v1339_v11 = vadd.f32 %v8031_v28, %v8056_v47 }
 0x102   : > { %v6155_v34 = vpop.f32.mrf.mxu0  ;;  %v8039_v35 = vpop.f32.mrf.mxu1 }
 0x103   : > { %v6156_v17 = vadd.f32 %v6155_v34, %v8035_v30 }
 0x104   : > { %v6157_v36 = vpop.f32.mrf.mxu0  ;;  %v6229_v37 = vpop.f32.mrf.mxu1  ;;  %1763 = vmatmul.mubr.bf16.gmra.mxu0 %v837_v32  ;;  %6629 = vmatmul.mubr.msk.bf16.gmra.mxu1 %vm1239_vm0, %v839_v33 }
 0x106   : > { %v6158_v39 = vpop.f32.mrf.mxu0  ;;  %v6230_v40 = vpop.f32.mrf.mxu1 }
 0x107   : > { %v8045_v41 = vadd.f32 %v6158_v39, %v6157_v36  ;;  %v8047_v42 = vadd.f32 %v6230_v40, %v6229_v37  ;;  %v1342_v40 = vadd.f32 %v6156_v17, %v8056_v47 }
 0x108   : > { %v6160_v43 = vpop.f32.mrf.mxu0  ;;  %v8049_v44 = vpop.f32.mrf.mxu1 }
 0x109   : > { %v1347_v28 = vadd.f32 %v8045_v41, %v8056_v47 }
 0x10a   : > { %v6161_v45 = vpop.f32.mrf.mxu0  ;;  %v8051_v46 = vpop.f32.mrf.mxu1 }
 0x10b   : > { %v6162_v30 = vadd.f32 %v6161_v45, %v6160_v43 }
 0x10c   : > { %v6163_v48 = vpop.f32.mrf.mxu0  ;;  %v6251_v49 = vpop.f32.mrf.mxu1 }
 0x10e   : > { %v6164_v57 = vpop.f32.mrf.mxu0  ;;  %v6252_v60 = vpop.f32.mrf.mxu1 }
 0x10f   : > { %v8065_v61 = vadd.f32 %v6164_v57, %v6163_v48  ;;  %v6253_v62 = vadd.f32 %v6252_v60, %v6251_v49 }
 0x110   : > { %v6166_v63 = vpop.f32.mrf.mxu0  ;;  %v6254_v0 = vpop.f32.mrf.mxu1 }
 0x111   : > { %v8068_v2 = vadd.f32 %v6253_v62, %v1323_v54  ;;  %v1355_v41 = vadd.f32 %v8065_v61, %v8056_v47 }
 0x112   : > { %v6167_v50 = vpop.f32.mrf.mxu0  ;;  %v6255_v3 = vpop.f32.mrf.mxu1 }
 0x113   : > { %v6256_v52 = vadd.f32 %v6255_v3, %v6254_v0  ;;  %v6168_v43 = vadd.f32 %v6167_v50, %v6166_v63 }
 0x114   : > { %v6169_v58 = vpop.f32.mrf.mxu0  ;;  %v6257_v4 = vpop.f32.mrf.mxu1 }
 0x115   : > { %v8077_v8 = vadd.f32 %v6256_v52, %v1326_v1 }
 0x116   : > { %v6170_v13 = vpop.f32.mrf.mxu0  ;;  %v6258_v14 = vpop.f32.mrf.mxu1 }
 0x117   : > { %v6171_v15 = vadd.f32 %v6170_v13, %v6169_v58  ;;  %v6259_v16 = vadd.f32 %v6258_v14, %v6257_v4  ;;  %v1350_v58 = vadd.f32 %v6162_v30, %v8056_v47 }
 0x118   : > { %v6172_v19 = vpop.f32.mrf.mxu0  ;;  %v6260_v20 = vpop.f32.mrf.mxu1 }
 0x119   : > { %v8080_v22 = vadd.f32 %v6259_v16, %v1331_v6  ;;  %v1363_v61 = vadd.f32 %v6171_v15, %v8056_v47 }
 0x11a   : > { %v6173_v23 = vpop.f32.mrf.mxu0  ;;  %v6261_v24 = vpop.f32.mrf.mxu1 }
 0x11b   : > { %v6262_v9 = vadd.f32 %v6261_v24, %v6260_v20  ;;  %v6174_v63 = vadd.f32 %v6173_v23, %v6172_v19 }
 0x11c   : > { %v6175_v25 = vpop.f32.mrf.mxu0  ;;  %v6263_v26 = vpop.f32.mrf.mxu1 }
 0x11d   : > { %v8085_v27 = vadd.f32 %v6262_v9, %v1334_v21  ;;  %v1366_v30 = vadd.f32 %v6174_v63, %v8056_v47 }
 0x11e   : > { %v6176_v32 = vpop.f32.mrf.mxu0  ;;  %v6264_v33 = vpop.f32.mrf.mxu1 }
 0x11f   : > { %v6177_v36 = vadd.f32 %v6176_v32, %v6175_v25  ;;  %v6265_v37 = vadd.f32 %v6264_v33, %v6263_v26  ;;  %v1358_v26 = vadd.f32 %v6168_v43, %v8056_v47 }
 0x120   : > { %v6178_v38 = vpop.f32.mrf.mxu0  ;;  %v6266_v39 = vpop.f32.mrf.mxu1 }
 0x121   : > { %v8088_v48 = vadd.f32 %v6265_v37, %v1339_v11  ;;  %v1371_v15 = vadd.f32 %v6177_v36, %v8056_v47 }
 0x122   : > { %v6179_v49 = vpop.f32.mrf.mxu0  ;;  %v6267_v54 = vpop.f32.mrf.mxu1 }
 0x123   : > { %v6268_v55 = vadd.f32 %v6267_v54, %v6266_v39  ;;  %v6180_v19 = vadd.f32 %v6179_v49, %v6178_v38 }
 0x124   : > { %v6181_v56 = vpop.f32.mrf.mxu0  ;;  %v6269_v57 = vpop.f32.mrf.mxu1 }
 0x125   : > { %v8092_v34 = vadd.f32 %v6268_v55, %v1342_v40 }
 0x126   : > { %v6182_v60 = vpop.f32.mrf.mxu0  ;;  %v6270_v62 = vpop.f32.mrf.mxu1 }
 0x127   : > { %v6183_v0 = vadd.f32 %v6182_v60, %v6181_v56  ;;  %v6271_v1 = vadd.f32 %v6270_v62, %v6269_v57 }
 0x128   : > { %v6184_v3 = vpop.f32.mrf.mxu0  ;;  %v6272_v52 = vpop.f32.mrf.mxu1 }
 0x129   : > { %v8095_v4 = vadd.f32 %v6271_v1, %v1347_v28  ;;  %v1379_v38 = vadd.f32 %v6183_v0, %v8056_v47 }
 0x12a   : > { %v6185_v5 = vpop.f32.mrf.mxu0  ;;  %v6273_v6 = vpop.f32.mrf.mxu1 }
 0x12b   : > { %v6274_v7 = vadd.f32 %v6273_v6, %v6272_v52  ;;  %v6186_v49 = vadd.f32 %v6185_v5, %v6184_v3 }
 0x12c   : > { %v6187_v13 = vpop.f32.mrf.mxu0  ;;  %v6275_v14 = vpop.f32.mrf.mxu1 }
 0x12d   : > { %v8099_v45 = vadd.f32 %v6274_v7, %v1350_v58 }
 0x12e   : > { %v6188_v16 = vpop.f32.mrf.mxu0  ;;  %v6276_v20 = vpop.f32.mrf.mxu1 }
 0x12f   : > { %v6189_v21 = vadd.f32 %v6188_v16, %v6187_v13  ;;  %v6277_v24 = vadd.f32 %v6276_v20, %v6275_v14  ;;  %v1374_v20 = vadd.f32 %v6180_v19, %v8056_v47 }
 0x130   : > { %v6190_v9 = vpop.f32.mrf.mxu0  ;;  %v6278_v25 = vpop.f32.mrf.mxu1 }
 0x131   : > { %v8102_v11 = vadd.f32 %v6277_v24, %v1355_v41  ;;  %v1387_v5 = vadd.f32 %v6189_v21, %v8056_v47 }
 0x132   : > { %v6191_v17 = vpop.f32.mrf.mxu0  ;;  %v6279_v32 = vpop.f32.mrf.mxu1 }
 0x133   : > { %v6280_v33 = vadd.f32 %v6279_v32, %v6278_v25 }
 0x134   : > { %v6193_v37 = vpop.f32.mrf.mxu0  ;;  %v6281_v39 = vpop.f32.mrf.mxu1 }
 0x135   : > { %v8105_v50 = vadd.f32 %v6280_v33, %v1358_v26 }
 0x136   : > { %v6194_v40 = vpop.f32.mrf.mxu0  ;;  %v6282_v54 = vpop.f32.mrf.mxu1 }
 0x137   : > { %v6195_v55 = vadd.f32 %v6194_v40, %v6193_v37  ;;  %v6283_v56 = vadd.f32 %v6282_v54, %v6281_v39 }
 0x138   : > { %v6196_v57 = vpop.f32.mrf.mxu0  ;;  %v6284_v28 = vpop.f32.mrf.mxu1 }
 0x139   : > { %v8108_v60 = vadd.f32 %v6283_v56, %v1363_v61 }
 0x13a   : > { %v6197_v62 = vpop.f32.mrf.mxu0  ;;  %v6285_v1 = vpop.f32.mrf.mxu1 }
 0x13b   : > { %v6286_v52 = vadd.f32 %v6285_v1, %v6284_v28  ;;  %v1382_v28 = vadd.f32 %v6186_v49, %v8056_v47  ;;  %v1395_v49 = vadd.f32 %v6195_v55, %v8056_v47 }
 0x13c   : > { %v6199_v58 = vpop.f32.mrf.mxu0  ;;  %v6287_v6 = vpop.f32.mrf.mxu1 }
 0x13d   : > { %v8111_v23 = vadd.f32 %v6286_v52, %v1366_v30 }
 0x13e   : > { %v6200_v7 = vpop.f32.mrf.mxu0  ;;  %v6288_v13 = vpop.f32.mrf.mxu1 }
 0x13f   : > { %v8113_v14 = vadd.f32 %v6200_v7, %v6199_v58  ;;  %v6289_v41 = vadd.f32 %v6288_v13, %v6287_v6  ;;  %v6192_v6 = vadd.f32 %v6191_v17, %v6190_v9 }
 0x140   : > { %v8115_v43 = vpop.f32.mrf.mxu0  ;;  %v6290_v16 = vpop.f32.mrf.mxu1 }
 0x141   : > { %v8118_v24 = vadd.f32 %v6289_v41, %v1371_v15 }
 0x142   : > { %v6203_v25 = vpop.f32.mrf.mxu0  ;;  %v6291_v26 = vpop.f32.mrf.mxu1 }
 0x143   : > { %v6292_v32 = vadd.f32 %v6291_v26, %v6290_v16  ;;  %v1390_v26 = vadd.f32 %v6192_v6, %v8056_v47 }
 0x144   : > { %v6205_v33 = vpop.f32.mrf.mxu0  ;;  %v6293_v36 = vpop.f32.mrf.mxu1 }
 0x145   : > { %v8121_v37 = vadd.f32 %v6292_v32, %v1374_v20 }
 0x146   : > { %v6206_v39 = vpop.f32.mrf.mxu0  ;;  %v6294_v61 = vpop.f32.mrf.mxu1 }
 0x147   : > { %v8123_v63 = vadd.f32 %v6206_v39, %v6205_v33  ;;  %v6295_v40 = vadd.f32 %v6294_v61, %v6293_v36  ;;  %v6198_v39 = vadd.f32 %v6197_v62, %v6196_v57  ;;  %v6964_v62 = vld [vmem:[%s9382_s5 + $0x8] sm:$0xff]  }
 0x148   : > { %v8125_v54 = vpop.f32.mrf.mxu0  ;;  %v6296_v56 = vpop.f32.mrf.mxu1 }
 0x149   : > { %v8128_v30 = vadd.f32 %v6295_v40, %v1379_v38  ;;  %v6962_v40 = vld [vmem:[%s9382_s5 + $0x18] sm:$0xff]   ;;  %v1398_v55 = vadd.f32 %v6198_v39, %v8056_v47 }
 0x14a   : > { %v8130_v1 = vpop.f32.mrf.mxu0  ;;  %v6297_v52 = vpop.f32.mrf.mxu1  ;;  %6680 = vmatprep.subr.bf16.mxu0 %v6962_v40 }
 0x14b   : > { %v6298_v58 = vadd.f32 %v6297_v52, %v6296_v56  ;;  %6681 = vmatpush3.bf16.msra.mxu0 %v6962_v40 }
 0x14c   : > { %v6299_v0 = vpop.f32.mrf.mxu1  ;;  %v6363_v3 = vpop.f32.mrf.mxu0 }
 0x14d   : > { %v8133_v15 = vadd.f32 %v6298_v58, %v1382_v28 }
 0x14e   : > { %v6300_v19 = vpop.f32.mrf.mxu1  ;;  %v6364_v7 = vpop.f32.mrf.mxu0 }
 0x14f   : > { %v6301_v13 = vadd.f32 %v6300_v19, %v6299_v0  ;;  %v6365_v41 = vadd.f32 %v6364_v7, %v6363_v3 }
 0x150   : > { %v6302_v16 = vpop.f32.mrf.mxu1  ;;  %v8135_v20 = vpop.f32.mrf.mxu0 }
 0x151   : > { %v8138_v32 = vadd.f32 %v6301_v13, %v1387_v5  ;;  %v8141_v33 = vadd.f32 %v6365_v41, %v8068_v2  ;;  %v6963_v2 = vld [vmem:[%s9382_s5 + $0x10] sm:$0xff]   ;;  %v1403_v13 = vadd.f32 %v8113_v14, %v8056_v47  ;;  %v6204_v41 = vadd.f32 %v6203_v25, %v8115_v43 }
 0x152   : > { %v6303_v36 = vpop.f32.mrf.mxu1  ;;  %v8143_v38 = vpop.f32.mrf.mxu0  ;;  %6682 = vmatprep.subr.bf16.mxu0 %v6963_v2 }
 0x153   : > { %9393 = vst [vmem:[#allocation2_spill] sm:$0xff] %v8138_v32  ;;  %v6304_v21 = vadd.f32 %v6303_v36, %v6302_v16  ;;  %6683 = vmatpush3.bf16.msra.mxu0 %v6963_v2  ;;  %v1406_v40 = vadd.f32 %v6204_v41, %v8056_v47 }
 0x154   : > { %v6305_v9 = vpop.f32.mrf.mxu1  ;;  %v8145_v17 = vpop.f32.mrf.mxu0  ;;  %6684 = vmatprep.subr.bf16.mxu0 %v6964_v62 }
 0x155   : > { %v8148_v61 = vadd.f32 %v6304_v21, %v1390_v26  ;;  %v6965_v26 = vld [vmem:[%s9382_s5] sm:$0xff]  }
 0x156   : > { %v6306_v56 = vpop.f32.mrf.mxu1  ;;  %v8156_v28 = vpop.f32.mrf.mxu0 }
 0x157   : > { %9394 = vst [vmem:[#allocation3_spill] sm:$0xff] %v8148_v61  ;;  %v6307_v52 = vadd.f32 %v6306_v56, %v6305_v9  ;;  %6685 = vmatpush3.bf16.msra.mxu0 %v6964_v62 }
 0x158   : > { %v6308_v58 = vpop.f32.mrf.mxu1  ;;  %v8158_v0 = vpop.f32.mrf.mxu0  ;;  %6686 = vmatprep.subr.bf16.mxu0 %v6965_v26 }
 0x159   : > { %v8161_v57 = vadd.f32 %v6307_v52, %v1395_v49 }
 0x15a   : > { %v6309_v3 = vpop.f32.mrf.mxu1  ;;  %v8166_v5 = vpop.f32.mrf.mxu0 }
 0x15b   : > { %v6310_v6 = vadd.f32 %v6309_v3, %v6308_v58  ;;  %6687 = vmatpush3.bf16.msra.mxu0 %v6965_v26  ;;  %v1411_v58 = vadd.f32 %v8123_v63, %v8056_v47 }
 0x15c   : > { %v6311_v19 = vpop.f32.mrf.mxu1  ;;  %v8168_v7 = vpop.f32.mrf.mxu0 }
 0x15d   : > { %v8173_v16 = vadd.f32 %v6310_v6, %v1398_v55  ;;  %v6210_v55 = vadd.f32 %v8130_v1, %v8125_v54 }
 0x15e   : > { %v6312_v36 = vpop.f32.mrf.mxu1  ;;  %v8178_v21 = vpop.f32.mrf.mxu0 }
 0x15f   : > { %9395 = vst [vmem:[#allocation4_spill] sm:$0xff] %v8173_v16  ;;  %v6313_v9 = vadd.f32 %v6312_v36, %v6311_v19  ;;  %v1414_v36 = vadd.f32 %v6210_v55, %v8056_v47 }
 0x160   : > { %v6314_v49 = vpop.f32.mrf.mxu1  ;;  %v8180_v39 = vpop.f32.mrf.mxu0 }
 0x161   : > { %v8183_v14 = vadd.f32 %v6313_v9, %v1403_v13 }
 0x162   : > { %v6315_v43 = vpop.f32.mrf.mxu1  ;;  %v8185_v25 = vpop.f32.mrf.mxu0 }
 0x163   : > { %9396 = vst [vmem:[#allocation5_spill] sm:$0xff] %v8183_v14  ;;  %v6316_v2 = vadd.f32 %v6315_v43, %v6314_v49 }
 0x164   : > { %v6317_v56 = vpop.f32.mrf.mxu1  ;;  %v8187_v52 = vpop.f32.mrf.mxu0 }
 0x165   : > { %v8193_v62 = vadd.f32 %v6316_v2, %v1406_v40  ;;  %v1419_v2 = vadd.f32 %v7987_v51, %v8056_v47 }
 0x166   : > { %v6318_v3 = vpop.f32.mrf.mxu1  ;;  %v8195_v6 = vpop.f32.mrf.mxu0 }
 0x167   : > { %9397 = vst [vmem:[#allocation6_spill] sm:$0xff] %v8193_v62  ;;  %v6319_v19 = vadd.f32 %v6318_v3, %v6317_v56  ;;  %v6216_v56 = vadd.f32 %v7995_v59, %v7991_v53  ;;  %v1427_v53 = vadd.f32 %v8012_v10, %v8056_v47  ;;  %v6222_v59 = vadd.f32 %v8020_v18, %v8016_v12 }
 0x168   : > { %v6320_v13 = vpop.f32.mrf.mxu1  ;;  %v8197_v41 = vpop.f32.mrf.mxu0  ;;  %v1435_v12 = vadd.f32 %v8033_v29, %v8056_v47  ;;  %v6228_v18 = vadd.f32 %v8039_v35, %v8037_v31  ;;  %v1443_v31 = vadd.f32 %v8047_v42, %v8056_v47  ;;  %v6234_v35 = vadd.f32 %v8051_v46, %v8049_v44 }
 0x169   : > { %v8200_v9 = vadd.f32 %v6319_v19, %v1411_v58  ;;  %v6374_v42 = vadd.f32 %v8166_v5, %v8158_v0  ;;  %v6368_v46 = vadd.f32 %v8143_v38, %v8135_v20  ;;  %v6383_v5 = vadd.f32 %v8195_v6, %v8187_v52 }
 0x16a   : > { %v6321_v26 = vpop.f32.mrf.mxu1  ;;  %v8202_v49 = vpop.f32.mrf.mxu0  ;;  %v6380_v52 = vadd.f32 %v8185_v25, %v8180_v39 }
 0x16b   : > { %9398 = vst [vmem:[#allocation7_spill] sm:$0xff] %v8200_v9  ;;  %v6322_v63 = vadd.f32 %v6321_v26, %v6320_v13  ;;  %v1648_v20 = vadd.f32 %v6368_v46, %v8077_v8 }
 0x16c   : > { %v6323_v43 = vpop.f32.mrf.mxu1  ;;  %v8204_v14 = vpop.f32.mrf.mxu0 }
 0x16d   : > { %v8206_v54 = vadd.f32 %v6322_v63, %v1414_v36  ;;  %v1422_v36 = vadd.f32 %v6216_v56, %v8056_v47 }
 0x16e   : > { %v6324_v1 = vpop.f32.mrf.mxu1  ;;  %v8208_v40 = vpop.f32.mrf.mxu0 }
 0x16f   : > { %9399 = vst [vmem:[#allocation8_spill] sm:$0xff] %v8206_v54  ;;  %v6325_v58 = vadd.f32 %v6324_v1, %v6323_v43 }
 0x170   : > { %v6326_v55 = vpop.f32.mrf.mxu1  ;;  %v8214_v3 = vpop.f32.mrf.mxu0 }
 0x171   : > { %v8216_v19 = vadd.f32 %v6325_v58, %v1419_v2 }
 0x172   : > { %v6327_v13 = vpop.f32.mrf.mxu1  ;;  %v8218_v26 = vpop.f32.mrf.mxu0 }
 0x173   : > { %9400 = vst [vmem:[#allocation9_spill] sm:$0xff] %v8216_v19  ;;  %v6328_v63 = vadd.f32 %v6327_v13, %v6326_v55  ;;  %v1430_v13 = vadd.f32 %v6222_v59, %v8056_v47 }
 0x174   : > { %v6329_v62 = vpop.f32.mrf.mxu1  ;;  %v8221_v54 = vpop.f32.mrf.mxu0 }
 0x175   : > { %v8223_v9 = vadd.f32 %v6328_v63, %v1422_v36 }
 0x176   : > { %v6330_v51 = vpop.f32.mrf.mxu1  ;;  %v8225_v61 = vpop.f32.mrf.mxu0 }
 0x177   : > { %9401 = vst [vmem:[#allocation10_spill] sm:$0xff] %v8223_v9  ;;  %v6331_v43 = vadd.f32 %v6330_v51, %v6329_v62  ;;  %v6395_v25 = vadd.f32 %v8225_v61, %v8221_v54  ;;  %v6392_v61 = vadd.f32 %v8218_v26, %v8214_v3 }
 0x178   : > { %v6332_v1 = vpop.f32.mrf.mxu1  ;;  %v8231_v2 = vpop.f32.mrf.mxu0 }
 0x179   : > { %v8233_v56 = vadd.f32 %v6331_v43, %v1427_v53 }
 0x17a   : > { %v6333_v58 = vpop.f32.mrf.mxu1  ;;  %v8235_v55 = vpop.f32.mrf.mxu0 }
 0x17b   : > { %9402 = vst [vmem:[#allocation11_spill] sm:$0xff] %v8233_v56  ;;  %v6334_v36 = vadd.f32 %v6333_v58, %v6332_v1  ;;  %v1438_v58 = vadd.f32 %v6228_v18, %v8056_v47  ;;  %v6371_v18 = vadd.f32 %v8156_v28, %v8145_v17 }
 0x17c   : > { %v6335_v63 = vpop.f32.mrf.mxu1  ;;  %v8238_v9 = vpop.f32.mrf.mxu0 }
 0x17d   : > { %v8240_v19 = vadd.f32 %v6334_v36, %v1430_v13  ;;  %v1653_v17 = vadd.f32 %v6371_v18, %v8080_v22  ;;  %v6377_v22 = vadd.f32 %v8178_v21, %v8168_v7  ;;  %v1669_v7 = vadd.f32 %v6383_v5, %v8095_v4 }
 0x17e   : > { %v6336_v10 = vpop.f32.mrf.mxu1  ;;  %v8242_v16 = vpop.f32.mrf.mxu0  ;;  %v1664_v4 = vadd.f32 %v6380_v52, %v8092_v34  ;;  %v6389_v5 = vadd.f32 %v8208_v40, %v8204_v14  ;;  %v1685_v14 = vadd.f32 %v6395_v25, %v8108_v60  ;;  %v1680_v60 = vadd.f32 %v6392_v61, %v8105_v50 }
 0x17f   : > { %9403 = vst [vmem:[#allocation12_spill] sm:$0xff] %v8240_v19  ;;  %v6337_v62 = vadd.f32 %v6336_v10, %v6335_v63 }
 0x180   : > { %v6338_v51 = vpop.f32.mrf.mxu1  ;;  %v8248_v53 = vpop.f32.mrf.mxu0 }
 0x181   : > { %v8250_v59 = vadd.f32 %v6337_v62, %v1435_v12 }
 0x182   : > { %v6339_v43 = vpop.f32.mrf.mxu1  ;;  %v8252_v1 = vpop.f32.mrf.mxu0 }
 0x183   : > { %v6340_v13 = vadd.f32 %v6339_v43, %v6338_v51 }
 0x184   : > { %v6341_v36 = vpop.f32.mrf.mxu1  ;;  %v8255_v19 = vpop.f32.mrf.mxu0 }
 0x185   : > { %v8257_v56 = vadd.f32 %v6340_v13, %v1438_v58  ;;  %v1446_v58 = vadd.f32 %v6234_v35, %v8056_v47  ;;  %v1656_v47 = vadd.f32 %v6374_v42, %v8085_v27  ;;  %v6386_v27 = vadd.f32 %v8202_v49, %v8197_v41 }
 0x186   : > { %v6342_v29 = vpop.f32.mrf.mxu1  ;;  %v8259_v32 = vpop.f32.mrf.mxu0  ;;  %v1661_v41 = vadd.f32 %v6377_v22, %v8088_v48  ;;  %v6398_v48 = vadd.f32 %v8235_v55, %v8231_v2  ;;  %v1677_v2 = vadd.f32 %v6389_v5, %v8102_v11 }
 0x187   : > { %9404 = vst [vmem:[#allocation13_spill] sm:$0xff] %v8257_v56  ;;  %v6343_v63 = vadd.f32 %v6342_v29, %v6341_v36  ;;  %v1672_v49 = vadd.f32 %v6386_v27, %v8099_v45  ;;  %v6407_v26 = vadd.f32 %v8259_v32, %v8255_v19  ;;  %v6404_v32 = vadd.f32 %v8252_v1, %v8248_v53 }
 0x188   : > { %v6344_v10 = vpop.f32.mrf.mxu1  ;;  %v8265_v12 = vpop.f32.mrf.mxu0  ;;  %v1688_v55 = vadd.f32 %v6398_v48, %v8111_v23 }
 0x189   : > { %v8269_v62 = vadd.f32 %v6343_v63, %v1443_v31  ;;  %v1696_v48 = vadd.f32 %v6404_v32, %v8121_v37 }
 0x18a   : > { %v6345_v51 = vpop.f32.mrf.mxu1  ;;  %v8271_v43 = vpop.f32.mrf.mxu0 }
 0x18b   : > { %v6346_v13 = vadd.f32 %v6345_v51, %v6344_v10  ;;  %v6410_v23 = vadd.f32 %v8271_v43, %v8265_v12 }
 0x18c   : > { %v8276_v56 = vpop.f32.mrf.mxu0  ;;  %v6602_v44 = vpop.f32.mrf.mxu1 }
 0x18d   : > { %v8280_v36 = vadd.f32 %v6346_v13, %v1446_v58  ;;  %v1814_v31 = vadd.f32 %v6602_v44, %v1653_v17  ;;  %v1704_v12 = vadd.f32 %v6410_v23, %v8133_v15 }
 0x18e   : > { %v8283_v28 = vpop.f32.mrf.mxu0  ;;  %v1805_v29 = vpop.f32.mrf.mxu1 }
 0x18f   : > { %v1806_v63 = vadd.f32 %v1805_v29, %v8141_v33  ;;  %v1934_v51 = vmax.f32 %v1814_v31, 0.0 }
 0x190   : > { %v8286_v35 = vpop.f32.mrf.mxu0  ;;  %v6603_v0 = vpop.f32.mrf.mxu1 }
 0x191   : > { %v1817_v10 = vadd.f32 %v6603_v0, %v1656_v47  ;;  %v1932_v13 = vmax.f32 %v1806_v63, 0.0 }
 0x192   : > { %v8294_v38 = vpop.f32.mrf.mxu0  ;;  %v1808_v18 = vpop.f32.mrf.mxu1 }
 0x193   : > { %v1935_v58 = vmax.f32 %v1817_v10, 0.0  ;;  %v1809_v42 = vadd.f32 %v1808_v18, %v1648_v20 }
 0x194   : > { %v8300_v6 = vpop.f32.mrf.mxu0  ;;  %v6606_v33 = vpop.f32.mrf.mxu1 }
 0x195   : > { %v1965_v8 = vpack.c.bf16 %v1935_v58, %v1934_v51  ;;  %v1933_v44 = vmax.f32 %v1809_v42, 0.0  ;;  %v1830_v17 = vadd.f32 %v6606_v33, %v1669_v7 }
 0x196   : > { %v8303_v21 = vpop.f32.mrf.mxu0  ;;  %v1821_v46 = vpop.f32.mrf.mxu1 }
 0x197   : > { %v1964_v29 = vpack.c.bf16 %v1933_v44, %v1932_v13  ;;  %v1822_v47 = vadd.f32 %v1821_v46, %v1661_v41  ;;  %v1938_v45 = vmax.f32 %v1830_v17, 0.0  ;;  %v6401_v44 = vadd.f32 %v8242_v16, %v8238_v9 }
 0x198   : > { %v8307_v31 = vpop.f32.mrf.mxu0  ;;  %v6607_v39 = vpop.f32.mrf.mxu1  ;;  %v1701_v16 = vadd.f32 %v6407_v26, %v8128_v30  ;;  %v6419_v53 = vadd.f32 %v8303_v21, %v8300_v6  ;;  %v6413_v30 = vadd.f32 %v8283_v28, %v8276_v56 }
 0x199   : > { %v1833_v0 = vadd.f32 %v6607_v39, %v1672_v49  ;;  %6648 = vmatprep.mubr.bf16.mxu1 %v1964_v29  ;;  %v1936_v27 = vmax.f32 %v1822_v47, 0.0 }
 0x19a   : > { %v6421_v63 = vpop.f32.mrf.mxu0  ;;  %v1824_v10 = vpop.f32.mrf.mxu1  ;;  %6649 = vmatmul.mubr.bf16.vlgmr.msra.gmra.mxu1 %v1965_v8  ;;  %v1717_v37 = vadd.f32 %v6419_v53, %v8161_v57 }
 0x19b   : > { %v1939_v20 = vmax.f32 %v1833_v0, 0.0  ;;  %v1825_v22 = vadd.f32 %v1824_v10, %v1664_v4  ;;  %v1693_v0 = vadd.f32 %v6401_v44, %v8118_v24  ;;  %v6422_v24 = vadd.f32 %v6421_v63, %v8307_v31 }
 0x19c   : > { %v8318_v54 = vpop.f32.mrf.mxu0  ;;  %v6610_v18 = vpop.f32.mrf.mxu1 }
 0x19d   : > { %v1967_v34 = vpack.c.bf16 %v1939_v20, %v1938_v45  ;;  %v1937_v51 = vmax.f32 %v1825_v22, 0.0  ;;  %v1846_v42 = vadd.f32 %v6610_v18, %v1685_v14  ;;  %v6416_v18 = vadd.f32 %v8294_v38, %v8286_v35  ;;  %v9407_v38 = vld [vmem:[#allocation3_spill] sm:$0xff] }
 0x19e   : > { %v8321_v40 = vpop.f32.mrf.mxu0  ;;  %v1837_v58 = vpop.f32.mrf.mxu1 }
 0x19f   : > { %v1966_v52 = vpack.c.bf16 %v1937_v51, %v1936_v27  ;;  %v1838_v13 = vadd.f32 %v1837_v58, %v1677_v2  ;;  %v1942_v46 = vmax.f32 %v1846_v42, 0.0  ;;  %v9405_v58 = vld [vmem:[#allocation2_spill] sm:$0xff]  ;;  %v9406_v2 = vld [vmem:[#allocation4_spill] sm:$0xff] }
 0x1a0   : > { %v8325_v33 = vpop.f32.mrf.mxu0  ;;  %v6611_v3 = vpop.f32.mrf.mxu1  ;;  %v1709_v42 = vadd.f32 %v6413_v30, %v9405_v58  ;;  %v1720_v31 = vadd.f32 %v6422_v24, %v9406_v2 }
 0x1a1   : > { %v1849_v8 = vadd.f32 %v6611_v3, %v1688_v55  ;;  %6652 = vmatprep.mubr.bf16.mxu1 %v1966_v52  ;;  %v1940_v29 = vmax.f32 %v1838_v13, 0.0  ;;  %v1712_v13 = vadd.f32 %v6416_v18, %v9407_v38 }
 0x1a2   : > { %v8332_v7 = vpop.f32.mrf.mxu0  ;;  %v1840_v11 = vpop.f32.mrf.mxu1  ;;  %6653 = vmatmul.mubr.bf16.gmra.mxu1 %v1967_v34 }
 0x1a3   : > { %v1943_v17 = vmax.f32 %v1849_v8, 0.0  ;;  %v1841_v41 = vadd.f32 %v1840_v11, %v1680_v60  ;;  %v6425_v8 = vadd.f32 %v8321_v40, %v8318_v54  ;;  %v9409_v40 = vld [vmem:[#allocation5_spill] sm:$0xff] }
 0x1a4   : > { %v6429_v19 = vpop.f32.mrf.mxu0  ;;  %v6614_v49 = vpop.f32.mrf.mxu1 }
 0x1a5   : > { %v1969_v50 = vpack.c.bf16 %v1943_v17, %v1942_v46  ;;  %v1941_v39 = vmax.f32 %v1841_v41, 0.0  ;;  %v1862_v47 = vadd.f32 %v6614_v49, %v1701_v16  ;;  %v6428_v17 = vadd.f32 %v8332_v7, %v8325_v33  ;;  %v9411_v7 = vld [vmem:[#allocation6_spill] sm:$0xff] }
 0x1a6   : > { %v6430_v9 = vpop.f32.mrf.mxu0  ;;  %v1853_v25 = vpop.f32.mrf.mxu1 }
 0x1a7   : > { %v1968_v43 = vpack.c.bf16 %v1941_v39, %v1940_v29  ;;  %v1854_v1 = vadd.f32 %v1853_v25, %v1693_v0  ;;  %v1946_v15 = vmax.f32 %v1862_v47, 0.0  ;;  %v6431_v3 = vadd.f32 %v6430_v9, %v6429_v19  ;;  %v9410_v47 = vld [vmem:[#allocation8_spill] sm:$0xff] }
 0x1a8   : > { %v6432_v4 = vpop.f32.mrf.mxu0  ;;  %v6615_v5 = vpop.f32.mrf.mxu1  ;;  %v1725_v25 = vadd.f32 %v6425_v8, %v9409_v40 }
 0x1a9   : > { %v1865_v10 = vadd.f32 %v6615_v5, %v1704_v12  ;;  %6656 = vmatprep.mubr.bf16.mxu1 %v1968_v43  ;;  %v1944_v27 = vmax.f32 %v1854_v1, 0.0  ;;  %v1728_v1 = vadd.f32 %v6428_v17, %v9411_v7 }
 0x1aa   : > { %v6433_v45 = vpop.f32.mrf.mxu0  ;;  %v1856_v20 = vpop.f32.mrf.mxu1  ;;  %6657 = vmatmul.mubr.bf16.gmra.mxu1 %v1969_v50  ;;  %v9408_v50 = vld [vmem:[#allocation7_spill] sm:$0xff] }
 0x1ab   : > { %v1947_v22 = vmax.f32 %v1865_v10, 0.0  ;;  %v1857_v61 = vadd.f32 %v1856_v20, %v1696_v48  ;;  %v6434_v44 = vadd.f32 %v6433_v45, %v6432_v4  ;;  %v1733_v39 = vadd.f32 %v6431_v3, %v9408_v50 }
 0x1ac   : > { %v6435_v6 = vpop.f32.mrf.mxu0  ;;  %v6618_v21 = vpop.f32.mrf.mxu1 }
 0x1ad   : > { %v1971_v34 = vpack.c.bf16 %v1947_v22, %v1946_v15  ;;  %v1945_v51 = vmax.f32 %v1857_v61, 0.0  ;;  %v1878_v28 = vadd.f32 %v6618_v21, %v1717_v37  ;;  %v1736_v0 = vadd.f32 %v6434_v44, %v9410_v47 }
 0x1ae   : > { %v6436_v14 = vpop.f32.mrf.mxu0  ;;  %v1869_v56 = vpop.f32.mrf.mxu1 }
 0x1af   : > { %v1970_v63 = vpack.c.bf16 %v1945_v51, %v1944_v27  ;;  %v1870_v26 = vadd.f32 %v1869_v56, %v1709_v42  ;;  %v1950_v11 = vmax.f32 %v1878_v28, 0.0  ;;  %v6437_v10 = vadd.f32 %v6436_v14, %v6435_v6  ;;  %v9412_v51 = vld [vmem:[#allocation11_spill] sm:$0xff]  ;;  %v9413_v42 = vld [vmem:[#allocation9_spill] sm:$0xff]  ;;  %v9414_v14 = vld [vmem:[#allocation12_spill] sm:$0xff] }
 0x1b0   : > { %v6438_v55 = vpop.f32.mrf.mxu0  ;;  %v6619_v52 = vpop.f32.mrf.mxu1 }
 0x1b1   : > { %v1881_v35 = vadd.f32 %v6619_v52, %v1720_v31  ;;  %6660 = vmatprep.mubr.bf16.mxu1 %v1970_v63  ;;  %v1948_v19 = vmax.f32 %v1870_v26, 0.0  ;;  %v1741_v6 = vadd.f32 %v6437_v10, %v9413_v42 }
 0x1b2   : > { %v6439_v57 = vpop.f32.mrf.mxu0  ;;  %v1872_v60 = vpop.f32.mrf.mxu1  ;;  %6661 = vmatmul.mubr.bf16.gmra.mxu1 %v1971_v34 }
 0x1b3   : > { %v1951_v23 = vmax.f32 %v1881_v35, 0.0  ;;  %v1873_v46 = vadd.f32 %v1872_v60, %v1712_v13  ;;  %v6440_v22 = vadd.f32 %v6439_v57, %v6438_v55  ;;  %v9415_v55 = vld [vmem:[#allocation10_spill] sm:$0xff] }
 0x1b4   : > { %v6441_v41 = vpop.f32.mrf.mxu0  ;;  %v6622_v32 = vpop.f32.mrf.mxu1 }
 0x1b5   : > { %v1973_v49 = vpack.c.bf16 %v1951_v23, %v1950_v11  ;;  %v1949_v29 = vmax.f32 %v1873_v46, 0.0  ;;  %v1894_v54 = vadd.f32 %v6622_v32, %v1733_v39  ;;  %v1744_v35 = vadd.f32 %v6440_v22, %v9415_v55 }
 0x1b6   : > { %v6442_v16 = vpop.f32.mrf.mxu0  ;;  %v1885_v9 = vpop.f32.mrf.mxu1 }
 0x1b7   : > { %v1972_v12 = vpack.c.bf16 %v1949_v29, %v1948_v19  ;;  %v6443_v5 = vadd.f32 %v6442_v16, %v6441_v41  ;;  %v1886_v53 = vadd.f32 %v1885_v9, %v1725_v25  ;;  %v1954_v45 = vmax.f32 %v1894_v54, 0.0  ;;  %v9416_v25 = vld [vmem:[#allocation13_spill] sm:$0xff] }
 0x1b8   : > { %v6444_v43 = vpop.f32.mrf.mxu0  ;;  %v6623_v4 = vpop.f32.mrf.mxu1 }
 0x1b9   : > { %v1897_v33 = vadd.f32 %v6623_v4, %v1736_v0  ;;  %6664 = vmatprep.mubr.bf16.mxu1 %v1972_v12  ;;  %v1952_v21 = vmax.f32 %v1886_v53, 0.0  ;;  %v1749_v37 = vadd.f32 %v6443_v5, %v9412_v51 }
 0x1ba   : > { %v6445_v48 = vpop.f32.mrf.mxu0  ;;  %v1888_v30 = vpop.f32.mrf.mxu1  ;;  %6665 = vmatmul.mubr.bf16.gmra.mxu1 %v1973_v49 }
 0x1bb   : > { %v1955_v20 = vmax.f32 %v1897_v33, 0.0  ;;  %v6446_v24 = vadd.f32 %v6445_v48, %v6444_v43  ;;  %v1889_v15 = vadd.f32 %v1888_v30, %v1728_v1  ;;  %v6966_v30 = vld [vmem:[%s9384_s7] sm:$0x3f]  }
 0x1bc   : > { %v6447_v61 = vpop.f32.mrf.mxu0  ;;  %v6626_v18 = vpop.f32.mrf.mxu1  ;;  %6892 = vmatprep.subr.msk.bf16.mxu1 %vm2620_vm1, %v6966_v30 }
 0x1bd   : > { %v1975_v27 = vpack.c.bf16 %v1955_v20, %v1954_v45  ;;  %v1953_v34 = vmax.f32 %v1889_v15, 0.0  ;;  %v1910_v58 = vadd.f32 %v6626_v18, %v1749_v37  ;;  %v1752_v2 = vadd.f32 %v6446_v24, %v9414_v14  ;;  %v8377_v24 = vld [vmem:[%s9381_s4] ss:$0 sm:$0xff] }
 0x1be   : > { %v6448_v56 = vpop.f32.mrf.mxu0  ;;  %v1901_v28 = vpop.f32.mrf.mxu1  ;;  %v2622_v45 = vsel %vm2620_vm1, %v6966_v30, 0 }
 0x1bf   : > { %v1974_v31 = vpack.c.bf16 %v1953_v34, %v1952_v21  ;;  %v1902_v3 = vadd.f32 %v1901_v28, %v1741_v6  ;;  %v1958_v8 = vmax.f32 %v1910_v58, 0.0  ;;  %v6449_v57 = vadd.f32 %v6448_v56, %v6447_v61  ;;  %6721 = vmatpush3.bf16.msra.mxu1 %v2622_v45 }
 0x1c0   : > { %v6450_v63 = vpop.f32.mrf.mxu0  ;;  %v6627_v52 = vpop.f32.mrf.mxu1 }
 0x1c1   : > { %v1913_v26 = vadd.f32 %v6627_v52, %v1752_v2  ;;  %6668 = vmatprep.mubr.bf16.mxu1 %v1974_v31  ;;  %v1956_v46 = vmax.f32 %v1902_v3, 0.0  ;;  %v1757_v50 = vadd.f32 %v6449_v57, %v8250_v59 }
 0x1c2   : > { %v6451_v38 = vpop.f32.mrf.mxu0  ;;  %v1904_v13 = vpop.f32.mrf.mxu1  ;;  %6669 = vmatmul.mubr.bf16.gmra.mxu1 %v1975_v27 }
 0x1c3   : > { %v1959_v60 = vmax.f32 %v1913_v26, 0.0  ;;  %v1905_v44 = vadd.f32 %v1904_v13, %v1744_v35  ;;  %v6452_v41 = vadd.f32 %v6451_v38, %v6450_v63 }
 0x1c4   : > { %v6453_v11 = vpop.f32.mrf.mxu0  ;;  %v6630_v23 = vpop.f32.mrf.mxu1 }
 0x1c5   : > { %v1977_v17 = vpack.c.bf16 %v1959_v60, %v1958_v8  ;;  %v1957_v32 = vmax.f32 %v1905_v44, 0.0  ;;  %v1760_v47 = vadd.f32 %v6452_v41, %v9416_v25 }
 0x1c6   : > { %v6454_v19 = vpop.f32.mrf.mxu0  ;;  %v1917_v49 = vpop.f32.mrf.mxu1 }
 0x1c7   : > { %v6455_v29 = vadd.f32 %v6454_v19, %v6453_v11  ;;  %v1976_v39 = vpack.c.bf16 %v1957_v32, %v1956_v46  ;;  %v1918_v40 = vadd.f32 %v1917_v49, %v1757_v50 }
 0x1c8   : > { %v6456_v16 = vpop.f32.mrf.mxu0  ;;  %v6631_v9 = vpop.f32.mrf.mxu1 }
 0x1c9   : > { %v1765_v54 = vadd.f32 %v6455_v29, %v8269_v62  ;;  %6672 = vmatprep.mubr.bf16.mxu1 %v1976_v39  ;;  %v1960_v53 = vmax.f32 %v1918_v40, 0.0 }
 0x1ca   : > { %v6457_v0 = vpop.f32.mrf.mxu0  ;;  %v1920_v12 = vpop.f32.mrf.mxu1  ;;  %6673 = vmatmul.mubr.bf16.gmra.mxu1 %v1977_v17 }
 0x1cb   : > { %v6458_v43 = vadd.f32 %v6457_v0, %v6456_v16  ;;  %v1921_v4 = vadd.f32 %v1920_v12, %v1760_v47  ;;  %v1926_v5 = vadd.f32 %v6630_v23, %v1765_v54 }
 0x1cd   : > { %v1768_v33 = vadd.f32 %v6458_v43, %v8280_v36  ;;  %v1961_v7 = vmax.f32 %v1921_v4, 0.0  ;;  %v1962_v10 = vmax.f32 %v1926_v5, 0.0 }
 0x1cf   : > { %v1929_v59 = vadd.f32 %v6631_v9, %v1768_v33  ;;  %v1978_v1 = vpack.c.bf16 %v1961_v7, %v1960_v53 }
 0x1d1   : > { %v1963_v48 = vmax.f32 %v1929_v59, 0.0  ;;  %6676 = vmatprep.mubr.bf16.mxu1 %v1978_v1 }
 0x1d3   : > { %v1979_v62 = vpack.c.bf16 %v1963_v48, %v1962_v10 }
 0x1d5   : > { %6677 = vmatmul.mubr.bf16.gmra.mxu1 %v1979_v62 }
 0x25a   : > { %v6650_v20 = vpop.f32.mrf.mxu1 }
 0x25b   : > { %v2094_v18 = vadd.f32 %v6650_v20, %v8377_v24 }
 0x25c   : > { %v2085_v36 = vpop.f32.mrf.mxu1 }
 0x25d   : > { %v2086_v22 = vadd.f32 %v8377_v24, %v2085_v36  ;;  %v2214_v28 = vmax.f32 %v2094_v18, 0.0 }
 0x25e   : > { %v6651_v15 = vpop.f32.mrf.mxu1 }
 0x25f   : > { %v2097_v61 = vadd.f32 %v6651_v15, %v8377_v24  ;;  %v2212_v37 = vmax.f32 %v2086_v22, 0.0 }
 0x260   : > { %v2088_v21 = vpop.f32.mrf.mxu1 }
 0x261   : > { %v2089_v27 = vadd.f32 %v8377_v24, %v2088_v21  ;;  %v2215_v34 = vmax.f32 %v2097_v61, 0.0 }
 0x262   : > { %v6654_v51 = vpop.f32.mrf.mxu1 }
 0x263   : > { %v2213_v56 = vmax.f32 %v2089_v27, 0.0  ;;  %v2245_v6 = vpack.c.bf16 %v2215_v34, %v2214_v28  ;;  %v2110_v63 = vadd.f32 %v6654_v51, %v8377_v24 }
 0x264   : > { %v2101_v58 = vpop.f32.mrf.mxu1 }
 0x265   : > { %v2244_v42 = vpack.c.bf16 %v2213_v56, %v2212_v37  ;;  %v2102_v2 = vadd.f32 %v8377_v24, %v2101_v58  ;;  %v2218_v13 = vmax.f32 %v2110_v63, 0.0 }
 0x266   : > { %v6655_v14 = vpop.f32.mrf.mxu1 }
 0x267   : > { %v2113_v31 = vadd.f32 %v6655_v14, %v8377_v24  ;;  %6688 = vmatprep.mubr.msk.bf16.mxu0 %vm2299_vm2, %v2244_v42  ;;  %v2216_v35 = vmax.f32 %v2102_v2, 0.0 }
 0x268   : > { %v2104_v52 = vpop.f32.mrf.mxu1  ;;  %6689 = vmatmul.mubr.msk.bf16.vlgmr.msra.gmra.mxu0 %vm2299_vm2, %v2245_v6 }
 0x269   : > { %v2105_v3 = vadd.f32 %v8377_v24, %v2104_v52  ;;  %v2219_v26 = vmax.f32 %v2113_v31, 0.0 }
 0x26a   : > { %v6658_v55 = vpop.f32.mrf.mxu1 }
 0x26b   : > { %v2217_v38 = vmax.f32 %v2105_v3, 0.0  ;;  %v2247_v60 = vpack.c.bf16 %v2219_v26, %v2218_v13  ;;  %v2126_v46 = vadd.f32 %v6658_v55, %v8377_v24 }
 0x26c   : > { %v2117_v8 = vpop.f32.mrf.mxu1 }
 0x26d   : > { %v2246_v57 = vpack.c.bf16 %v2217_v38, %v2216_v35  ;;  %v2118_v11 = vadd.f32 %v8377_v24, %v2117_v8  ;;  %v2222_v50 = vmax.f32 %v2126_v46, 0.0 }
 0x26e   : > { %v6659_v44 = vpop.f32.mrf.mxu1 }
 0x26f   : > { %v2129_v23 = vadd.f32 %v6659_v44, %v8377_v24  ;;  %6692 = vmatprep.mubr.msk.bf16.mxu0 %vm2299_vm2, %v2246_v57  ;;  %v2220_v49 = vmax.f32 %v2118_v11, 0.0 }
 0x270   : > { %v2120_v17 = vpop.f32.mrf.mxu1  ;;  %6693 = vmatmul.mubr.msk.bf16.gmra.mxu0 %vm2299_vm2, %v2247_v60 }
 0x271   : > { %v2121_v41 = vadd.f32 %v8377_v24, %v2120_v17  ;;  %v2223_v32 = vmax.f32 %v2129_v23, 0.0 }
 0x272   : > { %v6662_v19 = vpop.f32.mrf.mxu1 }
 0x273   : > { %v2221_v29 = vmax.f32 %v2121_v41, 0.0  ;;  %v2249_v9 = vpack.c.bf16 %v2223_v32, %v2222_v50  ;;  %v2142_v47 = vadd.f32 %v6662_v19, %v8377_v24 }
 0x274   : > { %v2133_v39 = vpop.f32.mrf.mxu1 }
 0x275   : > { %v2248_v16 = vpack.c.bf16 %v2221_v29, %v2220_v49  ;;  %v2134_v40 = vadd.f32 %v8377_v24, %v2133_v39  ;;  %v2226_v33 = vmax.f32 %v2142_v47, 0.0 }
 0x276   : > { %v6663_v54 = vpop.f32.mrf.mxu1 }
 0x277   : > { %v2145_v25 = vadd.f32 %v6663_v54, %v8377_v24  ;;  %6696 = vmatprep.mubr.msk.bf16.mxu0 %vm2299_vm2, %v2248_v16  ;;  %v2224_v5 = vmax.f32 %v2134_v40, 0.0 }
 0x278   : > { %v2136_v0 = vpop.f32.mrf.mxu1  ;;  %6697 = vmatmul.mubr.msk.bf16.gmra.mxu0 %vm2299_vm2, %v2249_v9 }
 0x279   : > { %v2137_v12 = vadd.f32 %v8377_v24, %v2136_v0  ;;  %v2227_v43 = vmax.f32 %v2145_v25, 0.0 }
 0x27a   : > { %v6666_v4 = vpop.f32.mrf.mxu1 }
 0x27b   : > { %v2225_v53 = vmax.f32 %v2137_v12, 0.0  ;;  %v2251_v1 = vpack.c.bf16 %v2227_v43, %v2226_v33  ;;  %v2158_v30 = vadd.f32 %v6666_v4, %v8377_v24  ;;  %v6967_v12 = vld [vmem:[%s9386_s9] sm:$0x3f]  }
 0x27c   : > { %v2149_v7 = vpop.f32.mrf.mxu1  ;;  %6893 = vmatprep.subr.msk.bf16.mxu0 %vm2620_vm1, %v6967_v12  ;;  %v2896_v43 = vsel %vm2620_vm1, %v6967_v12, 0 }
 0x27d   : > { %v2250_v59 = vpack.c.bf16 %v2225_v53, %v2224_v5  ;;  %v2150_v48 = vadd.f32 %v8377_v24, %v2149_v7  ;;  %v2230_v18 = vmax.f32 %v2158_v30, 0.0  ;;  %6755 = vmatpush3.bf16.msra.mxu0 %v2896_v43  ;;  %v8435_v5 = vld [vmem:[%s9383_s6] ss:$0 sm:$0xff] }
 0x27e   : > { %v6667_v10 = vpop.f32.mrf.mxu1 }
 0x27f   : > { %v2161_v62 = vadd.f32 %v6667_v10, %v8377_v24  ;;  %6700 = vmatprep.mubr.msk.bf16.mxu0 %vm2299_vm2, %v2250_v59  ;;  %v2228_v22 = vmax.f32 %v2150_v48, 0.0 }
 0x280   : > { %v2152_v45 = vpop.f32.mrf.mxu1  ;;  %6701 = vmatmul.mubr.msk.bf16.gmra.mxu0 %vm2299_vm2, %v2251_v1 }
 0x281   : > { %v2153_v20 = vadd.f32 %v8377_v24, %v2152_v45  ;;  %v2231_v36 = vmax.f32 %v2161_v62, 0.0 }
 0x282   : > { %v6670_v15 = vpop.f32.mrf.mxu1 }
 0x283   : > { %v2229_v61 = vmax.f32 %v2153_v20, 0.0  ;;  %v2253_v34 = vpack.c.bf16 %v2231_v36, %v2230_v18  ;;  %v2174_v28 = vadd.f32 %v6670_v15, %v8377_v24 }
 0x284   : > { %v2165_v21 = vpop.f32.mrf.mxu1 }
 0x285   : > { %v2252_v27 = vpack.c.bf16 %v2229_v61, %v2228_v22  ;;  %v2166_v37 = vadd.f32 %v8377_v24, %v2165_v21  ;;  %v2234_v63 = vmax.f32 %v2174_v28, 0.0 }
 0x286   : > { %v6671_v51 = vpop.f32.mrf.mxu1 }
 0x287   : > { %v2177_v56 = vadd.f32 %v6671_v51, %v8377_v24  ;;  %6704 = vmatprep.mubr.msk.bf16.mxu0 %vm2299_vm2, %v2252_v27  ;;  %v2232_v2 = vmax.f32 %v2166_v37, 0.0 }
 0x288   : > { %v2168_v58 = vpop.f32.mrf.mxu1  ;;  %6705 = vmatmul.mubr.msk.bf16.gmra.mxu0 %vm2299_vm2, %v2253_v34 }
 0x289   : > { %v2169_v42 = vadd.f32 %v8377_v24, %v2168_v58  ;;  %v2235_v6 = vmax.f32 %v2177_v56, 0.0 }
 0x28a   : > { %v6674_v14 = vpop.f32.mrf.mxu1 }
 0x28b   : > { %v2233_v31 = vmax.f32 %v2169_v42, 0.0  ;;  %v2255_v26 = vpack.c.bf16 %v2235_v6, %v2234_v63  ;;  %v2190_v13 = vadd.f32 %v6674_v14, %v8377_v24 }
 0x28c   : > { %v2181_v52 = vpop.f32.mrf.mxu1 }
 0x28d   : > { %v2254_v3 = vpack.c.bf16 %v2233_v31, %v2232_v2  ;;  %v2182_v35 = vadd.f32 %v8377_v24, %v2181_v52  ;;  %v2238_v23 = vmax.f32 %v2190_v13, 0.0 }
 0x28e   : > { %v6675_v55 = vpop.f32.mrf.mxu1 }
 0x28f   : > { %v2193_v38 = vadd.f32 %v6675_v55, %v8377_v24  ;;  %6708 = vmatprep.mubr.msk.bf16.mxu0 %vm2299_vm2, %v2254_v3  ;;  %v2236_v44 = vmax.f32 %v2182_v35, 0.0 }
 0x290   : > { %v2184_v8 = vpop.f32.mrf.mxu1  ;;  %6709 = vmatmul.mubr.msk.bf16.gmra.mxu0 %vm2299_vm2, %v2255_v26 }
 0x291   : > { %v2185_v57 = vadd.f32 %v8377_v24, %v2184_v8  ;;  %v2239_v60 = vmax.f32 %v2193_v38, 0.0 }
 0x293   : > { %v2237_v11 = vmax.f32 %v2185_v57, 0.0  ;;  %v2257_v41 = vpack.c.bf16 %v2239_v60, %v2238_v23 }
 0x295   : > { %v2256_v46 = vpack.c.bf16 %v2237_v11, %v2236_v44  ;;  %v6678_v17 = vpop.f32.mrf.mxu1 }
 0x296   : > { %v2206_v50 = vadd.f32 %v6678_v17, %v8377_v24 }
 0x297   : > { %v2197_v32 = vpop.f32.mrf.mxu1  ;;  %6712 = vmatprep.mubr.msk.bf16.mxu0 %vm2299_vm2, %v2256_v46 }
 0x298   : > { %6713 = vmatmul.mubr.msk.bf16.gmra.mxu0 %vm2299_vm2, %v2257_v41  ;;  %v2198_v49 = vadd.f32 %v8377_v24, %v2197_v32  ;;  %v2242_v25 = vmax.f32 %v2206_v50, 0.0 }
 0x299   : > { %v6679_v19 = vpop.f32.mrf.mxu1 }
 0x29a   : > { %v2209_v29 = vadd.f32 %v6679_v19, %v8377_v24  ;;  %v2240_v54 = vmax.f32 %v2198_v49, 0.0 }
 0x29b   : > { %v2200_v39 = vpop.f32.mrf.mxu1 }
 0x29c   : > { %v2201_v16 = vadd.f32 %v8377_v24, %v2200_v39  ;;  %v2243_v9 = vmax.f32 %v2209_v29, 0.0 }
 0x29e   : > { %v2241_v40 = vmax.f32 %v2201_v16, 0.0  ;;  %v2259_v0 = vpack.c.bf16 %v2243_v9, %v2242_v25 }
 0x2a0   : > { %v2258_v47 = vpack.c.bf16 %v2241_v40, %v2240_v54 }
 0x2a2   : > { %6716 = vmatprep.mubr.msk.bf16.mxu0 %vm2299_vm2, %v2258_v47 }
 0x2a3   : > { %6717 = vmatmul.mubr.msk.bf16.gmra.mxu0 %vm2299_vm2, %v2259_v0 }
 0x328   : > { %v6690_v24 = vpop.f32.mrf.mxu0 }
 0x329   : > { %v2391_v59 = vadd.f32 %v6690_v24, %v8435_v5 }
 0x32a   : > { %v2382_v4 = vpop.f32.mrf.mxu0 }
 0x32b   : > { %v2383_v33 = vadd.f32 %v8435_v5, %v2382_v4  ;;  %v2511_v20 = vmax.f32 %v2391_v59, 0.0 }
 0x32c   : > { %v6691_v53 = vpop.f32.mrf.mxu0 }
 0x32d   : > { %v2394_v7 = vadd.f32 %v6691_v53, %v8435_v5  ;;  %v2509_v30 = vmax.f32 %v2383_v33, 0.0 }
 0x32e   : > { %v2385_v1 = vpop.f32.mrf.mxu0 }
 0x32f   : > { %v2386_v10 = vadd.f32 %v8435_v5, %v2385_v1  ;;  %v2512_v48 = vmax.f32 %v2394_v7, 0.0 }
 0x330   : > { %v6694_v62 = vpop.f32.mrf.mxu0 }
 0x331   : > { %v2510_v45 = vmax.f32 %v2386_v10, 0.0  ;;  %v2542_v22 = vpack.c.bf16 %v2512_v48, %v2511_v20  ;;  %v2407_v27 = vadd.f32 %v6694_v62, %v8435_v5 }
 0x332   : > { %v2398_v36 = vpop.f32.mrf.mxu0 }
 0x333   : > { %v2541_v15 = vpack.c.bf16 %v2510_v45, %v2509_v30  ;;  %v2399_v18 = vadd.f32 %v8435_v5, %v2398_v36  ;;  %v2515_v42 = vmax.f32 %v2407_v27, 0.0 }
 0x334   : > { %v6695_v61 = vpop.f32.mrf.mxu0 }
 0x335   : > { %v2410_v21 = vadd.f32 %v6695_v61, %v8435_v5  ;;  %6722 = vmatprep.mubr.msk.bf16.mxu1 %vm2571_vm3, %v2541_v15  ;;  %v2513_v28 = vmax.f32 %v2399_v18, 0.0 }
 0x336   : > { %v2401_v34 = vpop.f32.mrf.mxu0  ;;  %6723 = vmatmul.mubr.msk.bf16.vlgmr.msra.gmra.mxu1 %vm2571_vm3, %v2542_v22 }
 0x337   : > { %v2402_v51 = vadd.f32 %v8435_v5, %v2401_v34  ;;  %v2516_v37 = vmax.f32 %v2410_v21, 0.0 }
 0x338   : > { %v6698_v56 = vpop.f32.mrf.mxu0 }
 0x339   : > { %v2514_v58 = vmax.f32 %v2402_v51, 0.0  ;;  %v2544_v2 = vpack.c.bf16 %v2516_v37, %v2515_v42  ;;  %v2423_v3 = vadd.f32 %v6698_v56, %v8435_v5 }
 0x33a   : > { %v2414_v6 = vpop.f32.mrf.mxu0 }
 0x33b   : > { %v2543_v14 = vpack.c.bf16 %v2514_v58, %v2513_v28  ;;  %v2415_v63 = vadd.f32 %v8435_v5, %v2414_v6  ;;  %v2519_v57 = vmax.f32 %v2423_v3, 0.0 }
 0x33c   : > { %v6699_v31 = vpop.f32.mrf.mxu0 }
 0x33d   : > { %v2426_v52 = vadd.f32 %v6699_v31, %v8435_v5  ;;  %6726 = vmatprep.mubr.msk.bf16.mxu1 %vm2571_vm3, %v2543_v14  ;;  %v2517_v13 = vmax.f32 %v2415_v63, 0.0 }
 0x33e   : > { %v2417_v26 = vpop.f32.mrf.mxu0  ;;  %6727 = vmatmul.mubr.msk.bf16.gmra.mxu1 %vm2571_vm3, %v2544_v2 }
 0x33f   : > { %v2418_v55 = vadd.f32 %v8435_v5, %v2417_v26  ;;  %v2520_v35 = vmax.f32 %v2426_v52, 0.0 }
 0x340   : > { %v6702_v38 = vpop.f32.mrf.mxu0 }
 0x341   : > { %v2518_v8 = vmax.f32 %v2418_v55, 0.0  ;;  %v2546_v11 = vpack.c.bf16 %v2520_v35, %v2519_v57  ;;  %v2439_v41 = vadd.f32 %v6702_v38, %v8435_v5 }
 0x342   : > { %v2430_v60 = vpop.f32.mrf.mxu0 }
 0x343   : > { %v2545_v44 = vpack.c.bf16 %v2518_v8, %v2517_v13  ;;  %v2431_v46 = vadd.f32 %v8435_v5, %v2430_v60  ;;  %v2523_v16 = vmax.f32 %v2439_v41, 0.0 }
 0x344   : > { %v6703_v23 = vpop.f32.mrf.mxu0 }
 0x345   : > { %v2442_v17 = vadd.f32 %v6703_v23, %v8435_v5  ;;  %6730 = vmatprep.mubr.msk.bf16.mxu1 %vm2571_vm3, %v2545_v44  ;;  %v2521_v50 = vmax.f32 %v2431_v46, 0.0 }
 0x346   : > { %v2433_v32 = vpop.f32.mrf.mxu0  ;;  %6731 = vmatmul.mubr.msk.bf16.gmra.mxu1 %vm2571_vm3, %v2546_v11 }
 0x347   : > { %v2434_v19 = vadd.f32 %v8435_v5, %v2433_v32  ;;  %v2524_v49 = vmax.f32 %v2442_v17, 0.0 }
 0x348   : > { %v6706_v29 = vpop.f32.mrf.mxu0 }
 0x349   : > { %v2522_v39 = vmax.f32 %v2434_v19, 0.0  ;;  %v2548_v40 = vpack.c.bf16 %v2524_v49, %v2523_v16  ;;  %v2455_v12 = vadd.f32 %v6706_v29, %v8435_v5  ;;  %v6968_v19 = vld [vmem:[%s9388_s11 + $0x18] sm:$0xff]   ;;  %v6969_v49 = vld [vmem:[%s9388_s11 + $0x10] sm:$0xff]   ;;  %v6971_v29 = vld [vmem:[%s9388_s11] sm:$0xff]  }
 0x34a   : > { %v2446_v9 = vpop.f32.mrf.mxu0  ;;  %6788 = vmatprep.subr.bf16.mxu1 %v6968_v19  ;;  %v8500_v16 = vld [vmem:[%s9385_s8] ss:$0 sm:$0xff] }
 0x34b   : > { %v2547_v54 = vpack.c.bf16 %v2522_v39, %v2521_v50  ;;  %v2447_v47 = vadd.f32 %v8435_v5, %v2446_v9  ;;  %v2527_v59 = vmax.f32 %v2455_v12, 0.0  ;;  %6789 = vmatpush3.bf16.msra.mxu1 %v6968_v19 }
 0x34c   : > { %v6707_v25 = vpop.f32.mrf.mxu0  ;;  %6790 = vmatprep.subr.bf16.mxu1 %v6969_v49 }
 0x34d   : > { %v2458_v0 = vadd.f32 %v6707_v25, %v8435_v5  ;;  %6734 = vmatprep.mubr.msk.bf16.mxu1 %vm2571_vm3, %v2547_v54  ;;  %v2525_v33 = vmax.f32 %v2447_v47, 0.0 }
 0x34e   : > { %v2449_v43 = vpop.f32.mrf.mxu0  ;;  %6735 = vmatmul.mubr.msk.bf16.gmra.mxu1 %vm2571_vm3, %v2548_v40 }
 0x34f   : > { %v2450_v24 = vadd.f32 %v8435_v5, %v2449_v43  ;;  %v2528_v4 = vmax.f32 %v2458_v0, 0.0  ;;  %6791 = vmatpush3.bf16.msra.mxu1 %v6969_v49 }
 0x350   : > { %v6710_v53 = vpop.f32.mrf.mxu0 }
 0x351   : > { %v2526_v7 = vmax.f32 %v2450_v24, 0.0  ;;  %v2550_v48 = vpack.c.bf16 %v2528_v4, %v2527_v59  ;;  %v2471_v20 = vadd.f32 %v6710_v53, %v8435_v5 }
 0x352   : > { %v2462_v1 = vpop.f32.mrf.mxu0 }
 0x353   : > { %v2549_v10 = vpack.c.bf16 %v2526_v7, %v2525_v33  ;;  %v2463_v30 = vadd.f32 %v8435_v5, %v2462_v1  ;;  %v2531_v27 = vmax.f32 %v2471_v20, 0.0 }
 0x354   : > { %v6711_v62 = vpop.f32.mrf.mxu0 }
 0x355   : > { %v2474_v45 = vadd.f32 %v6711_v62, %v8435_v5  ;;  %6738 = vmatprep.mubr.msk.bf16.mxu1 %vm2571_vm3, %v2549_v10  ;;  %v2529_v18 = vmax.f32 %v2463_v30, 0.0 }
 0x356   : > { %v2465_v36 = vpop.f32.mrf.mxu0  ;;  %6739 = vmatmul.mubr.msk.bf16.gmra.mxu1 %vm2571_vm3, %v2550_v48 }
 0x357   : > { %v2466_v15 = vadd.f32 %v8435_v5, %v2465_v36  ;;  %v2532_v22 = vmax.f32 %v2474_v45, 0.0 }
 0x358   : > { %v6714_v61 = vpop.f32.mrf.mxu0 }
 0x359   : > { %v2530_v21 = vmax.f32 %v2466_v15, 0.0  ;;  %v2552_v37 = vpack.c.bf16 %v2532_v22, %v2531_v27  ;;  %v2487_v42 = vadd.f32 %v6714_v61, %v8435_v5 }
 0x35a   : > { %v2478_v34 = vpop.f32.mrf.mxu0 }
 0x35b   : > { %v2551_v51 = vpack.c.bf16 %v2530_v21, %v2529_v18  ;;  %v2479_v28 = vadd.f32 %v8435_v5, %v2478_v34  ;;  %v2535_v52 = vmax.f32 %v2487_v42, 0.0 }
 0x35c   : > { %v6715_v56 = vpop.f32.mrf.mxu0 }
 0x35d   : > { %v2490_v58 = vadd.f32 %v6715_v56, %v8435_v5  ;;  %6742 = vmatprep.mubr.msk.bf16.mxu1 %vm2571_vm3, %v2551_v51  ;;  %v2533_v31 = vmax.f32 %v2479_v28, 0.0 }
 0x35e   : > { %v2481_v6 = vpop.f32.mrf.mxu0  ;;  %6743 = vmatmul.mubr.msk.bf16.gmra.mxu1 %vm2571_vm3, %v2552_v37 }
 0x35f   : > { %v2482_v14 = vadd.f32 %v8435_v5, %v2481_v6  ;;  %v2536_v2 = vmax.f32 %v2490_v58, 0.0 }
 0x361   : > { %v2534_v63 = vmax.f32 %v2482_v14, 0.0  ;;  %v2554_v55 = vpack.c.bf16 %v2536_v2, %v2535_v52 }
 0x363   : > { %v2553_v3 = vpack.c.bf16 %v2534_v63, %v2533_v31  ;;  %v6718_v26 = vpop.f32.mrf.mxu0 }
 0x364   : > { %v2503_v57 = vadd.f32 %v6718_v26, %v8435_v5 }
 0x365   : > { %v2494_v35 = vpop.f32.mrf.mxu0  ;;  %6746 = vmatprep.mubr.msk.bf16.mxu1 %vm2571_vm3, %v2553_v3 }
 0x366   : > { %6747 = vmatmul.mubr.msk.bf16.gmra.mxu1 %vm2571_vm3, %v2554_v55  ;;  %v2495_v13 = vadd.f32 %v8435_v5, %v2494_v35  ;;  %v2539_v17 = vmax.f32 %v2503_v57, 0.0 }
 0x367   : > { %v6719_v38 = vpop.f32.mrf.mxu0 }
 0x368   : > { %v2506_v8 = vadd.f32 %v6719_v38, %v8435_v5  ;;  %v2537_v23 = vmax.f32 %v2495_v13, 0.0 }
 0x369   : > { %v2497_v60 = vpop.f32.mrf.mxu0 }
 0x36a   : > { %v2498_v44 = vadd.f32 %v8435_v5, %v2497_v60  ;;  %v2540_v11 = vmax.f32 %v2506_v8, 0.0  ;;  %v6970_v5 = vld [vmem:[%s9388_s11 + $0x8] sm:$0xff]  }
 0x36b   : > { %6792 = vmatprep.subr.bf16.mxu1 %v6970_v5 }
 0x36c   : > { %v2538_v46 = vmax.f32 %v2498_v44, 0.0  ;;  %v2556_v32 = vpack.c.bf16 %v2540_v11, %v2539_v17  ;;  %6793 = vmatpush3.bf16.msra.mxu1 %v6970_v5 }
 0x36d   : > { %6794 = vmatprep.subr.bf16.mxu1 %v6971_v29 }
 0x36e   : > { %v2555_v41 = vpack.c.bf16 %v2538_v46, %v2537_v23 }
 0x370   : > { %6750 = vmatprep.mubr.msk.bf16.mxu1 %vm2571_vm3, %v2555_v41  ;;  %6795 = vmatpush3.bf16.msra.mxu1 %v6971_v29 }
 0x371   : > { %6751 = vmatmul.mubr.msk.bf16.gmra.mxu1 %vm2571_vm3, %v2556_v32 }
 0x3f6   : > { %v6724_v50 = vpop.f32.mrf.mxu1 }
 0x3f7   : > { %v2667_v25 = vadd.f32 %v6724_v50, %v8500_v16 }
 0x3f8   : > { %v2658_v39 = vpop.f32.mrf.mxu1 }
 0x3f9   : > { %v2659_v54 = vadd.f32 %v8500_v16, %v2658_v39  ;;  %v2787_v53 = vmax.f32 %v2667_v25, 0.0 }
 0x3fa   : > { %v6725_v9 = vpop.f32.mrf.mxu1 }
 0x3fb   : > { %v2670_v40 = vadd.f32 %v6725_v9, %v8500_v16  ;;  %v2785_v24 = vmax.f32 %v2659_v54, 0.0 }
 0x3fc   : > { %v2661_v47 = vpop.f32.mrf.mxu1 }
 0x3fd   : > { %v2662_v0 = vadd.f32 %v8500_v16, %v2661_v47  ;;  %v2788_v12 = vmax.f32 %v2670_v40, 0.0 }
 0x3fe   : > { %v6728_v43 = vpop.f32.mrf.mxu1 }
 0x3ff   : > { %v2786_v4 = vmax.f32 %v2662_v0, 0.0  ;;  %v2818_v59 = vpack.c.bf16 %v2788_v12, %v2787_v53  ;;  %v2683_v62 = vadd.f32 %v6728_v43, %v8500_v16 }
 0x400   : > { %v2674_v33 = vpop.f32.mrf.mxu1 }
 0x401   : > { %v2817_v7 = vpack.c.bf16 %v2786_v4, %v2785_v24  ;;  %v2675_v10 = vadd.f32 %v8500_v16, %v2674_v33  ;;  %v2791_v61 = vmax.f32 %v2683_v62, 0.0 }
 0x402   : > { %v6729_v1 = vpop.f32.mrf.mxu1 }
 0x403   : > { %v2686_v48 = vadd.f32 %v6729_v1, %v8500_v16  ;;  %6756 = vmatprep.mubr.msk.bf16.mxu0 %vm2571_vm3, %v2817_v7  ;;  %v2789_v15 = vmax.f32 %v2675_v10, 0.0 }
 0x404   : > { %v2677_v30 = vpop.f32.mrf.mxu1  ;;  %6757 = vmatmul.mubr.msk.bf16.vlgmr.msra.gmra.mxu0 %vm2571_vm3, %v2818_v59 }
 0x405   : > { %v2678_v45 = vadd.f32 %v8500_v16, %v2677_v30  ;;  %v2792_v20 = vmax.f32 %v2686_v48, 0.0 }
 0x406   : > { %v6732_v36 = vpop.f32.mrf.mxu1 }
 0x407   : > { %v2790_v22 = vmax.f32 %v2678_v45, 0.0  ;;  %v2820_v27 = vpack.c.bf16 %v2792_v20, %v2791_v61  ;;  %v2699_v56 = vadd.f32 %v6732_v36, %v8500_v16 }
 0x408   : > { %v2690_v18 = vpop.f32.mrf.mxu1 }
 0x409   : > { %v2819_v21 = vpack.c.bf16 %v2790_v22, %v2789_v15  ;;  %v2691_v51 = vadd.f32 %v8500_v16, %v2690_v18  ;;  %v2795_v31 = vmax.f32 %v2699_v56, 0.0 }
 0x40a   : > { %v6733_v34 = vpop.f32.mrf.mxu1 }
 0x40b   : > { %v2702_v37 = vadd.f32 %v6733_v34, %v8500_v16  ;;  %6760 = vmatprep.mubr.msk.bf16.mxu0 %vm2571_vm3, %v2819_v21  ;;  %v2793_v14 = vmax.f32 %v2691_v51, 0.0 }
 0x40c   : > { %v2693_v28 = vpop.f32.mrf.mxu1  ;;  %6761 = vmatmul.mubr.msk.bf16.gmra.mxu0 %vm2571_vm3, %v2820_v27 }
 0x40d   : > { %v2694_v58 = vadd.f32 %v8500_v16, %v2693_v28  ;;  %v2796_v42 = vmax.f32 %v2702_v37, 0.0 }
 0x40e   : > { %v6736_v6 = vpop.f32.mrf.mxu1 }
 0x40f   : > { %v2794_v2 = vmax.f32 %v2694_v58, 0.0  ;;  %v2822_v3 = vpack.c.bf16 %v2796_v42, %v2795_v31  ;;  %v2715_v38 = vadd.f32 %v6736_v6, %v8500_v16 }
 0x410   : > { %v2706_v63 = vpop.f32.mrf.mxu1 }
 0x411   : > { %v2821_v52 = vpack.c.bf16 %v2794_v2, %v2793_v14  ;;  %v2707_v55 = vadd.f32 %v8500_v16, %v2706_v63  ;;  %v2799_v23 = vmax.f32 %v2715_v38, 0.0 }
 0x412   : > { %v6737_v26 = vpop.f32.mrf.mxu1 }
 0x413   : > { %v2718_v35 = vadd.f32 %v6737_v26, %v8500_v16  ;;  %6764 = vmatprep.mubr.msk.bf16.mxu0 %vm2571_vm3, %v2821_v52  ;;  %v2797_v44 = vmax.f32 %v2707_v55, 0.0 }
 0x414   : > { %v2709_v13 = vpop.f32.mrf.mxu1  ;;  %6765 = vmatmul.mubr.msk.bf16.gmra.mxu0 %vm2571_vm3, %v2822_v3 }
 0x415   : > { %v2710_v8 = vadd.f32 %v8500_v16, %v2709_v13  ;;  %v2800_v57 = vmax.f32 %v2718_v35, 0.0 }
 0x416   : > { %v6740_v60 = vpop.f32.mrf.mxu1 }
 0x417   : > { %v2798_v11 = vmax.f32 %v2710_v8, 0.0  ;;  %v2824_v41 = vpack.c.bf16 %v2800_v57, %v2799_v23  ;;  %v2731_v5 = vadd.f32 %v6740_v60, %v8500_v16  ;;  %v6972_v8 = vld [vmem:[%s9390_s13 + $0x188] ss:$28 sps:$4 sm:$0xff]   ;;  %v6975_v60 = vld [vmem:[%s9390_s13 + $0x150] ss:$28 sps:$4 sm:$0xff]  }
 0x418   : > { %v2722_v46 = vpop.f32.mrf.mxu1  ;;  %v6974_v57 = vld [vmem:[%s9390_s13 + $0x18c] ss:$28 sps:$4 sm:$0xff]   ;;  %v6978_v23 = vld [vmem:[%s9390_s13 + $0x118] ss:$28 sps:$4 sm:$0xff]  }
 0x419   : > { %v2823_v17 = vpack.c.bf16 %v2798_v11, %v2797_v44  ;;  %v2723_v19 = vadd.f32 %v8500_v16, %v2722_v46  ;;  %v2803_v25 = vmax.f32 %v2731_v5, 0.0  ;;  %3792 = vmatprep.subr.bf16.mxu0 %v6974_v57  ;;  %v6989_v44 = vld [vmem:[%s9390_s13 + $0x194] ss:$28 sps:$4 sm:$0xff]   ;;  %v6980_v11 = vld [vmem:[%s9390_s13 + $0x11c] ss:$28 sps:$4 sm:$0xff]  }
 0x41a   : > { %v6741_v32 = vpop.f32.mrf.mxu1  ;;  %3793 = vmatpush1.bf16.msra.mxu0 %v6972_v8  ;;  %3985 = vmatprep.subr.bf16.mxu1 %v6989_v44  ;;  %v6983_v46 = vld [vmem:[%s9390_s13 + $0xe4] ss:$28 sps:$4 sm:$0xff]   ;;  %v7004_v5 = vld [vmem:[%s9390_s13 + $0x3c] ss:$28 sps:$4 sm:$0xff]  }
 0x41b   : > { %v2734_v49 = vadd.f32 %v6741_v32, %v8500_v16  ;;  %6768 = vmatprep.mubr.msk.bf16.mxu0 %vm2571_vm3, %v2823_v17  ;;  %v2801_v54 = vmax.f32 %v2723_v19, 0.0  ;;  %v6981_v17 = vld [vmem:[%s9390_s13 + $0xe0] ss:$28 sps:$4 sm:$0xff]   ;;  %v6984_v32 = vld [vmem:[%s9390_s13 + $0xa8] ss:$28 sps:$4 sm:$0xff]  }
 0x41c   : > { %v2725_v29 = vpop.f32.mrf.mxu1  ;;  %6769 = vmatmul.mubr.msk.bf16.gmra.mxu0 %vm2571_vm3, %v2824_v41  ;;  %v6986_v41 = vld [vmem:[%s9390_s13 + $0xac] ss:$28 sps:$4 sm:$0xff]   ;;  %v6995_v19 = vld [vmem:[%s9390_s13 + $0x74] ss:$28 sps:$4 sm:$0xff]  }
 0x41d   : > { %v2726_v50 = vadd.f32 %v8500_v16, %v2725_v29  ;;  %v2804_v39 = vmax.f32 %v2734_v49, 0.0  ;;  %v6993_v49 = vld [vmem:[%s9390_s13 + $0x70] ss:$28 sps:$4 sm:$0xff]   ;;  %v7002_v29 = vld [vmem:[%s9390_s13 + $0x38] ss:$28 sps:$4 sm:$0xff]  }
 0x41e   : > { %v6744_v9 = vpop.f32.mrf.mxu1 }
 0x41f   : > { %v2802_v40 = vmax.f32 %v2726_v50, 0.0  ;;  %v2826_v12 = vpack.c.bf16 %v2804_v39, %v2803_v25  ;;  %v2747_v53 = vadd.f32 %v6744_v9, %v8500_v16  ;;  %v8598_v9 = vld [vmem:[%s9387_s10] ss:$0 sm:$0xff] }
 0x420   : > { %v2738_v47 = vpop.f32.mrf.mxu1 }
 0x421   : > { %v2825_v0 = vpack.c.bf16 %v2802_v40, %v2801_v54  ;;  %v2739_v24 = vadd.f32 %v8500_v16, %v2738_v47  ;;  %v2807_v62 = vmax.f32 %v2747_v53, 0.0 }
 0x422   : > { %v6745_v43 = vpop.f32.mrf.mxu1 }
 0x423   : > { %v2750_v4 = vadd.f32 %v6745_v43, %v8500_v16  ;;  %6772 = vmatprep.mubr.msk.bf16.mxu0 %vm2571_vm3, %v2825_v0  ;;  %v2805_v10 = vmax.f32 %v2739_v24, 0.0 }
 0x424   : > { %v2741_v33 = vpop.f32.mrf.mxu1  ;;  %6773 = vmatmul.mubr.msk.bf16.gmra.mxu0 %vm2571_vm3, %v2826_v12 }
 0x425   : > { %v2742_v7 = vadd.f32 %v8500_v16, %v2741_v33  ;;  %v2808_v59 = vmax.f32 %v2750_v4, 0.0 }
 0x426   : > { %v6748_v1 = vpop.f32.mrf.mxu1 }
 0x427   : > { %v2806_v48 = vmax.f32 %v2742_v7, 0.0  ;;  %v2828_v20 = vpack.c.bf16 %v2808_v59, %v2807_v62  ;;  %v2763_v61 = vadd.f32 %v6748_v1, %v8500_v16  ;;  %v6987_v1 = vld [vmem:[%s9390_s13 + $0x190] ss:$28 sps:$4 sm:$0xff]   ;;  %v6992_v62 = vld [vmem:[%s9390_s13 + $0x15c] ss:$28 sps:$4 sm:$0xff]  }
 0x428   : > { %v2754_v30 = vpop.f32.mrf.mxu1 }
 0x429   : > { %v2827_v45 = vpack.c.bf16 %v2806_v48, %v2805_v10  ;;  %v2755_v15 = vadd.f32 %v8500_v16, %v2754_v30  ;;  %v2811_v37 = vmax.f32 %v2763_v61, 0.0 }
 0x42a   : > { %v6749_v36 = vpop.f32.mrf.mxu1 }
 0x42b   : > { %v2766_v22 = vadd.f32 %v6749_v36, %v8500_v16  ;;  %6776 = vmatprep.mubr.msk.bf16.mxu0 %vm2571_vm3, %v2827_v45  ;;  %v2809_v34 = vmax.f32 %v2755_v15, 0.0 }
 0x42c   : > { %v2757_v18 = vpop.f32.mrf.mxu1  ;;  %6777 = vmatmul.mubr.msk.bf16.gmra.mxu0 %vm2571_vm3, %v2828_v20 }
 0x42d   : > { %v2758_v21 = vadd.f32 %v8500_v16, %v2757_v18  ;;  %v2812_v27 = vmax.f32 %v2766_v22, 0.0  ;;  %v6990_v22 = vld [vmem:[%s9390_s13 + $0x158] ss:$28 sps:$4 sm:$0xff]  }
 0x42f   : > { %v2810_v51 = vmax.f32 %v2758_v21, 0.0  ;;  %v2830_v58 = vpack.c.bf16 %v2812_v27, %v2811_v37  ;;  %v6998_v21 = vld [vmem:[%s9390_s13 + $0x124] ss:$28 sps:$4 sm:$0xff]  }
 0x431   : > { %v2829_v56 = vpack.c.bf16 %v2810_v51, %v2809_v34  ;;  %v6752_v28 = vpop.f32.mrf.mxu1 }
 0x432   : > { %v2779_v31 = vadd.f32 %v6752_v28, %v8500_v16  ;;  %v6996_v28 = vld [vmem:[%s9390_s13 + $0x120] ss:$28 sps:$4 sm:$0xff]  }
 0x433   : > { %v2770_v42 = vpop.f32.mrf.mxu1  ;;  %6780 = vmatprep.mubr.msk.bf16.mxu0 %vm2571_vm3, %v2829_v56 }
 0x434   : > { %6781 = vmatmul.mubr.msk.bf16.gmra.mxu0 %vm2571_vm3, %v2830_v58  ;;  %v2771_v14 = vadd.f32 %v8500_v16, %v2770_v42  ;;  %v2815_v35 = vmax.f32 %v2779_v31, 0.0 }
 0x435   : > { %v6753_v6 = vpop.f32.mrf.mxu1 }
 0x436   : > { %v2782_v2 = vadd.f32 %v6753_v6, %v8500_v16  ;;  %v2813_v26 = vmax.f32 %v2771_v14, 0.0  ;;  %v7001_v6 = vld [vmem:[%s9390_s13 + $0xec] ss:$28 sps:$4 sm:$0xff]  }
 0x437   : > { %v2773_v63 = vpop.f32.mrf.mxu1 }
 0x438   : > { %v2774_v52 = vadd.f32 %v8500_v16, %v2773_v63  ;;  %v2816_v3 = vmax.f32 %v2782_v2, 0.0  ;;  %v6977_v16 = vld [vmem:[%s9390_s13 + $0x154] ss:$28 sps:$4 sm:$0xff]  }
 0x439   : > { %3794 = vmatprep.subr.bf16.mxu0 %v6977_v16 }
 0x43a   : > { %v2814_v55 = vmax.f32 %v2774_v52, 0.0  ;;  %v2832_v13 = vpack.c.bf16 %v2816_v3, %v2815_v35  ;;  %3795 = vmatpush1.bf16.msra.mxu0 %v6975_v60  ;;  %v6999_v3 = vld [vmem:[%s9390_s13 + $0xe8] ss:$28 sps:$4 sm:$0xff]   ;;  %v7007_v35 = vld [vmem:[%s9390_s13 + $0xb4] ss:$28 sps:$4 sm:$0xff]  }
 0x43b   : > { %3796 = vmatprep.subr.bf16.mxu0 %v6980_v11  ;;  %v7005_v60 = vld [vmem:[%s9390_s13 + $0xb0] ss:$28 sps:$4 sm:$0xff]  }
 0x43c   : > { %v2831_v38 = vpack.c.bf16 %v2814_v55, %v2813_v26 }
 0x43e   : > { %6784 = vmatprep.mubr.msk.bf16.mxu0 %vm2571_vm3, %v2831_v38  ;;  %3797 = vmatpush1.bf16.msra.mxu0 %v6978_v23 }
 0x43f   : > { %6785 = vmatmul.mubr.msk.bf16.gmra.mxu0 %vm2571_vm3, %v2832_v13  ;;  %3798 = vmatprep.subr.bf16.mxu0 %v6983_v46 }
 0x442   : > { %3799 = vmatpush1.bf16.msra.mxu0 %v6981_v17 }
 0x443   : > { %3800 = vmatprep.subr.bf16.mxu0 %v6986_v41 }
 0x446   : > { %3801 = vmatpush1.bf16.msra.mxu0 %v6984_v32 }
 0x447   : > { %3802 = vmatprep.subr.bf16.mxu0 %v6995_v19 }
 0x44a   : > { %3803 = vmatpush1.bf16.msra.mxu0 %v6993_v49 }
 0x44b   : > { %3804 = vmatprep.subr.bf16.mxu0 %v7004_v5 }
 0x44e   : > { %3805 = vmatpush1.bf16.msra.mxu0 %v7002_v29 }
 0x4c4   : > { %v6758_v50 = vpop.f32.mrf.mxu0 }
 0x4c5   : > { %v2941_v47 = vadd.f32 %v6758_v50, %v8598_v9 }
 0x4c6   : > { %v2932_v39 = vpop.f32.mrf.mxu0 }
 0x4c7   : > { %v2933_v40 = vadd.f32 %v8598_v9, %v2932_v39  ;;  %v3061_v33 = vmax.f32 %v2941_v47, 0.0 }
 0x4c8   : > { %v6759_v54 = vpop.f32.mrf.mxu0 }
 0x4c9   : > { %v2944_v25 = vadd.f32 %v6759_v54, %v8598_v9  ;;  %v3059_v4 = vmax.f32 %v2933_v40, 0.0 }
 0x4ca   : > { %v2935_v0 = vpop.f32.mrf.mxu0 }
 0x4cb   : > { %v2936_v12 = vadd.f32 %v8598_v9, %v2935_v0  ;;  %v3062_v43 = vmax.f32 %v2944_v25, 0.0 }
 0x4cc   : > { %v6762_v24 = vpop.f32.mrf.mxu0 }
 0x4cd   : > { %v3060_v53 = vmax.f32 %v2936_v12, 0.0  ;;  %v3092_v10 = vpack.c.bf16 %v3062_v43, %v3061_v33  ;;  %v2957_v20 = vadd.f32 %v6762_v24, %v8598_v9 }
 0x4ce   : > { %v2948_v7 = vpop.f32.mrf.mxu0 }
 0x4cf   : > { %v3091_v59 = vpack.c.bf16 %v3060_v53, %v3059_v4  ;;  %v2949_v30 = vadd.f32 %v8598_v9, %v2948_v7  ;;  %v3065_v51 = vmax.f32 %v2957_v20, 0.0 }
 0x4d0   : > { %v6763_v48 = vpop.f32.mrf.mxu0 }
 0x4d1   : > { %v2960_v45 = vadd.f32 %v6763_v48, %v8598_v9  ;;  %6796 = vmatprep.mubr.msk.bf16.mxu1 %vm2299_vm2, %v3091_v59  ;;  %v3063_v27 = vmax.f32 %v2949_v30, 0.0 }
 0x4d2   : > { %v2951_v36 = vpop.f32.mrf.mxu0  ;;  %6797 = vmatmul.mubr.msk.bf16.vlgmr.msra.gmra.mxu1 %vm2299_vm2, %v3092_v10 }
 0x4d3   : > { %v2952_v15 = vadd.f32 %v8598_v9, %v2951_v36  ;;  %3986 = vmatpush1.bf16.msra.mxu1 %v6987_v1  ;;  %v3066_v61 = vmax.f32 %v2960_v45, 0.0 }
 0x4d4   : > { %v6766_v18 = vpop.f32.mrf.mxu0  ;;  %3987 = vmatprep.subr.bf16.mxu1 %v6992_v62 }
 0x4d5   : > { %v3064_v34 = vmax.f32 %v2952_v15, 0.0  ;;  %v3094_v58 = vpack.c.bf16 %v3066_v61, %v3065_v51  ;;  %v2973_v31 = vadd.f32 %v6766_v18, %v8598_v9 }
 0x4d6   : > { %v2964_v37 = vpop.f32.mrf.mxu0 }
 0x4d7   : > { %v3093_v56 = vpack.c.bf16 %v3064_v34, %v3063_v27  ;;  %3988 = vmatpush1.bf16.msra.mxu1 %v6990_v22  ;;  %v2965_v14 = vadd.f32 %v8598_v9, %v2964_v37  ;;  %v3069_v8 = vmax.f32 %v2973_v31, 0.0 }
 0x4d8   : > { %v6767_v42 = vpop.f32.mrf.mxu0  ;;  %3989 = vmatprep.subr.bf16.mxu1 %v6998_v21 }
 0x4d9   : > { %v2976_v2 = vadd.f32 %v6767_v42, %v8598_v9  ;;  %6800 = vmatprep.mubr.msk.bf16.mxu1 %vm2299_vm2, %v3093_v56  ;;  %v3067_v38 = vmax.f32 %v2965_v14, 0.0 }
 0x4da   : > { %v2967_v63 = vpop.f32.mrf.mxu0  ;;  %6801 = vmatmul.mubr.msk.bf16.gmra.mxu1 %vm2299_vm2, %v3094_v58 }
 0x4db   : > { %v2968_v52 = vadd.f32 %v8598_v9, %v2967_v63  ;;  %3990 = vmatpush1.bf16.msra.mxu1 %v6996_v28  ;;  %v3070_v26 = vmax.f32 %v2976_v2, 0.0 }
 0x4dc   : > { %v6770_v55 = vpop.f32.mrf.mxu0  ;;  %3991 = vmatprep.subr.bf16.mxu1 %v7001_v6 }
 0x4dd   : > { %v3068_v13 = vmax.f32 %v2968_v52, 0.0  ;;  %v3096_v44 = vpack.c.bf16 %v3070_v26, %v3069_v8  ;;  %v2989_v17 = vadd.f32 %v6770_v55, %v8598_v9 }
 0x4de   : > { %v2980_v57 = vpop.f32.mrf.mxu0 }
 0x4df   : > { %v3095_v16 = vpack.c.bf16 %v3068_v13, %v3067_v38  ;;  %3992 = vmatpush1.bf16.msra.mxu1 %v6999_v3  ;;  %v2981_v23 = vadd.f32 %v8598_v9, %v2980_v57  ;;  %v3073_v50 = vmax.f32 %v2989_v17, 0.0 }
 0x4e0   : > { %v6771_v11 = vpop.f32.mrf.mxu0  ;;  %3993 = vmatprep.subr.bf16.mxu1 %v7007_v35 }
 0x4e1   : > { %v2992_v46 = vadd.f32 %v6771_v11, %v8598_v9  ;;  %6804 = vmatprep.mubr.msk.bf16.mxu1 %vm2299_vm2, %v3095_v16  ;;  %v3071_v5 = vmax.f32 %v2981_v23, 0.0 }
 0x4e2   : > { %v2983_v41 = vpop.f32.mrf.mxu0  ;;  %6805 = vmatmul.mubr.msk.bf16.gmra.mxu1 %vm2299_vm2, %v3096_v44 }
 0x4e3   : > { %v2984_v32 = vadd.f32 %v8598_v9, %v2983_v41  ;;  %3994 = vmatpush1.bf16.msra.mxu1 %v7005_v60  ;;  %v3074_v19 = vmax.f32 %v2992_v46, 0.0 }
 0x4e4   : > { %v6774_v49 = vpop.f32.mrf.mxu0 }
 0x4e5   : > { %v3072_v29 = vmax.f32 %v2984_v32, 0.0  ;;  %v3098_v40 = vpack.c.bf16 %v3074_v19, %v3073_v50  ;;  %v3005_v12 = vadd.f32 %v6774_v49, %v8598_v9  ;;  %v7010_v32 = vld [vmem:[%s9390_s13 + $0x7c] ss:$28 sps:$4 sm:$0xff]  }
 0x4e6   : > { %v2996_v39 = vpop.f32.mrf.mxu0  ;;  %v7008_v19 = vld [vmem:[%s9390_s13 + $0x78] ss:$28 sps:$4 sm:$0xff]   ;;  %3995 = vmatprep.subr.bf16.mxu1 %v7010_v32  ;;  %v7014_v49 = vld [vmem:[%s9390_s13 + $0x40] ss:$28 sps:$4 sm:$0xff]  }
 0x4e7   : > { %v3097_v54 = vpack.c.bf16 %v3072_v29, %v3071_v5  ;;  %v2997_v47 = vadd.f32 %v8598_v9, %v2996_v39  ;;  %v3077_v59 = vmax.f32 %v3005_v12, 0.0  ;;  %3996 = vmatpush1.bf16.msra.mxu1 %v7008_v19  ;;  %v7013_v5 = vld [vmem:[%s9390_s13 + $0x4] ss:$28 sps:$4 sm:$0xff]   ;;  %v7019_v29 = vld [vmem:[%s9390_s13 + $0xc] ss:$28 sps:$4 sm:$0xff]  }
 0x4e8   : > { %v6775_v25 = vpop.f32.mrf.mxu0  ;;  %v7011_v50 = vld [vmem:[%s9390_s13] ss:$28 sps:$4 sm:$0xff]   ;;  %v7017_v39 = vld [vmem:[%s9390_s13 + $0x8] ss:$28 sps:$4 sm:$0xff]   ;;  %3806 = vmatprep.subr.bf16.mxu0 %v7013_v5  ;;  %v7047_v19 = vld [vmem:[%s9390_s13 + $0x14] ss:$28 sps:$4 sm:$0xff]  }
 0x4e9   : > { %v3008_v0 = vadd.f32 %v6775_v25, %v8598_v9  ;;  %6808 = vmatprep.mubr.msk.bf16.mxu1 %vm2299_vm2, %v3097_v54  ;;  %v3075_v33 = vmax.f32 %v2997_v47, 0.0  ;;  %3807 = vmatpush1.bf16.msra.mxu0 %v7011_v50  ;;  %v7509_v54 = vmov 0   ;;  %v7035_v25 = vld [vmem:[%s9390_s13 + $0x1a0] ss:$28 sps:$4 sm:$0xff]  }
 0x4ea   : > { %v2999_v43 = vpop.f32.mrf.mxu0  ;;  %6809 = vmatmul.mubr.msk.bf16.gmra.mxu1 %vm2299_vm2, %v3098_v40  ;;  %3824 = vmatprep.mubr.bf16.mxu0 %v7509_v54  ;;  %v7022_v40 = vld [vmem:[%s9390_s13 + $0x19c] ss:$28 sps:$4 sm:$0xff]   ;;  %v8710_v12 = vld [vmem:[%s9389_s12] ss:$0 sm:$0xff] }
 0x4eb   : > { %v3000_v24 = vadd.f32 %v8598_v9, %v2999_v43  ;;  %v3078_v4 = vmax.f32 %v3008_v0, 0.0  ;;  %4178 = vmatprep.subr.bf16.mxu0 %v7022_v40 }
 0x4ec   : > { %v6778_v53 = vpop.f32.mrf.mxu0 }
 0x4ed   : > { %v3076_v7 = vmax.f32 %v3000_v24, 0.0  ;;  %v3100_v48 = vpack.c.bf16 %v3078_v4, %v3077_v59  ;;  %v3021_v20 = vadd.f32 %v6778_v53, %v8598_v9 }
 0x4ee   : > { %v3012_v1 = vpop.f32.mrf.mxu0 }
 0x4ef   : > { %v3099_v10 = vpack.c.bf16 %v3076_v7, %v3075_v33  ;;  %v3013_v30 = vadd.f32 %v8598_v9, %v3012_v1  ;;  %v3081_v27 = vmax.f32 %v3021_v20, 0.0 }
 0x4f0   : > { %v6779_v62 = vpop.f32.mrf.mxu0 }
 0x4f1   : > { %v3024_v45 = vadd.f32 %v6779_v62, %v8598_v9  ;;  %6812 = vmatprep.mubr.msk.bf16.mxu1 %vm2299_vm2, %v3099_v10  ;;  %v3079_v18 = vmax.f32 %v3013_v30, 0.0  ;;  %v7020_v10 = vld [vmem:[%s9390_s13 + $0x198] ss:$28 sps:$4 sm:$0xff]   ;;  %v7025_v30 = vld [vmem:[%s9390_s13 + $0x164] ss:$28 sps:$4 sm:$0xff]  }
 0x4f2   : > { %v3015_v36 = vpop.f32.mrf.mxu0  ;;  %6813 = vmatmul.mubr.msk.bf16.gmra.mxu1 %vm2299_vm2, %v3100_v48 }
 0x4f3   : > { %v3016_v15 = vadd.f32 %v8598_v9, %v3015_v36  ;;  %v3082_v22 = vmax.f32 %v3024_v45, 0.0  ;;  %v7039_v36 = vld [vmem:[%s9390_s13 + $0x168] ss:$28 sps:$4 sm:$0xff]  }
 0x4f4   : > { %v6782_v61 = vpop.f32.mrf.mxu0 }
 0x4f5   : > { %v3080_v21 = vmax.f32 %v3016_v15, 0.0  ;;  %v3102_v37 = vpack.c.bf16 %v3082_v22, %v3081_v27  ;;  %v3037_v42 = vadd.f32 %v6782_v61, %v8598_v9  ;;  %v7023_v15 = vld [vmem:[%s9390_s13 + $0x160] ss:$28 sps:$4 sm:$0xff]   ;;  %v7028_v61 = vld [vmem:[%s9390_s13 + $0x12c] ss:$28 sps:$4 sm:$0xff]  }
 0x4f6   : > { %v3028_v34 = vpop.f32.mrf.mxu0 }
 0x4f7   : > { %v3101_v51 = vpack.c.bf16 %v3080_v21, %v3079_v18  ;;  %v3029_v28 = vadd.f32 %v8598_v9, %v3028_v34  ;;  %v3085_v52 = vmax.f32 %v3037_v42, 0.0  ;;  %v7044_v42 = vld [vmem:[%s9390_s13 + $0xf8] ss:$28 sps:$4 sm:$0xff]  }
 0x4f8   : > { %v6783_v56 = vpop.f32.mrf.mxu0 }
 0x4f9   : > { %v3040_v58 = vadd.f32 %v6783_v56, %v8598_v9  ;;  %6816 = vmatprep.mubr.msk.bf16.mxu1 %vm2299_vm2, %v3101_v51  ;;  %v3083_v31 = vmax.f32 %v3029_v28, 0.0  ;;  %v7026_v51 = vld [vmem:[%s9390_s13 + $0x128] ss:$28 sps:$4 sm:$0xff]   ;;  %v7031_v28 = vld [vmem:[%s9390_s13 + $0xf4] ss:$28 sps:$4 sm:$0xff]  }
 0x4fa   : > { %v3031_v6 = vpop.f32.mrf.mxu0  ;;  %6817 = vmatmul.mubr.msk.bf16.gmra.mxu1 %vm2299_vm2, %v3102_v37  ;;  %v7043_v37 = vld [vmem:[%s9390_s13 + $0x130] ss:$28 sps:$4 sm:$0xff]  }
 0x4fb   : > { %v3032_v14 = vadd.f32 %v8598_v9, %v3031_v6  ;;  %v3086_v2 = vmax.f32 %v3040_v58, 0.0 }
 0x4fd   : > { %v3084_v63 = vmax.f32 %v3032_v14, 0.0  ;;  %v3104_v55 = vpack.c.bf16 %v3086_v2, %v3085_v52  ;;  %v7029_v14 = vld [vmem:[%s9390_s13 + $0xf0] ss:$28 sps:$4 sm:$0xff]  }
 0x4ff   : > { %v3103_v3 = vpack.c.bf16 %v3084_v63, %v3083_v31  ;;  %v6786_v26 = vpop.f32.mrf.mxu0  ;;  %v7034_v31 = vld [vmem:[%s9390_s13 + $0xbc] ss:$28 sps:$4 sm:$0xff]  }
 0x500   : > { %v3053_v57 = vadd.f32 %v6786_v26, %v8598_v9  ;;  %v7032_v26 = vld [vmem:[%s9390_s13 + $0xb8] ss:$28 sps:$4 sm:$0xff]  }
 0x501   : > { %v3044_v35 = vpop.f32.mrf.mxu0  ;;  %6820 = vmatprep.mubr.msk.bf16.mxu1 %vm2299_vm2, %v3103_v3 }
 0x502   : > { %6821 = vmatmul.mubr.msk.bf16.gmra.mxu1 %vm2299_vm2, %v3104_v55  ;;  %v3045_v13 = vadd.f32 %v8598_v9, %v3044_v35  ;;  %v3089_v46 = vmax.f32 %v3053_v57, 0.0  ;;  %v7048_v55 = vld [vmem:[%s9390_s13 + $0xc0] ss:$28 sps:$4 sm:$0xff]  }
 0x503   : > { %v6787_v38 = vpop.f32.mrf.mxu0 }
 0x504   : > { %v3056_v8 = vadd.f32 %v6787_v38, %v8598_v9  ;;  %v3087_v11 = vmax.f32 %v3045_v13, 0.0  ;;  %v7038_v38 = vld [vmem:[%s9390_s13 + $0x84] ss:$28 sps:$4 sm:$0xff]  }
 0x505   : > { %v3047_v16 = vpop.f32.mrf.mxu0 }
 0x506   : > { %v3048_v60 = vadd.f32 %v8598_v9, %v3047_v16  ;;  %v3090_v44 = vmax.f32 %v3056_v8, 0.0  ;;  %v7016_v9 = vld [vmem:[%s9390_s13 + $0x44] ss:$28 sps:$4 sm:$0xff]  }
 0x507   : > { %3997 = vmatprep.subr.bf16.mxu1 %v7016_v9  ;;  %v7049_v8 = vld [vmem:[%s9390_s13 + $0x88] ss:$28 sps:$4 sm:$0xff]   ;;  %v7036_v16 = vld [vmem:[%s9390_s13 + $0x80] ss:$28 sps:$4 sm:$0xff]  }
 0x508   : > { %v3088_v23 = vmax.f32 %v3048_v60, 0.0  ;;  %v3106_v41 = vpack.c.bf16 %v3090_v44, %v3089_v46  ;;  %3998 = vmatpush1.bf16.msra.mxu1 %v7014_v49  ;;  %v7042_v44 = vld [vmem:[%s9390_s13 + $0x4c] ss:$28 sps:$4 sm:$0xff]   ;;  %v7051_v49 = vld [vmem:[%s9390_s13 + $0x18] ss:$28 sps:$4 sm:$0xff]  }
 0x509   : > { %3999 = vmatprep.subr.bf16.mxu1 %v7019_v29  ;;  %v7045_v29 = vld [vmem:[%s9390_s13 + $0x10] ss:$28 sps:$4 sm:$0xff]  }
 0x50a   : > { %v3105_v17 = vpack.c.bf16 %v3088_v23, %v3087_v11 }
 0x50c   : > { %6824 = vmatprep.mubr.msk.bf16.mxu1 %vm2299_vm2, %v3105_v17  ;;  %4000 = vmatpush1.bf16.msra.mxu1 %v7017_v39  ;;  %v7040_v17 = vld [vmem:[%s9390_s13 + $0x48] ss:$28 sps:$4 sm:$0xff]  }
 0x50d   : > { %6825 = vmatmul.mubr.msk.bf16.gmra.mxu1 %vm2299_vm2, %v3106_v41  ;;  %6828 = vmatprep.subr.bf16.mxu1 %v7035_v25  ;;  %v7050_v41 = vld [vmem:[%s9390_s13 + $0x50] ss:$28 sps:$4 sm:$0xff]  }
 0x50e   : > { %4017 = vmatprep.mubr.bf16.mxu1 %v7509_v54 }
 0x592   : > { %v6798_v47 = vpop.f32.mrf.mxu1 }
 0x593   : > { %v3237_v20 = vadd.f32 %v6798_v47, %v8710_v12 }
 0x594   : > { %v3228_v0 = vpop.f32.mrf.mxu1 }
 0x595   : > { %v3229_v24 = vadd.f32 %v8710_v12, %v3228_v0  ;;  %v3357_v21 = vmax.f32 %v3237_v20, 0.0 }
 0x596   : > { %v6799_v43 = vpop.f32.mrf.mxu1 }
 0x597   : > { %v3355_v7 = vmax.f32 %v3229_v24, 0.0  ;;  %v3240_v48 = vadd.f32 %v6799_v43, %v8710_v12 }
 0x598   : > { %v3231_v4 = vpop.f32.mrf.mxu1 }
 0x599   : > { %v3232_v53 = vadd.f32 %v8710_v12, %v3231_v4  ;;  %v3358_v22 = vmax.f32 %v3240_v48, 0.0 }
 0x59a   : > { %v6802_v33 = vpop.f32.mrf.mxu1 }
 0x59b   : > { %v3356_v59 = vmax.f32 %v3232_v53, 0.0  ;;  %v8737_v27 = vpack.c.bf16 %v3358_v22, %v3357_v21  ;;  %v3253_v13 = vadd.f32 %v6802_v33, %v8710_v12 }
 0x59c   : > { %v3244_v1 = vpop.f32.mrf.mxu1 }
 0x59d   : > { %v8718_v62 = vpack.c.bf16 %v3356_v59, %v3355_v7  ;;  %v3245_v58 = vadd.f32 %v8710_v12, %v3244_v1  ;;  %v3361_v11 = vmax.f32 %v3253_v13, 0.0 }
 0x59e   : > { %v6803_v45 = vpop.f32.mrf.mxu1 }
 0x59f   : > { %3825 = vmatmul.mubr.bf16.vlgmr.msra.gmra.mxu0 %v8718_v62  ;;  %4018 = vmatmul.mubr.bf16.vlgmr.msra.gmra.mxu1 %v8718_v62  ;;  %v3359_v63 = vmax.f32 %v3245_v58, 0.0  ;;  %v3256_v52 = vadd.f32 %v6803_v45, %v8710_v12 }
 0x5a0   : > { %4179 = vmatpush1.bf16.msra.mxu0 %v7020_v10  ;;  %3834 = vmatprep.mubr.bf16.mxu0 %v7509_v54  ;;  %v3247_v18 = vpop.f32.mrf.mxu1 }
 0x5a1   : > { %4027 = vmatprep.mubr.bf16.mxu1 %v7509_v54  ;;  %4180 = vmatprep.subr.bf16.mxu0 %v7025_v30  ;;  %v3248_v34 = vadd.f32 %v8710_v12, %v3247_v18  ;;  %v3362_v57 = vmax.f32 %v3256_v52, 0.0 }
 0x5a2   : > { %6829 = vmatpush3.bf16.msra.mxu1 %v7035_v25  ;;  %v8746_v56 = vpop.f32.mrf.mxu1 }
 0x5a3   : > { %6830 = vmatprep.subr.bf16.mxu1 %v7039_v36  ;;  %v3360_v6 = vmax.f32 %v3248_v34, 0.0  ;;  %v8791_v23 = vpack.c.bf16 %v3362_v57, %v3361_v11  ;;  %v3269_v0 = vadd.f32 %v8746_v56, %v8710_v12 }
 0x5a4   : > { %4181 = vmatpush1.bf16.msra.mxu0 %v7023_v15  ;;  %v3260_v2 = vpop.f32.mrf.mxu1 }
 0x5a5   : > { %4182 = vmatprep.subr.bf16.mxu0 %v7028_v61  ;;  %v8766_v3 = vpack.c.bf16 %v3360_v6, %v3359_v63  ;;  %v3261_v9 = vadd.f32 %v8710_v12, %v3260_v2  ;;  %v3365_v4 = vmax.f32 %v3269_v0, 0.0 }
 0x5a6   : > { %6831 = vmatpush3.bf16.msra.mxu1 %v7039_v36  ;;  %v6807_v35 = vpop.f32.mrf.mxu1 }
 0x5a7   : > { %3835 = vmatmul.mubr.bf16.gmra.mxu0 %v8737_v27  ;;  %4028 = vmatmul.mubr.bf16.gmra.mxu1 %v8737_v27  ;;  %v3363_v39 = vmax.f32 %v3261_v9, 0.0  ;;  %v3272_v40 = vadd.f32 %v6807_v35, %v8710_v12 }
 0x5a8   : > { %3844 = vmatprep.mubr.bf16.mxu0 %v7509_v54  ;;  %4037 = vmatprep.mubr.bf16.mxu1 %v7509_v54  ;;  %v3263_v60 = vpop.f32.mrf.mxu1 }
 0x5a9   : > { %4183 = vmatpush1.bf16.msra.mxu0 %v7026_v51  ;;  %6832 = vmatprep.subr.bf16.mxu1 %v7043_v37  ;;  %v3264_v46 = vadd.f32 %v8710_v12, %v3263_v60  ;;  %v3366_v43 = vmax.f32 %v3272_v40, 0.0 }
 0x5aa   : > { %4184 = vmatprep.subr.bf16.mxu0 %v7031_v28  ;;  %6833 = vmatpush3.bf16.msra.mxu1 %v7043_v37  ;;  %v6810_v32 = vpop.f32.mrf.mxu1 }
 0x5ab   : > { %6834 = vmatprep.subr.bf16.mxu1 %v7044_v42  ;;  %v3364_v5 = vmax.f32 %v3264_v46, 0.0  ;;  %v8823_v53 = vpack.c.bf16 %v3366_v43, %v3365_v4  ;;  %v3285_v36 = vadd.f32 %v6810_v32, %v8710_v12 }
 0x5ac   : > { %v3276_v50 = vpop.f32.mrf.mxu1 }
 0x5ad   : > { %4185 = vmatpush1.bf16.msra.mxu0 %v7029_v14  ;;  %v8815_v25 = vpack.c.bf16 %v3364_v5, %v3363_v39  ;;  %v3277_v59 = vadd.f32 %v8710_v12, %v3276_v50  ;;  %v3369_v61 = vmax.f32 %v3285_v36, 0.0 }
 0x5ae   : > { %4186 = vmatprep.subr.bf16.mxu0 %v7034_v31  ;;  %6835 = vmatpush3.bf16.msra.mxu1 %v7044_v42  ;;  %v6811_v47 = vpop.f32.mrf.mxu1 }
 0x5af   : > { %3845 = vmatmul.mubr.bf16.gmra.mxu0 %v8766_v3  ;;  %4038 = vmatmul.mubr.bf16.gmra.mxu1 %v8766_v3  ;;  %v3367_v48 = vmax.f32 %v3277_v59, 0.0  ;;  %v3288_v30 = vadd.f32 %v6811_v47, %v8710_v12 }
 0x5b0   : > { %3854 = vmatprep.mubr.bf16.mxu0 %v7509_v54  ;;  %4047 = vmatprep.mubr.bf16.mxu1 %v7509_v54  ;;  %v3279_v24 = vpop.f32.mrf.mxu1 }
 0x5b1   : > { %4187 = vmatpush1.bf16.msra.mxu0 %v7032_v26  ;;  %6836 = vmatprep.subr.bf16.mxu1 %v7048_v55  ;;  %v3280_v33 = vadd.f32 %v8710_v12, %v3279_v24  ;;  %v3370_v15 = vmax.f32 %v3288_v30, 0.0 }
 0x5b2   : > { %4188 = vmatprep.subr.bf16.mxu0 %v7038_v38  ;;  %6837 = vmatpush3.bf16.msra.mxu1 %v7048_v55  ;;  %v6814_v7 = vpop.f32.mrf.mxu1 }
 0x5b3   : > { %6838 = vmatprep.subr.bf16.mxu1 %v7049_v8  ;;  %v3368_v1 = vmax.f32 %v3280_v33, 0.0  ;;  %v8839_v18 = vpack.c.bf16 %v3370_v15, %v3369_v61  ;;  %v3301_v14 = vadd.f32 %v6814_v7, %v8710_v12 }
 0x5b4   : > { %v3292_v10 = vpop.f32.mrf.mxu1 }
 0x5b5   : > { %4189 = vmatpush1.bf16.msra.mxu0 %v7036_v16  ;;  %v8832_v45 = vpack.c.bf16 %v3368_v1, %v3367_v48  ;;  %v3293_v51 = vadd.f32 %v8710_v12, %v3292_v10  ;;  %v3373_v63 = vmax.f32 %v3301_v14, 0.0 }
 0x5b6   : > { %4190 = vmatprep.subr.bf16.mxu0 %v7042_v44  ;;  %6839 = vmatpush3.bf16.msra.mxu1 %v7049_v8  ;;  %v6815_v20 = vpop.f32.mrf.mxu1 }
 0x5b7   : > { %3855 = vmatmul.mubr.bf16.gmra.mxu0 %v8791_v23  ;;  %4048 = vmatmul.mubr.bf16.gmra.mxu1 %v8791_v23  ;;  %v3371_v28 = vmax.f32 %v3293_v51, 0.0  ;;  %v3304_v58 = vadd.f32 %v6815_v20, %v8710_v12 }
 0x5b8   : > { %3864 = vmatprep.mubr.bf16.mxu0 %v7509_v54  ;;  %4057 = vmatprep.mubr.bf16.mxu1 %v7509_v54  ;;  %v3295_v22 = vpop.f32.mrf.mxu1 }
 0x5b9   : > { %4191 = vmatpush1.bf16.msra.mxu0 %v7040_v17  ;;  %6840 = vmatprep.subr.bf16.mxu1 %v7050_v41  ;;  %v3296_v21 = vadd.f32 %v8710_v12, %v3295_v22  ;;  %v3374_v2 = vmax.f32 %v3304_v58, 0.0 }
 0x5ba   : > { %4192 = vmatprep.subr.bf16.mxu0 %v7047_v19  ;;  %6841 = vmatpush3.bf16.msra.mxu1 %v7050_v41  ;;  %v6818_v34 = vpop.f32.mrf.mxu1 }
 0x5bb   : > { %6842 = vmatprep.subr.bf16.mxu1 %v7051_v49  ;;  %v3372_v37 = vmax.f32 %v3296_v21, 0.0  ;;  %v8855_v52 = vpack.c.bf16 %v3374_v2, %v3373_v63  ;;  %v3317_v44 = vadd.f32 %v6818_v34, %v8710_v12 }
 0x5bc   : > { %v3308_v56 = vpop.f32.mrf.mxu1 }
 0x5bd   : > { %4193 = vmatpush1.bf16.msra.mxu0 %v7045_v29  ;;  %v8848_v42 = vpack.c.bf16 %v3372_v37, %v3371_v28  ;;  %v3309_v35 = vadd.f32 %v8710_v12, %v3308_v56  ;;  %v3377_v17 = vmax.f32 %v3317_v44, 0.0 }
 0x5be   : > { %6843 = vmatpush3.bf16.msra.mxu1 %v7051_v49  ;;  %v6819_v6 = vpop.f32.mrf.mxu1 }
 0x5bf   : > { %3865 = vmatmul.mubr.bf16.gmra.mxu0 %v8815_v25  ;;  %4058 = vmatmul.mubr.bf16.gmra.mxu1 %v8815_v25  ;;  %v3375_v8 = vmax.f32 %v3309_v35, 0.0  ;;  %v3320_v57 = vadd.f32 %v6819_v6, %v8710_v12 }
 0x5c0   : > { %3874 = vmatprep.mubr.bf16.mxu0 %v7509_v54  ;;  %4067 = vmatprep.mubr.bf16.mxu1 %v7509_v54  ;;  %v3311_v31 = vpop.f32.mrf.mxu1 }
 0x5c1   : > { %v3312_v26 = vadd.f32 %v8710_v12, %v3311_v31  ;;  %v3378_v11 = vmax.f32 %v3320_v57, 0.0 }
 0x5c2   : > { %v6822_v55 = vpop.f32.mrf.mxu1 }
 0x5c3   : > { %v3376_v38 = vmax.f32 %v3312_v26, 0.0  ;;  %v8871_v41 = vpack.c.bf16 %v3378_v11, %v3377_v17  ;;  %v3333_v47 = vadd.f32 %v6822_v55, %v8710_v12 }
 0x5c4   : > { %v3324_v13 = vpop.f32.mrf.mxu1 }
 0x5c5   : > { %v8864_v16 = vpack.c.bf16 %v3376_v38, %v3375_v8  ;;  %v3325_v9 = vadd.f32 %v8710_v12, %v3324_v13  ;;  %v3381_v24 = vmax.f32 %v3333_v47, 0.0 }
 0x5c6   : > { %v6823_v60 = vpop.f32.mrf.mxu1 }
 0x5c7   : > { %3875 = vmatmul.mubr.bf16.gmra.mxu0 %v8823_v53  ;;  %4068 = vmatmul.mubr.bf16.gmra.mxu1 %v8823_v53  ;;  %v3379_v29 = vmax.f32 %v3325_v9, 0.0  ;;  %v3336_v50 = vadd.f32 %v6823_v60, %v8710_v12 }
 0x5c8   : > { %3884 = vmatprep.mubr.bf16.mxu0 %v7509_v54  ;;  %4077 = vmatprep.mubr.bf16.mxu1 %v7509_v54  ;;  %v3327_v46 = vpop.f32.mrf.mxu1 }
 0x5c9   : > { %v3328_v32 = vadd.f32 %v8710_v12, %v3327_v46  ;;  %v3382_v0 = vmax.f32 %v3336_v50, 0.0 }
 0x5cb   : > { %v3380_v49 = vmax.f32 %v3328_v32, 0.0  ;;  %v8887_v4 = vpack.c.bf16 %v3382_v0, %v3381_v24 }
 0x5cd   : > { %v6826_v19 = vpop.f32.mrf.mxu1  ;;  %v8880_v39 = vpack.c.bf16 %v3380_v49, %v3379_v29 }
 0x5ce   : > { %v3349_v30 = vadd.f32 %v6826_v19, %v8710_v12 }
 0x5cf   : > { %3885 = vmatmul.mubr.bf16.gmra.mxu0 %v8832_v45  ;;  %4078 = vmatmul.mubr.bf16.gmra.mxu1 %v8832_v45  ;;  %v3340_v5 = vpop.f32.mrf.mxu1 }
 0x5d0   : > { %3894 = vmatprep.mubr.bf16.mxu0 %v7509_v54  ;;  %4087 = vmatprep.mubr.bf16.mxu1 %v7509_v54  ;;  %v3341_v7 = vadd.f32 %v8710_v12, %v3340_v5  ;;  %v3385_v36 = vmax.f32 %v3349_v30, 0.0 }
 0x5d1   : > { %v6827_v40 = vpop.f32.mrf.mxu1 }
 0x5d2   : > { %v3383_v1 = vmax.f32 %v3341_v7, 0.0  ;;  %v3352_v10 = vadd.f32 %v6827_v40, %v8710_v12 }
 0x5d3   : > { %v3343_v43 = vpop.f32.mrf.mxu1 }
 0x5d4   : > { %v3344_v33 = vadd.f32 %v8710_v12, %v3343_v43  ;;  %v3386_v20 = vmax.f32 %v3352_v10, 0.0  ;;  %v3469_v12 = vlaneseq }
 0x5d6   : > { %v3384_v59 = vmax.f32 %v3344_v33, 0.0  ;;  %v8903_v15 = vpack.c.bf16 %v3386_v20, %v3385_v36 }
 0x5d7   : > { %3895 = vmatmul.mubr.bf16.gmra.mxu0 %v8839_v18  ;;  %4088 = vmatmul.mubr.bf16.gmra.mxu1 %v8839_v18 }
 0x5d8   : > { %3904 = vmatprep.mubr.bf16.mxu0 %v7509_v54  ;;  %4097 = vmatprep.mubr.bf16.mxu1 %v7509_v54  ;;  %v8896_v48 = vpack.c.bf16 %v3384_v59, %v3383_v1 }
 0x5df   : > { %3905 = vmatmul.mubr.bf16.gmra.mxu0 %v8848_v42  ;;  %4098 = vmatmul.mubr.bf16.gmra.mxu1 %v8848_v42 }
 0x5e0   : > { %3914 = vmatprep.mubr.bf16.mxu0 %v7509_v54  ;;  %4107 = vmatprep.mubr.bf16.mxu1 %v7509_v54 }
 0x5e7   : > { %3915 = vmatmul.mubr.bf16.gmra.mxu0 %v8855_v52  ;;  %4108 = vmatmul.mubr.bf16.gmra.mxu1 %v8855_v52 }
 0x5e8   : > { %3924 = vmatprep.mubr.bf16.mxu0 %v7509_v54  ;;  %4117 = vmatprep.mubr.bf16.mxu1 %v7509_v54 }
 0x5ef   : > { %3925 = vmatmul.mubr.bf16.gmra.mxu0 %v8864_v16  ;;  %4118 = vmatmul.mubr.bf16.gmra.mxu1 %v8864_v16 }
 0x5f0   : > { %3934 = vmatprep.mubr.bf16.mxu0 %v7509_v54  ;;  %4127 = vmatprep.mubr.bf16.mxu1 %v7509_v54 }
 0x5f7   : > { %3935 = vmatmul.mubr.bf16.gmra.mxu0 %v8871_v41  ;;  %4128 = vmatmul.mubr.bf16.gmra.mxu1 %v8871_v41 }
 0x5f8   : > { %3944 = vmatprep.mubr.bf16.mxu0 %v7509_v54  ;;  %4137 = vmatprep.mubr.bf16.mxu1 %v7509_v54 }
 0x5ff   : > { %3945 = vmatmul.mubr.bf16.gmra.mxu0 %v8880_v39  ;;  %4138 = vmatmul.mubr.bf16.gmra.mxu1 %v8880_v39 }
 0x600   : > { %3954 = vmatprep.mubr.bf16.mxu0 %v7509_v54  ;;  %4147 = vmatprep.mubr.bf16.mxu1 %v7509_v54 }
 0x607   : > { %3955 = vmatmul.mubr.bf16.gmra.mxu0 %v8887_v4  ;;  %4148 = vmatmul.mubr.bf16.gmra.mxu1 %v8887_v4 }
 0x608   : > { %3964 = vmatprep.mubr.bf16.mxu0 %v7509_v54  ;;  %4157 = vmatprep.mubr.bf16.mxu1 %v7509_v54 }
 0x60f   : > { %3965 = vmatmul.mubr.bf16.gmra.mxu0 %v8896_v48  ;;  %4158 = vmatmul.mubr.bf16.gmra.mxu1 %v8896_v48 }
 0x610   : > { %3974 = vmatprep.mubr.bf16.mxu0 %v7509_v54  ;;  %4167 = vmatprep.mubr.bf16.mxu1 %v7509_v54 }
 0x617   : > { %3975 = vmatmul.mubr.bf16.gmra.mxu0 %v8903_v15  ;;  %4168 = vmatmul.mubr.bf16.gmra.mxu1 %v8903_v15 }
 0x618   : > { %6844 = vmatprep.mubr.bf16.mxu1 %v8718_v62  ;;  %4210 = vmatprep.mubr.bf16.mxu0 %v7509_v54 }
 0x61f   : > { %4211 = vmatmul.mubr.bf16.vlgmr.msra.gmra.mxu0 %v8718_v62  ;;  %6845 = vmatmul.mubr.bf16.vlgmr.msra.gmra.mxu1 %v8737_v27  ;;  %v8937_v62 = vshrl.u32 %v3469_v12, 7 }
 0x620   : > { %6848 = vmatprep.mubr.bf16.mxu1 %v8766_v3  ;;  %4220 = vmatprep.mubr.bf16.mxu0 %v7509_v54 }
 0x627   : > { %4221 = vmatmul.mubr.bf16.gmra.mxu0 %v8737_v27  ;;  %6849 = vmatmul.mubr.bf16.gmra.mxu1 %v8791_v23  ;;  %v3471_v27 = vsub.s32 0, %v8937_v62 }
 0x628   : > { %6852 = vmatprep.mubr.bf16.mxu1 %v8815_v25  ;;  %4230 = vmatprep.mubr.bf16.mxu0 %v7509_v54 }
 0x62f   : > { %4231 = vmatmul.mubr.bf16.gmra.mxu0 %v8766_v3  ;;  %6853 = vmatmul.mubr.bf16.gmra.mxu1 %v8823_v53  ;;  %v3479_v3 = vsub.s32 2, %v8937_v62 }
 0x630   : > { %6856 = vmatprep.mubr.bf16.mxu1 %v8832_v45  ;;  %4240 = vmatprep.mubr.bf16.mxu0 %v7509_v54 }
 0x637   : > { %4241 = vmatmul.mubr.bf16.gmra.mxu0 %v8791_v23  ;;  %6857 = vmatmul.mubr.bf16.gmra.mxu1 %v8839_v18  ;;  %v3467_v23 = vld [vmem:[%s9391_s14] sm:$0x7f] }
 0x638   : > { %6860 = vmatprep.mubr.bf16.mxu1 %v8848_v42  ;;  %4250 = vmatprep.mubr.bf16.mxu0 %v7509_v54  ;;  %v8951_v22 = vrot.slane %v3467_v23, %v3479_v3 }
 0x63f   : > { %4251 = vmatmul.mubr.bf16.gmra.mxu0 %v8815_v25  ;;  %6861 = vmatmul.mubr.bf16.gmra.mxu1 %v8855_v52  ;;  %v3475_v25 = vsub.s32 1, %v8937_v62 }
 0x640   : > { %6864 = vmatprep.mubr.bf16.mxu1 %v8864_v16  ;;  %4260 = vmatprep.mubr.bf16.mxu0 %v7509_v54 }
 0x641   : > { %v8953_v61 = vrot.slane %v3467_v23, %v3475_v25 }
 0x647   : > { %4261 = vmatmul.mubr.bf16.gmra.mxu0 %v8823_v53  ;;  %6865 = vmatmul.mubr.bf16.gmra.mxu1 %v8871_v41  ;;  %v3483_v53 = vsub.s32 3, %v8937_v62 }
 0x648   : > { %6868 = vmatprep.mubr.bf16.mxu1 %v8880_v39  ;;  %4270 = vmatprep.mubr.bf16.mxu0 %v7509_v54 }
 0x64f   : > { %4271 = vmatmul.mubr.bf16.gmra.mxu0 %v8832_v45  ;;  %6869 = vmatmul.mubr.bf16.gmra.mxu1 %v8887_v4  ;;  %v8949_v45 = vrot.slane %v3467_v23, %v3471_v27 }
 0x650   : > { %6872 = vmatprep.mubr.bf16.mxu1 %v8896_v48  ;;  %4280 = vmatprep.mubr.bf16.mxu0 %v7509_v54 }
 0x657   : > { %4281 = vmatmul.mubr.bf16.gmra.mxu0 %v8839_v18  ;;  %6873 = vmatmul.mubr.bf16.gmra.mxu1 %v8903_v15  ;;  %v8955_v18 = vrot.slane %v3467_v23, %v3483_v53 }
 0x658   : > { %4290 = vmatprep.mubr.bf16.mxu0 %v7509_v54 }
 0x65f   : > { %v3826_v21 = vpop.f32.mrf.mxu0  ;;  %v4019_v34 = vpop.f32.mrf.mxu1  ;;  %4291 = vmatmul.mubr.bf16.gmra.mxu0 %v8848_v42 }
 0x660   : > { %v3827_v51 = vadd.f32 %v3826_v21, %v8949_v45  ;;  %v4020_v37 = vadd.f32 %v4019_v34, %v8951_v22  ;;  %4300 = vmatprep.mubr.bf16.mxu0 %v7509_v54 }
 0x661   : > { %v3828_v56 = vpop.f32.mrf.mxu0  ;;  %v4021_v28 = vpop.f32.mrf.mxu1 }
 0x662   : > { %7052 = vtanh.f32 %v3827_v51  ;;  %v3829_v58 = vadd.f32 %v3828_v56, %v8953_v61  ;;  %v4022_v6 = vadd.f32 %v4021_v28, %v8955_v18 }
 0x663   : > { %7054 = vtanh.f32 %v4020_v37  ;;  %v3830_v14 = vpop.f32.mrf.mxu0  ;;  %v4023_v2 = vpop.f32.mrf.mxu1 }
 0x664   : > { %7056 = vtanh.f32 %v3829_v58  ;;  %v3831_v31 = vadd.f32 %v3830_v14, %v8949_v45  ;;  %v4024_v42 = vadd.f32 %v4023_v2, %v8951_v22 }
 0x665   : > { %7058 = vtanh.f32 %v4022_v6  ;;  %v3832_v63 = vpop.f32.mrf.mxu0  ;;  %v4025_v26 = vpop.f32.mrf.mxu1 }
 0x666   : > { %7060 = vtanh.f32 %v3831_v31  ;;  %v3833_v55 = vadd.f32 %v3832_v63, %v8953_v61  ;;  %v4026_v35 = vadd.f32 %v4025_v26, %v8955_v18 }
 0x667   : > { %7062 = vtanh.f32 %v4024_v42  ;;  %v3836_v38 = vpop.f32.mrf.mxu0  ;;  %v4029_v13 = vpop.f32.mrf.mxu1  ;;  %4301 = vmatmul.mubr.bf16.gmra.mxu0 %v8855_v52 }
 0x668   : > { %7064 = vtanh.f32 %v3833_v55  ;;  %v3837_v8 = vadd.f32 %v3836_v38, %v8949_v45  ;;  %v4030_v57 = vadd.f32 %v4029_v13, %v8951_v22  ;;  %4310 = vmatprep.mubr.bf16.mxu0 %v7509_v54 }
 0x669   : > { %7066 = vtanh.f32 %v4026_v35  ;;  %v3838_v60 = vpop.f32.mrf.mxu0  ;;  %v4031_v44 = vpop.f32.mrf.mxu1 }
 0x66a   : > { %7068 = vtanh.f32 %v3837_v8  ;;  %v3839_v11 = vadd.f32 %v3838_v60, %v8953_v61  ;;  %v4032_v46 = vadd.f32 %v4031_v44, %v8955_v18 }
 0x66b   : > { %7070 = vtanh.f32 %v4030_v57  ;;  %v3840_v17 = vpop.f32.mrf.mxu0  ;;  %v4033_v32 = vpop.f32.mrf.mxu1 }
 0x66c   : > { %7072 = vtanh.f32 %v3839_v11  ;;  %v3841_v52 = vadd.f32 %v3840_v17, %v8949_v45  ;;  %v4034_v19 = vadd.f32 %v4033_v32, %v8951_v22 }
 0x66d   : > { %7074 = vtanh.f32 %v4032_v46  ;;  %v3842_v9 = vpop.f32.mrf.mxu0  ;;  %v4035_v49 = vpop.f32.mrf.mxu1 }
 0x66e   : > { %7076 = vtanh.f32 %v3841_v52  ;;  %v3843_v5 = vadd.f32 %v3842_v9, %v8953_v61  ;;  %v4036_v29 = vadd.f32 %v4035_v49, %v8955_v18 }
 0x66f   : > { %v7053_v50 = vpop.eup %7052  ;;  %7078 = vtanh.f32 %v4034_v19  ;;  %v3846_v40 = vpop.f32.mrf.mxu0  ;;  %4311 = vmatmul.mubr.bf16.gmra.mxu0 %v8864_v16 }
 0x670   : > { %v4039_v47 = vpop.f32.mrf.mxu1  ;;  %v7055_v0 = vpop.eup %7054  ;;  %7080 = vtanh.f32 %v3843_v5  ;;  %v3847_v43 = vadd.f32 %v3846_v40, %v8949_v45  ;;  %4320 = vmatprep.mubr.bf16.mxu0 %v7509_v54 }
 0x671   : > { %v4040_v24 = vadd.f32 %v4039_v47, %v8951_v22  ;;  %v7057_v33 = vpop.eup %7056  ;;  %7082 = vtanh.f32 %v4036_v29  ;;  %v3848_v7 = vpop.f32.mrf.mxu0 }
 0x672   : > { %v4041_v59 = vpop.f32.mrf.mxu1  ;;  %v7059_v1 = vpop.eup %7058  ;;  %v5995_v16 = vpack.c.bf16 %v7057_v33, %v7053_v50  ;;  %7084 = vtanh.f32 %v3847_v43  ;;  %v3849_v10 = vadd.f32 %v3848_v7, %v8953_v61 }
 0x673   : > { %v4042_v30 = vadd.f32 %v4041_v59, %v8955_v18  ;;  %v7061_v20 = vpop.eup %7060  ;;  %v5996_v36 = vpack.c.bf16 %v7059_v1, %v7055_v0  ;;  %7086 = vtanh.f32 %v4040_v24  ;;  %v3850_v12 = vpop.f32.mrf.mxu0 }
 0x674   : > { %v4043_v27 = vpop.f32.mrf.mxu1  ;;  %v7063_v3 = vpop.eup %7062  ;;  %5460 = vst [vmem:[%s8985_s20] sm:$0xff] %v5995_v16  ;;  %7088 = vtanh.f32 %v3849_v10  ;;  %v3851_v23 = vadd.f32 %v3850_v12, %v8949_v45 }
 0x675   : > { %v4044_v25 = vadd.f32 %v4043_v27, %v8951_v22  ;;  %v7065_v53 = vpop.eup %7064  ;;  %5461 = vst [vmem:[%s8985_s20 + $0x8] sm:$0xff] %v5996_v36  ;;  %7090 = vtanh.f32 %v4042_v30  ;;  %v3852_v21 = vpop.f32.mrf.mxu0 }
 0x676   : > { %v4045_v34 = vpop.f32.mrf.mxu1  ;;  %v7067_v51 = vpop.eup %7066  ;;  %v5999_v37 = vpack.c.bf16 %v7065_v53, %v7061_v20  ;;  %7092 = vtanh.f32 %v3851_v23  ;;  %v3853_v56 = vadd.f32 %v3852_v21, %v8953_v61 }
 0x677   : > { %v4046_v28 = vadd.f32 %v4045_v34, %v8955_v18  ;;  %v7069_v58 = vpop.eup %7068  ;;  %v6000_v6 = vpack.c.bf16 %v7067_v51, %v7063_v3  ;;  %7094 = vtanh.f32 %v4044_v25  ;;  %v3856_v14 = vpop.f32.mrf.mxu0  ;;  %4321 = vmatmul.mubr.bf16.gmra.mxu0 %v8871_v41 }
 0x678   : > { %v4049_v2 = vpop.f32.mrf.mxu1  ;;  %v7071_v31 = vpop.eup %7070  ;;  %5465 = vst [vmem:[%s8985_s20 + $0x1c] sm:$0xff] %v5999_v37  ;;  %7096 = vtanh.f32 %v3853_v56  ;;  %v3857_v42 = vadd.f32 %v3856_v14, %v8949_v45  ;;  %4330 = vmatprep.mubr.bf16.mxu0 %v7509_v54 }
 0x679   : > { %v4050_v63 = vadd.f32 %v4049_v2, %v8951_v22  ;;  %v7073_v26 = vpop.eup %7072  ;;  %5466 = vst [vmem:[%s8985_s20 + $0x24] sm:$0xff] %v6000_v6  ;;  %7098 = vtanh.f32 %v4046_v28  ;;  %v3858_v55 = vpop.f32.mrf.mxu0 }
 0x67a   : > { %v4051_v35 = vpop.f32.mrf.mxu1  ;;  %v7075_v38 = vpop.eup %7074  ;;  %v6003_v13 = vpack.c.bf16 %v7073_v26, %v7069_v58  ;;  %7100 = vtanh.f32 %v3857_v42  ;;  %v3859_v41 = vadd.f32 %v3858_v55, %v8953_v61 }
 0x67b   : > { %v4052_v8 = vadd.f32 %v4051_v35, %v8955_v18  ;;  %v7077_v57 = vpop.eup %7076  ;;  %v6004_v60 = vpack.c.bf16 %v7075_v38, %v7071_v31  ;;  %7102 = vtanh.f32 %v4050_v63  ;;  %v3860_v44 = vpop.f32.mrf.mxu0 }
 0x67c   : > { %v4053_v11 = vpop.f32.mrf.mxu1  ;;  %v7079_v46 = vpop.eup %7078  ;;  %5469 = vst [vmem:[%s8985_s20 + $0x38] sm:$0xff] %v6003_v13  ;;  %7104 = vtanh.f32 %v3859_v41  ;;  %v3861_v17 = vadd.f32 %v3860_v44, %v8949_v45 }
 0x67d   : > { %v4054_v32 = vadd.f32 %v4053_v11, %v8951_v22  ;;  %v7081_v52 = vpop.eup %7080  ;;  %5470 = vst [vmem:[%s8985_s20 + $0x40] sm:$0xff] %v6004_v60  ;;  %7106 = vtanh.f32 %v4052_v8  ;;  %v3862_v19 = vpop.f32.mrf.mxu0 }
 0x67e   : > { %v4055_v9 = vpop.f32.mrf.mxu1  ;;  %v7083_v49 = vpop.eup %7082  ;;  %v6007_v5 = vpack.c.bf16 %v7081_v52, %v7077_v57  ;;  %7108 = vtanh.f32 %v3861_v17  ;;  %v3863_v29 = vadd.f32 %v3862_v19, %v8953_v61 }
 0x67f   : > { %v4056_v50 = vadd.f32 %v4055_v9, %v8955_v18  ;;  %v7085_v40 = vpop.eup %7084  ;;  %v6008_v47 = vpack.c.bf16 %v7083_v49, %v7079_v46  ;;  %7110 = vtanh.f32 %v4054_v32  ;;  %v3866_v0 = vpop.f32.mrf.mxu0  ;;  %4331 = vmatmul.mubr.bf16.gmra.mxu0 %v8880_v39 }
 0x680   : > { %v4059_v43 = vpop.f32.mrf.mxu1  ;;  %v7087_v24 = vpop.eup %7086  ;;  %5473 = vst [vmem:[%s8985_s20 + $0x54] sm:$0xff] %v6007_v5  ;;  %7112 = vtanh.f32 %v3863_v29  ;;  %v3867_v33 = vadd.f32 %v3866_v0, %v8949_v45  ;;  %4340 = vmatprep.mubr.bf16.mxu0 %v7509_v54 }
 0x681   : > { %v4060_v7 = vadd.f32 %v4059_v43, %v8951_v22  ;;  %v7089_v59 = vpop.eup %7088  ;;  %5474 = vst [vmem:[%s8985_s20 + $0x5c] sm:$0xff] %v6008_v47  ;;  %7114 = vtanh.f32 %v4056_v50  ;;  %v3868_v1 = vpop.f32.mrf.mxu0 }
 0x682   : > { %v4061_v16 = vpop.f32.mrf.mxu1  ;;  %v7091_v10 = vpop.eup %7090  ;;  %v6011_v30 = vpack.c.bf16 %v7089_v59, %v7085_v40  ;;  %7116 = vtanh.f32 %v3867_v33  ;;  %v3869_v39 = vadd.f32 %v3868_v1, %v8953_v61 }
 0x683   : > { %v4062_v20 = vadd.f32 %v4061_v16, %v8955_v18  ;;  %v7093_v36 = vpop.eup %7092  ;;  %v6012_v12 = vpack.c.bf16 %v7091_v10, %v7087_v24  ;;  %7118 = vtanh.f32 %v4060_v7  ;;  %v3870_v27 = vpop.f32.mrf.mxu0 }
 0x684   : > { %v4063_v3 = vpop.f32.mrf.mxu1  ;;  %v7095_v23 = vpop.eup %7094  ;;  %5477 = vst [vmem:[%s8985_s20 + $0x70] sm:$0xff] %v6011_v30  ;;  %7120 = vtanh.f32 %v3869_v39  ;;  %v3871_v25 = vadd.f32 %v3870_v27, %v8949_v45 }
 0x685   : > { %v4064_v53 = vadd.f32 %v4063_v3, %v8951_v22  ;;  %v7097_v21 = vpop.eup %7096  ;;  %5478 = vst [vmem:[%s8985_s20 + $0x78] sm:$0xff] %v6012_v12  ;;  %7122 = vtanh.f32 %v4062_v20  ;;  %v3872_v34 = vpop.f32.mrf.mxu0 }
 0x686   : > { %v4065_v51 = vpop.f32.mrf.mxu1  ;;  %v7099_v37 = vpop.eup %7098  ;;  %v6015_v56 = vpack.c.bf16 %v7097_v21, %v7093_v36  ;;  %7124 = vtanh.f32 %v3871_v25  ;;  %v3873_v28 = vadd.f32 %v3872_v34, %v8953_v61 }
 0x687   : > { %v4066_v58 = vadd.f32 %v4065_v51, %v8955_v18  ;;  %v7101_v6 = vpop.eup %7100  ;;  %v6016_v14 = vpack.c.bf16 %v7099_v37, %v7095_v23  ;;  %7126 = vtanh.f32 %v4064_v53  ;;  %v3876_v2 = vpop.f32.mrf.mxu0  ;;  %4341 = vmatmul.mubr.bf16.gmra.mxu0 %v8887_v4 }
 0x688   : > { %v4069_v31 = vpop.f32.mrf.mxu1  ;;  %v7103_v42 = vpop.eup %7102  ;;  %5481 = vst [vmem:[%s8985_s20 + $0x8c] sm:$0xff] %v6015_v56  ;;  %7128 = vtanh.f32 %v3873_v28  ;;  %v3877_v63 = vadd.f32 %v3876_v2, %v8949_v45  ;;  %4350 = vmatprep.mubr.bf16.mxu0 %v7509_v54 }
 0x689   : > { %v4070_v26 = vadd.f32 %v4069_v31, %v8951_v22  ;;  %v7105_v55 = vpop.eup %7104  ;;  %5482 = vst [vmem:[%s8985_s20 + $0x94] sm:$0xff] %v6016_v14  ;;  %7130 = vtanh.f32 %v4066_v58  ;;  %v3878_v35 = vpop.f32.mrf.mxu0 }
 0x68a   : > { %v4071_v38 = vpop.f32.mrf.mxu1  ;;  %v7107_v13 = vpop.eup %7106  ;;  %v6019_v41 = vpack.c.bf16 %v7105_v55, %v7101_v6  ;;  %7132 = vtanh.f32 %v3877_v63  ;;  %v3879_v4 = vadd.f32 %v3878_v35, %v8953_v61 }
 0x68b   : > { %v4072_v8 = vadd.f32 %v4071_v38, %v8955_v18  ;;  %v7109_v57 = vpop.eup %7108  ;;  %v6020_v60 = vpack.c.bf16 %v7107_v13, %v7103_v42  ;;  %7134 = vtanh.f32 %v4070_v26  ;;  %v3880_v44 = vpop.f32.mrf.mxu0 }
 0x68c   : > { %v4073_v11 = vpop.f32.mrf.mxu1  ;;  %v7111_v46 = vpop.eup %7110  ;;  %5485 = vst [vmem:[%s8985_s20 + $0xa8] sm:$0xff] %v6019_v41  ;;  %7136 = vtanh.f32 %v3879_v4  ;;  %v3881_v17 = vadd.f32 %v3880_v44, %v8949_v45 }
 0x68d   : > { %v4074_v32 = vadd.f32 %v4073_v11, %v8951_v22  ;;  %v7113_v52 = vpop.eup %7112  ;;  %5486 = vst [vmem:[%s8985_s20 + $0xb0] sm:$0xff] %v6020_v60  ;;  %7138 = vtanh.f32 %v4072_v8  ;;  %v3882_v19 = vpop.f32.mrf.mxu0 }
 0x68e   : > { %v4075_v9 = vpop.f32.mrf.mxu1  ;;  %v7115_v49 = vpop.eup %7114  ;;  %v6023_v5 = vpack.c.bf16 %v7113_v52, %v7109_v57  ;;  %7140 = vtanh.f32 %v3881_v17  ;;  %v3883_v29 = vadd.f32 %v3882_v19, %v8953_v61 }
 0x68f   : > { %v4076_v50 = vadd.f32 %v4075_v9, %v8955_v18  ;;  %v7117_v40 = vpop.eup %7116  ;;  %v6024_v47 = vpack.c.bf16 %v7115_v49, %v7111_v46  ;;  %7142 = vtanh.f32 %v4074_v32  ;;  %v3886_v0 = vpop.f32.mrf.mxu0  ;;  %4351 = vmatmul.mubr.bf16.gmra.mxu0 %v8896_v48 }
 0x690   : > { %v4079_v43 = vpop.f32.mrf.mxu1  ;;  %v7119_v24 = vpop.eup %7118  ;;  %5489 = vst [vmem:[%s8985_s20 + $0xc4] sm:$0xff] %v6023_v5  ;;  %7144 = vtanh.f32 %v3883_v29  ;;  %v3887_v33 = vadd.f32 %v3886_v0, %v8949_v45  ;;  %4360 = vmatprep.mubr.bf16.mxu0 %v7509_v54 }
 0x691   : > { %v4080_v7 = vadd.f32 %v4079_v43, %v8951_v22  ;;  %v7121_v59 = vpop.eup %7120  ;;  %5490 = vst [vmem:[%s8985_s20 + $0xcc] sm:$0xff] %v6024_v47  ;;  %7146 = vtanh.f32 %v4076_v50  ;;  %v3888_v1 = vpop.f32.mrf.mxu0 }
 0x692   : > { %v4081_v16 = vpop.f32.mrf.mxu1  ;;  %v7123_v10 = vpop.eup %7122  ;;  %v6027_v30 = vpack.c.bf16 %v7121_v59, %v7117_v40  ;;  %7148 = vtanh.f32 %v3887_v33  ;;  %v3889_v48 = vadd.f32 %v3888_v1, %v8953_v61 }
 0x693   : > { %v4082_v39 = vadd.f32 %v4081_v16, %v8955_v18  ;;  %v7125_v20 = vpop.eup %7124  ;;  %v6028_v36 = vpack.c.bf16 %v7123_v10, %v7119_v24  ;;  %7150 = vtanh.f32 %v4080_v7  ;;  %v3890_v12 = vpop.f32.mrf.mxu0 }
 0x694   : > { %v4083_v27 = vpop.f32.mrf.mxu1  ;;  %v7127_v54 = vpop.eup %7126  ;;  %5493 = vst [vmem:[%s8985_s20 + $0xe0] sm:$0xff] %v6027_v30  ;;  %7152 = vtanh.f32 %v3889_v48  ;;  %v3891_v3 = vadd.f32 %v3890_v12, %v8949_v45 }
 0x695   : > { %v4084_v23 = vadd.f32 %v4083_v27, %v8951_v22  ;;  %v7129_v25 = vpop.eup %7128  ;;  %5494 = vst [vmem:[%s8985_s20 + $0xe8] sm:$0xff] %v6028_v36  ;;  %7154 = vtanh.f32 %v4082_v39  ;;  %v3892_v53 = vpop.f32.mrf.mxu0 }
 0x696   : > { %v4085_v21 = vpop.f32.mrf.mxu1  ;;  %v7131_v34 = vpop.eup %7130  ;;  %v6031_v51 = vpack.c.bf16 %v7129_v25, %v7125_v20  ;;  %7156 = vtanh.f32 %v3891_v3  ;;  %v3893_v37 = vadd.f32 %v3892_v53, %v8953_v61 }
 0x697   : > { %v4086_v56 = vadd.f32 %v4085_v21, %v8955_v18  ;;  %v7133_v28 = vpop.eup %7132  ;;  %v6032_v58 = vpack.c.bf16 %v7131_v34, %v7127_v54  ;;  %7158 = vtanh.f32 %v4084_v23  ;;  %v3896_v6 = vpop.f32.mrf.mxu0  ;;  %4361 = vmatmul.mubr.bf16.gmra.mxu0 %v8903_v15 }
 0x698   : > { %v4089_v14 = vpop.f32.mrf.mxu1  ;;  %v7135_v2 = vpop.eup %7134  ;;  %5497 = vst [vmem:[%s8985_s20 + $0xfc] sm:$0xff] %v6031_v51  ;;  %7160 = vtanh.f32 %v3893_v37  ;;  %v3897_v31 = vadd.f32 %v3896_v6, %v8949_v45 }
 0x699   : > { %v4090_v42 = vadd.f32 %v4089_v14, %v8951_v22  ;;  %v7137_v63 = vpop.eup %7136  ;;  %5498 = vst [vmem:[%s8985_s20 + $0x104] sm:$0xff] %v6032_v58  ;;  %7162 = vtanh.f32 %v4086_v56  ;;  %v3898_v26 = vpop.f32.mrf.mxu0 }
 0x69a   : > { %v4091_v55 = vpop.f32.mrf.mxu1  ;;  %v7139_v35 = vpop.eup %7138  ;;  %v6035_v38 = vpack.c.bf16 %v7137_v63, %v7133_v28  ;;  %7164 = vtanh.f32 %v3897_v31  ;;  %v3899_v13 = vadd.f32 %v3898_v26, %v8953_v61 }
 0x69b   : > { %v4092_v15 = vadd.f32 %v4091_v55, %v8955_v18  ;;  %v7141_v41 = vpop.eup %7140  ;;  %v6036_v4 = vpack.c.bf16 %v7139_v35, %v7135_v2  ;;  %7166 = vtanh.f32 %v4090_v42  ;;  %v3900_v8 = vpop.f32.mrf.mxu0 }
 0x69c   : > { %v4093_v57 = vpop.f32.mrf.mxu1  ;;  %v7143_v60 = vpop.eup %7142  ;;  %5501 = vst [vmem:[%s8985_s20 + $0x118] sm:$0xff] %v6035_v38  ;;  %7168 = vtanh.f32 %v3899_v13  ;;  %v3901_v44 = vadd.f32 %v3900_v8, %v8949_v45 }
 0x69d   : > { %v4094_v11 = vadd.f32 %v4093_v57, %v8951_v22  ;;  %v7145_v46 = vpop.eup %7144  ;;  %5502 = vst [vmem:[%s8985_s20 + $0x120] sm:$0xff] %v6036_v4  ;;  %7170 = vtanh.f32 %v4092_v15  ;;  %v3902_v17 = vpop.f32.mrf.mxu0 }
 0x69e   : > { %v4095_v32 = vpop.f32.mrf.mxu1  ;;  %v7147_v52 = vpop.eup %7146  ;;  %v6039_v19 = vpack.c.bf16 %v7145_v46, %v7141_v41  ;;  %7172 = vtanh.f32 %v3901_v44  ;;  %v3903_v9 = vadd.f32 %v3902_v17, %v8953_v61 }
 0x69f   : > { %v4096_v49 = vadd.f32 %v4095_v32, %v8955_v18  ;;  %v7149_v5 = vpop.eup %7148  ;;  %v6040_v29 = vpack.c.bf16 %v7147_v52, %v7143_v60  ;;  %7174 = vtanh.f32 %v4094_v11  ;;  %v3906_v50 = vpop.f32.mrf.mxu0 }
 0x6a0   : > { %v4099_v40 = vpop.f32.mrf.mxu1  ;;  %v7151_v47 = vpop.eup %7150  ;;  %5505 = vst [vmem:[%s8985_s20 + $0x134] sm:$0xff] %v6039_v19  ;;  %7176 = vtanh.f32 %v3903_v9  ;;  %v3907_v0 = vadd.f32 %v3906_v50, %v8949_v45 }
 0x6a1   : > { %v4100_v43 = vadd.f32 %v4099_v40, %v8951_v22  ;;  %v7153_v24 = vpop.eup %7152  ;;  %5506 = vst [vmem:[%s8985_s20 + $0x13c] sm:$0xff] %v6040_v29  ;;  %7178 = vtanh.f32 %v4096_v49  ;;  %v3908_v33 = vpop.f32.mrf.mxu0 }
 0x6a2   : > { %v4101_v7 = vpop.f32.mrf.mxu1  ;;  %v7155_v59 = vpop.eup %7154  ;;  %v6043_v1 = vpack.c.bf16 %v7153_v24, %v7149_v5  ;;  %7180 = vtanh.f32 %v3907_v0  ;;  %v3909_v16 = vadd.f32 %v3908_v33, %v8953_v61 }
 0x6a3   : > { %v4102_v10 = vadd.f32 %v4101_v7, %v8955_v18  ;;  %v7157_v30 = vpop.eup %7156  ;;  %v6044_v48 = vpack.c.bf16 %v7155_v59, %v7151_v47  ;;  %7182 = vtanh.f32 %v4100_v43  ;;  %v3910_v39 = vpop.f32.mrf.mxu0 }
 0x6a4   : > { %v4103_v20 = vpop.f32.mrf.mxu1  ;;  %v7159_v36 = vpop.eup %7158  ;;  %5509 = vst [vmem:[%s8985_s20 + $0x150] sm:$0xff] %v6043_v1  ;;  %7184 = vtanh.f32 %v3909_v16  ;;  %v3911_v12 = vadd.f32 %v3910_v39, %v8949_v45 }
 0x6a5   : > { %v4104_v27 = vadd.f32 %v4103_v20, %v8951_v22  ;;  %v7161_v54 = vpop.eup %7160  ;;  %5510 = vst [vmem:[%s8985_s20 + $0x158] sm:$0xff] %v6044_v48  ;;  %7186 = vtanh.f32 %v4102_v10  ;;  %v3912_v3 = vpop.f32.mrf.mxu0 }
 0x6a6   : > { %v4105_v23 = vpop.f32.mrf.mxu1  ;;  %v7163_v25 = vpop.eup %7162  ;;  %v6047_v53 = vpack.c.bf16 %v7161_v54, %v7157_v30  ;;  %7188 = vtanh.f32 %v3911_v12  ;;  %v3913_v21 = vadd.f32 %v3912_v3, %v8953_v61 }
 0x6a7   : > { %v4106_v34 = vadd.f32 %v4105_v23, %v8955_v18  ;;  %v7165_v51 = vpop.eup %7164  ;;  %v6048_v37 = vpack.c.bf16 %v7163_v25, %v7159_v36  ;;  %7190 = vtanh.f32 %v4104_v27  ;;  %v3916_v56 = vpop.f32.mrf.mxu0 }
 0x6a8   : > { %v4109_v28 = vpop.f32.mrf.mxu1  ;;  %v7167_v58 = vpop.eup %7166  ;;  %5513 = vst [vmem:[%s8985_s20 + $0x16c] sm:$0xff] %v6047_v53  ;;  %7192 = vtanh.f32 %v3913_v21  ;;  %v3917_v6 = vadd.f32 %v3916_v56, %v8949_v45 }
 0x6a9   : > { %v4110_v14 = vadd.f32 %v4109_v28, %v8951_v22  ;;  %v7169_v2 = vpop.eup %7168  ;;  %5514 = vst [vmem:[%s8985_s20 + $0x174] sm:$0xff] %v6048_v37  ;;  %7194 = vtanh.f32 %v4106_v34  ;;  %v3918_v31 = vpop.f32.mrf.mxu0 }
 0x6aa   : > { %v4111_v42 = vpop.f32.mrf.mxu1  ;;  %v7171_v63 = vpop.eup %7170  ;;  %v6051_v26 = vpack.c.bf16 %v7169_v2, %v7165_v51  ;;  %7196 = vtanh.f32 %v3917_v6  ;;  %v3919_v55 = vadd.f32 %v3918_v31, %v8953_v61 }
 0x6ab   : > { %v4112_v35 = vadd.f32 %v4111_v42, %v8955_v18  ;;  %v7173_v38 = vpop.eup %7172  ;;  %v6052_v13 = vpack.c.bf16 %v7171_v63, %v7167_v58  ;;  %7198 = vtanh.f32 %v4110_v14  ;;  %v3920_v15 = vpop.f32.mrf.mxu0 }
 0x6ac   : > { %v4113_v41 = vpop.f32.mrf.mxu1  ;;  %v7175_v4 = vpop.eup %7174  ;;  %5517 = vst [vmem:[%s8985_s20 + $0x188] sm:$0xff] %v6051_v26  ;;  %7200 = vtanh.f32 %v3919_v55  ;;  %v3921_v8 = vadd.f32 %v3920_v15, %v8949_v45 }
 0x6ad   : > { %v4114_v57 = vadd.f32 %v4113_v41, %v8951_v22  ;;  %v7177_v60 = vpop.eup %7176  ;;  %5518 = vst [vmem:[%s8985_s20 + $0x190] sm:$0xff] %v6052_v13  ;;  %7202 = vtanh.f32 %v4112_v35  ;;  %v3922_v44 = vpop.f32.mrf.mxu0 }
 0x6ae   : > { %v4115_v11 = vpop.f32.mrf.mxu1  ;;  %v7179_v46 = vpop.eup %7178  ;;  %v6055_v17 = vpack.c.bf16 %v7177_v60, %v7173_v38  ;;  %7204 = vtanh.f32 %v3921_v8  ;;  %v3923_v32 = vadd.f32 %v3922_v44, %v8953_v61 }
 0x6af   : > { %v4116_v52 = vadd.f32 %v4115_v11, %v8955_v18  ;;  %v7181_v19 = vpop.eup %7180  ;;  %v6056_v9 = vpack.c.bf16 %v7179_v46, %v7175_v4  ;;  %7206 = vtanh.f32 %v4114_v57  ;;  %v3926_v49 = vpop.f32.mrf.mxu0 }
 0x6b0   : > { %v4119_v5 = vpop.f32.mrf.mxu1  ;;  %v7183_v29 = vpop.eup %7182  ;;  %5521 = vst [vmem:[%s8985_s20 + $0x1a4] sm:$0xff] %v6055_v17  ;;  %7208 = vtanh.f32 %v3923_v32  ;;  %v3927_v50 = vadd.f32 %v3926_v49, %v8949_v45 }
 0x6b1   : > { %v4120_v40 = vadd.f32 %v4119_v5, %v8951_v22  ;;  %v7185_v47 = vpop.eup %7184  ;;  %5522 = vst [vmem:[%s8985_s20 + $0x1ac] sm:$0xff] %v6056_v9  ;;  %7210 = vtanh.f32 %v4116_v52  ;;  %v3928_v0 = vpop.f32.mrf.mxu0 }
 0x6b2   : > { %v4121_v43 = vpop.f32.mrf.mxu1  ;;  %v7187_v24 = vpop.eup %7186  ;;  %v6059_v33 = vpack.c.bf16 %v7185_v47, %v7181_v19  ;;  %7212 = vtanh.f32 %v3927_v50  ;;  %v3929_v7 = vadd.f32 %v3928_v0, %v8953_v61 }
 0x6b3   : > { %v4122_v59 = vadd.f32 %v4121_v43, %v8955_v18  ;;  %v7189_v1 = vpop.eup %7188  ;;  %v6060_v16 = vpack.c.bf16 %v7187_v24, %v7183_v29  ;;  %7214 = vtanh.f32 %v4120_v40  ;;  %v3930_v10 = vpop.f32.mrf.mxu0 }
 0x6b4   : > { %v4123_v30 = vpop.f32.mrf.mxu1  ;;  %v7191_v48 = vpop.eup %7190  ;;  %5525 = vst [vmem:[%s8985_s20 + $0x1c0] sm:$0xff] %v6059_v33  ;;  %7216 = vtanh.f32 %v3929_v7  ;;  %v3931_v39 = vadd.f32 %v3930_v10, %v8949_v45 }
 0x6b5   : > { %v4124_v20 = vadd.f32 %v4123_v30, %v8951_v22  ;;  %v7193_v36 = vpop.eup %7192  ;;  %5526 = vst [vmem:[%s8985_s20 + $0x1c8] sm:$0xff] %v6060_v16  ;;  %7218 = vtanh.f32 %v4122_v59  ;;  %v3932_v12 = vpop.f32.mrf.mxu0 }
 0x6b6   : > { %v4125_v27 = vpop.f32.mrf.mxu1  ;;  %v7195_v54 = vpop.eup %7194  ;;  %v6063_v3 = vpack.c.bf16 %v7193_v36, %v7189_v1  ;;  %7220 = vtanh.f32 %v3931_v39  ;;  %v3933_v23 = vadd.f32 %v3932_v12, %v8953_v61 }
 0x6b7   : > { %v4126_v25 = vadd.f32 %v4125_v27, %v8955_v18  ;;  %v7197_v53 = vpop.eup %7196  ;;  %v6064_v21 = vpack.c.bf16 %v7195_v54, %v7191_v48  ;;  %7222 = vtanh.f32 %v4124_v20  ;;  %v3936_v34 = vpop.f32.mrf.mxu0 }
 0x6b8   : > { %v4129_v51 = vpop.f32.mrf.mxu1  ;;  %v7199_v37 = vpop.eup %7198  ;;  %5529 = vst [vmem:[%s8985_s20 + $0x1dc] sm:$0xff] %v6063_v3  ;;  %7224 = vtanh.f32 %v3933_v23  ;;  %v3937_v56 = vadd.f32 %v3936_v34, %v8949_v45 }
 0x6b9   : > { %v4130_v28 = vadd.f32 %v4129_v51, %v8951_v22  ;;  %v7201_v58 = vpop.eup %7200  ;;  %5530 = vst [vmem:[%s8985_s20 + $0x1e4] sm:$0xff] %v6064_v21  ;;  %7226 = vtanh.f32 %v4126_v25  ;;  %v3938_v6 = vpop.f32.mrf.mxu0 }
 0x6ba   : > { %v4131_v14 = vpop.f32.mrf.mxu1  ;;  %v7203_v2 = vpop.eup %7202  ;;  %v6067_v31 = vpack.c.bf16 %v7201_v58, %v7197_v53  ;;  %7228 = vtanh.f32 %v3937_v56  ;;  %v3939_v42 = vadd.f32 %v3938_v6, %v8953_v61 }
 0x6bb   : > { %v4132_v63 = vadd.f32 %v4131_v14, %v8955_v18  ;;  %v7205_v26 = vpop.eup %7204  ;;  %v6068_v55 = vpack.c.bf16 %v7203_v2, %v7199_v37  ;;  %7230 = vtanh.f32 %v4130_v28  ;;  %v3940_v35 = vpop.f32.mrf.mxu0 }
 0x6bc   : > { %v4133_v38 = vpop.f32.mrf.mxu1  ;;  %v7207_v13 = vpop.eup %7206  ;;  %5533 = vst [vmem:[%s8985_s20 + $0x1f8] sm:$0xff] %v6067_v31  ;;  %7232 = vtanh.f32 %v3939_v42  ;;  %v3941_v15 = vadd.f32 %v3940_v35, %v8949_v45 }
 0x6bd   : > { %v4134_v41 = vadd.f32 %v4133_v38, %v8951_v22  ;;  %v7209_v4 = vpop.eup %7208  ;;  %5534 = vst [vmem:[%s8985_s20 + $0x200] sm:$0xff] %v6068_v55  ;;  %7234 = vtanh.f32 %v4132_v63  ;;  %v3942_v8 = vpop.f32.mrf.mxu0 }
 0x6be   : > { %v4135_v57 = vpop.f32.mrf.mxu1  ;;  %v7211_v60 = vpop.eup %7210  ;;  %v6071_v44 = vpack.c.bf16 %v7209_v4, %v7205_v26  ;;  %7236 = vtanh.f32 %v3941_v15  ;;  %v3943_v11 = vadd.f32 %v3942_v8, %v8953_v61 }
 0x6bf   : > { %v4136_v46 = vadd.f32 %v4135_v57, %v8955_v18  ;;  %v7213_v17 = vpop.eup %7212  ;;  %v6072_v32 = vpack.c.bf16 %v7211_v60, %v7207_v13  ;;  %7238 = vtanh.f32 %v4134_v41  ;;  %v3946_v52 = vpop.f32.mrf.mxu0 }
 0x6c0   : > { %v4139_v19 = vpop.f32.mrf.mxu1  ;;  %v7215_v9 = vpop.eup %7214  ;;  %5537 = vst [vmem:[%s8985_s20 + $0x214] sm:$0xff] %v6071_v44  ;;  %7240 = vtanh.f32 %v3943_v11  ;;  %v3947_v49 = vadd.f32 %v3946_v52, %v8949_v45 }
 0x6c1   : > { %v4140_v5 = vadd.f32 %v4139_v19, %v8951_v22  ;;  %v7217_v29 = vpop.eup %7216  ;;  %5538 = vst [vmem:[%s8985_s20 + $0x21c] sm:$0xff] %v6072_v32  ;;  %7242 = vtanh.f32 %v4136_v46  ;;  %v3948_v50 = vpop.f32.mrf.mxu0 }
 0x6c2   : > { %v4141_v40 = vpop.f32.mrf.mxu1  ;;  %v7219_v47 = vpop.eup %7218  ;;  %v6075_v0 = vpack.c.bf16 %v7217_v29, %v7213_v17  ;;  %7244 = vtanh.f32 %v3947_v49  ;;  %v3949_v43 = vadd.f32 %v3948_v50, %v8953_v61 }
 0x6c3   : > { %v4142_v24 = vadd.f32 %v4141_v40, %v8955_v18  ;;  %v7221_v33 = vpop.eup %7220  ;;  %v6076_v7 = vpack.c.bf16 %v7219_v47, %v7215_v9  ;;  %7246 = vtanh.f32 %v4140_v5  ;;  %v3950_v59 = vpop.f32.mrf.mxu0 }
 0x6c4   : > { %v4143_v1 = vpop.f32.mrf.mxu1  ;;  %v7223_v16 = vpop.eup %7222  ;;  %5541 = vst [vmem:[%s8985_s20 + $0x230] sm:$0xff] %v6075_v0  ;;  %7248 = vtanh.f32 %v3949_v43  ;;  %v3951_v10 = vadd.f32 %v3950_v59, %v8949_v45 }
 0x6c5   : > { %v4144_v30 = vadd.f32 %v4143_v1, %v8951_v22  ;;  %v7225_v48 = vpop.eup %7224  ;;  %5542 = vst [vmem:[%s8985_s20 + $0x238] sm:$0xff] %v6076_v7  ;;  %7250 = vtanh.f32 %v4142_v24  ;;  %v3952_v39 = vpop.f32.mrf.mxu0 }
 0x6c6   : > { %v4145_v20 = vpop.f32.mrf.mxu1  ;;  %v7227_v36 = vpop.eup %7226  ;;  %v6079_v12 = vpack.c.bf16 %v7225_v48, %v7221_v33  ;;  %7252 = vtanh.f32 %v3951_v10  ;;  %v3953_v27 = vadd.f32 %v3952_v39, %v8953_v61 }
 0x6c7   : > { %v4146_v54 = vadd.f32 %v4145_v20, %v8955_v18  ;;  %v7229_v3 = vpop.eup %7228  ;;  %v6080_v23 = vpack.c.bf16 %v7227_v36, %v7223_v16  ;;  %7254 = vtanh.f32 %v4144_v30  ;;  %v3956_v25 = vpop.f32.mrf.mxu0 }
 0x6c8   : > { %v4149_v53 = vpop.f32.mrf.mxu1  ;;  %v7231_v21 = vpop.eup %7230  ;;  %5545 = vst [vmem:[%s8985_s20 + $0x24c] sm:$0xff] %v6079_v12  ;;  %7256 = vtanh.f32 %v3953_v27  ;;  %v3957_v34 = vadd.f32 %v3956_v25, %v8949_v45 }
 0x6c9   : > { %v4150_v51 = vadd.f32 %v4149_v53, %v8951_v22  ;;  %v7233_v37 = vpop.eup %7232  ;;  %5546 = vst [vmem:[%s8985_s20 + $0x254] sm:$0xff] %v6080_v23  ;;  %7258 = vtanh.f32 %v4146_v54  ;;  %v3958_v56 = vpop.f32.mrf.mxu0  ;;  %v3487_v23 = vsub.s32 4, %v8937_v62 }
 0x6ca   : > { %v4151_v28 = vpop.f32.mrf.mxu1  ;;  %v7235_v58 = vpop.eup %7234  ;;  %v6083_v6 = vpack.c.bf16 %v7233_v37, %v7229_v3  ;;  %7260 = vtanh.f32 %v3957_v34  ;;  %v3959_v14 = vadd.f32 %v3958_v56, %v8953_v61  ;;  %v3495_v34 = vsub.s32 6, %v8937_v62 }
 0x6cb   : > { %v4152_v2 = vadd.f32 %v4151_v28, %v8955_v18  ;;  %v7237_v31 = vpop.eup %7236  ;;  %v6084_v42 = vpack.c.bf16 %v7235_v58, %v7231_v21  ;;  %7262 = vtanh.f32 %v4150_v51  ;;  %v3960_v63 = vpop.f32.mrf.mxu0  ;;  %v3491_v28 = vsub.s32 5, %v8937_v62 }
 0x6cc   : > { %v4153_v26 = vpop.f32.mrf.mxu1  ;;  %v7239_v55 = vpop.eup %7238  ;;  %5549 = vst [vmem:[%s8985_s20 + $0x268] sm:$0xff] %v6083_v6  ;;  %7264 = vtanh.f32 %v3959_v14  ;;  %v3961_v35 = vadd.f32 %v3960_v63, %v8949_v45 }
 0x6cd   : > { %v4154_v38 = vadd.f32 %v4153_v26, %v8951_v22  ;;  %v7241_v13 = vpop.eup %7240  ;;  %5550 = vst [vmem:[%s8985_s20 + $0x270] sm:$0xff] %v6084_v42  ;;  %7266 = vtanh.f32 %v4152_v2  ;;  %v3962_v15 = vpop.f32.mrf.mxu0 }
 0x6ce   : > { %v4155_v41 = vpop.f32.mrf.mxu1  ;;  %v7243_v4 = vpop.eup %7242  ;;  %v6087_v8 = vpack.c.bf16 %v7241_v13, %v7237_v31  ;;  %7268 = vtanh.f32 %v3961_v35  ;;  %v3963_v57 = vadd.f32 %v3962_v15, %v8953_v61 }
 0x6cf   : > { %v4156_v60 = vadd.f32 %v4155_v41, %v8955_v18  ;;  %v7245_v44 = vpop.eup %7244  ;;  %v6088_v11 = vpack.c.bf16 %v7243_v4, %v7239_v55  ;;  %7270 = vtanh.f32 %v4154_v38  ;;  %v3966_v46 = vpop.f32.mrf.mxu0  ;;  %v7500_v55 = vld [vmem:[%s9391_s14] sm:$0x7f] }
 0x6d0   : > { %v4159_v17 = vpop.f32.mrf.mxu1  ;;  %v7247_v32 = vpop.eup %7246  ;;  %5553 = vst [vmem:[%s8985_s20 + $0x284] sm:$0xff] %v6087_v8  ;;  %7272 = vtanh.f32 %v3963_v57  ;;  %v3967_v52 = vadd.f32 %v3966_v46, %v8949_v45  ;;  %v9160_v35 = vrot.slane %v7500_v55, %v3487_v23  ;;  %v9165_v15 = vrot.slane %v7500_v55, %v3495_v34 }
 0x6d1   : > { %v4160_v19 = vadd.f32 %v4159_v17, %v8951_v22  ;;  %v7249_v9 = vpop.eup %7248  ;;  %5554 = vst [vmem:[%s8985_s20 + $0x28c] sm:$0xff] %v6088_v11  ;;  %7274 = vtanh.f32 %v4156_v60  ;;  %v3968_v49 = vpop.f32.mrf.mxu0  ;;  %v9168_v57 = vrot.slane %v7500_v55, %v3491_v28 }
 0x6d2   : > { %v4161_v5 = vpop.f32.mrf.mxu1  ;;  %v7251_v29 = vpop.eup %7250  ;;  %v6091_v50 = vpack.c.bf16 %v7249_v9, %v7245_v44  ;;  %7276 = vtanh.f32 %v3967_v52  ;;  %v3969_v40 = vadd.f32 %v3968_v49, %v8953_v61 }
 0x6d3   : > { %v4162_v47 = vadd.f32 %v4161_v5, %v8955_v18  ;;  %v7253_v0 = vpop.eup %7252  ;;  %v6092_v43 = vpack.c.bf16 %v7251_v29, %v7247_v32  ;;  %7278 = vtanh.f32 %v4160_v19  ;;  %v3970_v24 = vpop.f32.mrf.mxu0 }
 0x6d4   : > { %v4163_v33 = vpop.f32.mrf.mxu1  ;;  %v7255_v7 = vpop.eup %7254  ;;  %5557 = vst [vmem:[%s8985_s20 + $0x2a0] sm:$0xff] %v6091_v50  ;;  %7280 = vtanh.f32 %v3969_v40  ;;  %v3971_v59 = vadd.f32 %v3970_v24, %v8949_v45 }
 0x6d5   : > { %v4164_v1 = vadd.f32 %v4163_v33, %v8951_v22  ;;  %v7257_v16 = vpop.eup %7256  ;;  %5558 = vst [vmem:[%s8985_s20 + $0x2a8] sm:$0xff] %v6092_v43  ;;  %7282 = vtanh.f32 %v4162_v47  ;;  %v3972_v10 = vpop.f32.mrf.mxu0 }
 0x6d6   : > { %v4165_v30 = vpop.f32.mrf.mxu1  ;;  %v7259_v48 = vpop.eup %7258  ;;  %v6095_v39 = vpack.c.bf16 %v7257_v16, %v7253_v0  ;;  %7284 = vtanh.f32 %v3971_v59  ;;  %v3973_v20 = vadd.f32 %v3972_v10, %v8953_v61 }
 0x6d7   : > { %v4166_v36 = vadd.f32 %v4165_v30, %v8955_v18  ;;  %v7261_v12 = vpop.eup %7260  ;;  %v6096_v27 = vpack.c.bf16 %v7259_v48, %v7255_v7  ;;  %7286 = vtanh.f32 %v4164_v1  ;;  %v3976_v54 = vpop.f32.mrf.mxu0 }
 0x6d8   : > { %v4169_v3 = vpop.f32.mrf.mxu1  ;;  %v7263_v25 = vpop.eup %7262  ;;  %5561 = vst [vmem:[%s8985_s20 + $0x2bc] sm:$0xff] %v6095_v39  ;;  %7288 = vtanh.f32 %v3973_v20  ;;  %v3977_v53 = vadd.f32 %v3976_v54, %v8949_v45 }
 0x6d9   : > { %v4170_v21 = vadd.f32 %v4169_v3, %v8951_v22  ;;  %v7265_v51 = vpop.eup %7264  ;;  %5562 = vst [vmem:[%s8985_s20 + $0x2c4] sm:$0xff] %v6096_v27  ;;  %7290 = vtanh.f32 %v4166_v36  ;;  %v3978_v37 = vpop.f32.mrf.mxu0 }
 0x6da   : > { %v4171_v56 = vpop.f32.mrf.mxu1  ;;  %v7267_v58 = vpop.eup %7266  ;;  %v6099_v6 = vpack.c.bf16 %v7265_v51, %v7261_v12  ;;  %7292 = vtanh.f32 %v3977_v53  ;;  %v3979_v14 = vadd.f32 %v3978_v37, %v8953_v61 }
 0x6db   : > { %v4172_v2 = vadd.f32 %v4171_v56, %v8955_v18  ;;  %v7269_v31 = vpop.eup %7268  ;;  %v6100_v42 = vpack.c.bf16 %v7267_v58, %v7263_v25  ;;  %7294 = vtanh.f32 %v4170_v21  ;;  %v3980_v63 = vpop.f32.mrf.mxu0 }
 0x6dc   : > { %v4173_v26 = vpop.f32.mrf.mxu1  ;;  %v7271_v62 = vpop.eup %7270  ;;  %5565 = vst [vmem:[%s8985_s20 + $0x2d8] sm:$0xff] %v6099_v6  ;;  %7296 = vtanh.f32 %v3979_v14  ;;  %v3981_v38 = vadd.f32 %v3980_v63, %v8949_v45 }
 0x6dd   : > { %v4174_v13 = vadd.f32 %v4173_v26, %v8951_v22  ;;  %v7273_v41 = vpop.eup %7272  ;;  %5566 = vst [vmem:[%s8985_s20 + $0x2e0] sm:$0xff] %v6100_v42  ;;  %7298 = vtanh.f32 %v4172_v2  ;;  %v3982_v4 = vpop.f32.mrf.mxu0 }
 0x6de   : > { %v4175_v8 = vpop.f32.mrf.mxu1  ;;  %v7275_v60 = vpop.eup %7274  ;;  %v6103_v44 = vpack.c.bf16 %v7273_v41, %v7269_v31  ;;  %7300 = vtanh.f32 %v3981_v38  ;;  %v3983_v11 = vadd.f32 %v3982_v4, %v8953_v61 }
 0x6df   : > { %v4176_v45 = vadd.f32 %v4175_v8, %v8955_v18  ;;  %v7277_v46 = vpop.eup %7276  ;;  %v6104_v22 = vpack.c.bf16 %v7275_v60, %v7271_v62  ;;  %7302 = vtanh.f32 %v4174_v13  ;;  %v4212_v17 = vpop.f32.mrf.mxu0 }
 0x6e0   : > { %v6846_v32 = vpop.f32.mrf.mxu1  ;;  %v7279_v52 = vpop.eup %7278  ;;  %5569 = vst [vmem:[%s8985_s20 + $0x2f4] sm:$0xff] %v6103_v44  ;;  %7304 = vtanh.f32 %v3983_v11  ;;  %v4213_v19 = vadd.f32 %v4212_v17, %v9160_v35 }
 0x6e1   : > { %v4414_v9 = vadd.f32 %v6846_v32, %v9165_v15  ;;  %v7281_v49 = vpop.eup %7280  ;;  %5570 = vst [vmem:[%s8985_s20 + $0x2fc] sm:$0xff] %v6104_v22  ;;  %7306 = vtanh.f32 %v4176_v45  ;;  %v4214_v5 = vpop.f32.mrf.mxu0 }
 0x6e2   : > { %v4405_v61 = vpop.f32.mrf.mxu1  ;;  %v7283_v29 = vpop.eup %7282  ;;  %v6107_v18 = vpack.c.bf16 %v7281_v49, %v7277_v46  ;;  %7308 = vtanh.f32 %v4213_v19  ;;  %v4215_v50 = vadd.f32 %v4214_v5, %v9168_v57 }
 0x6e3   : > { %v4406_v40 = vadd.f32 %v4405_v61, %v9165_v15  ;;  %v7285_v47 = vpop.eup %7284  ;;  %v6108_v0 = vpack.c.bf16 %v7283_v29, %v7279_v52  ;;  %7310 = vtanh.f32 %v4414_v9  ;;  %v4216_v43 = vpop.f32.mrf.mxu0 }
 0x6e4   : > { %v6847_v24 = vpop.f32.mrf.mxu1  ;;  %v7287_v33 = vpop.eup %7286  ;;  %5573 = vst [vmem:[%s8985_s20 + $0x310] sm:$0xff] %v6107_v18  ;;  %7312 = vtanh.f32 %v4215_v50  ;;  %v4217_v7 = vadd.f32 %v4216_v43, %v9160_v35 }
 0x6e5   : > { %v4417_v59 = vadd.f32 %v6847_v24, %v9165_v15  ;;  %v7289_v1 = vpop.eup %7288  ;;  %5574 = vst [vmem:[%s8985_s20 + $0x318] sm:$0xff] %v6108_v0  ;;  %7314 = vtanh.f32 %v4406_v40  ;;  %v4218_v16 = vpop.f32.mrf.mxu0 }
 0x6e6   : > { %v4408_v10 = vpop.f32.mrf.mxu1  ;;  %v7291_v30 = vpop.eup %7290  ;;  %v6111_v48 = vpack.c.bf16 %v7289_v1, %v7285_v47  ;;  %7316 = vtanh.f32 %v4217_v7  ;;  %v4219_v39 = vadd.f32 %v4218_v16, %v9168_v57 }
 0x6e7   : > { %v4409_v20 = vadd.f32 %v4408_v10, %v9165_v15  ;;  %v7293_v36 = vpop.eup %7292  ;;  %v6112_v12 = vpack.c.bf16 %v7291_v30, %v7287_v33  ;;  %7318 = vtanh.f32 %v4417_v59  ;;  %v4222_v27 = vpop.f32.mrf.mxu0 }
 0x6e8   : > { %v6850_v54 = vpop.f32.mrf.mxu1  ;;  %v7295_v3 = vpop.eup %7294  ;;  %5577 = vst [vmem:[%s8985_s20 + $0x32c] sm:$0xff] %v6111_v48  ;;  %7320 = vtanh.f32 %v4219_v39  ;;  %v4223_v23 = vadd.f32 %v4222_v27, %v9160_v35 }
 0x6e9   : > { %v4430_v25 = vadd.f32 %v6850_v54, %v9165_v15  ;;  %v7297_v53 = vpop.eup %7296  ;;  %5578 = vst [vmem:[%s8985_s20 + $0x334] sm:$0xff] %v6112_v12  ;;  %7322 = vtanh.f32 %v4409_v20  ;;  %v4224_v21 = vpop.f32.mrf.mxu0 }
 0x6ea   : > { %v4421_v34 = vpop.f32.mrf.mxu1  ;;  %v7299_v51 = vpop.eup %7298  ;;  %v6115_v37 = vpack.c.bf16 %v7297_v53, %v7293_v36  ;;  %7324 = vtanh.f32 %v4223_v23  ;;  %v4225_v56 = vadd.f32 %v4224_v21, %v9168_v57 }
 0x6eb   : > { %v4422_v28 = vadd.f32 %v4421_v34, %v9165_v15  ;;  %v7301_v58 = vpop.eup %7300  ;;  %v6116_v6 = vpack.c.bf16 %v7299_v51, %v7295_v3  ;;  %7326 = vtanh.f32 %v4430_v25  ;;  %v4226_v14 = vpop.f32.mrf.mxu0 }
 0x6ec   : > { %v6851_v2 = vpop.f32.mrf.mxu1  ;;  %v7303_v31 = vpop.eup %7302  ;;  %5581 = vst [vmem:[%s8985_s20 + $0x348] sm:$0xff] %v6115_v37  ;;  %7328 = vtanh.f32 %v4225_v56  ;;  %v4227_v42 = vadd.f32 %v4226_v14, %v9160_v35 }
 0x6ed   : > { %v4433_v63 = vadd.f32 %v6851_v2, %v9165_v15  ;;  %v7305_v26 = vpop.eup %7304  ;;  %5582 = vst [vmem:[%s8985_s20 + $0x350] sm:$0xff] %v6116_v6  ;;  %7330 = vtanh.f32 %v4422_v28  ;;  %v4228_v55 = vpop.f32.mrf.mxu0 }
 0x6ee   : > { %v4424_v62 = vpop.f32.mrf.mxu1  ;;  %v7307_v38 = vpop.eup %7306  ;;  %v6119_v13 = vpack.c.bf16 %v7305_v26, %v7301_v58  ;;  %7332 = vtanh.f32 %v4227_v42  ;;  %v4229_v41 = vadd.f32 %v4228_v55, %v9168_v57 }
 0x6ef   : > { %v4425_v4 = vadd.f32 %v4424_v62, %v9165_v15  ;;  %v7309_v8 = vpop.eup %7308  ;;  %v6120_v60 = vpack.c.bf16 %v7307_v38, %v7303_v31  ;;  %7334 = vtanh.f32 %v4433_v63  ;;  %v4232_v44 = vpop.f32.mrf.mxu0 }
 0x6f0   : > { %v6854_v11 = vpop.f32.mrf.mxu1  ;;  %v7311_v45 = vpop.eup %7310  ;;  %5585 = vst [vmem:[%s8985_s20 + $0x364] sm:$0xff] %v6119_v13  ;;  %7336 = vtanh.f32 %v4229_v41  ;;  %v4233_v46 = vadd.f32 %v4232_v44, %v9160_v35 }
 0x6f1   : > { %v4446_v22 = vadd.f32 %v6854_v11, %v9165_v15  ;;  %v7313_v17 = vpop.eup %7312  ;;  %5586 = vst [vmem:[%s8985_s20 + $0x36c] sm:$0xff] %v6120_v60  ;;  %v6006_v32 = vpack.c.bf16 %v7311_v45, %v7311_v45  ;;  %7338 = vtanh.f32 %v4425_v4  ;;  %v4234_v52 = vpop.f32.mrf.mxu0 }
 0x6f2   : > { %v4437_v19 = vpop.f32.mrf.mxu1  ;;  %v7315_v9 = vpop.eup %7314  ;;  %v5997_v49 = vpack.c.bf16 %v7313_v17, %v7309_v8  ;;  %7340 = vtanh.f32 %v4233_v46  ;;  %v4235_v5 = vadd.f32 %v4234_v52, %v9168_v57 }
 0x6f3   : > { %v4438_v61 = vadd.f32 %v4437_v19, %v9165_v15  ;;  %v7317_v29 = vpop.eup %7316  ;;  %5472 = vst.msk [vmem:[%s8985_s20 + $0x50] sm:$0xf] %vm5463_vm4, %v6006_v32  ;;  %v5998_v18 = vpack.c.bf16 %v7315_v9, %v7315_v9  ;;  %7342 = vtanh.f32 %v4446_v22  ;;  %v4236_v50 = vpop.f32.mrf.mxu0 }
 0x6f4   : > { %v6855_v40 = vpop.f32.mrf.mxu1  ;;  %v7319_v47 = vpop.eup %7318  ;;  %5462 = vst [vmem:[%s8985_s20 + $0x10] sm:$0xff] %v5997_v49  ;;  %7344 = vtanh.f32 %v4235_v5  ;;  %v4237_v0 = vadd.f32 %v4236_v50, %v9160_v35 }
 0x6f5   : > { %v4449_v43 = vadd.f32 %v6855_v40, %v9165_v15  ;;  %v7321_v24 = vpop.eup %7320  ;;  %5464 = vst.msk [vmem:[%s8985_s20 + $0x18] sm:$0xf] %vm5463_vm4, %v5998_v18  ;;  %v6010_v33 = vpack.c.bf16 %v7319_v47, %v7319_v47  ;;  %7346 = vtanh.f32 %v4438_v61  ;;  %v4238_v7 = vpop.f32.mrf.mxu0 }
 0x6f6   : > { %v4440_v59 = vpop.f32.mrf.mxu1  ;;  %v7323_v1 = vpop.eup %7322  ;;  %v6001_v16 = vpack.c.bf16 %v7321_v24, %v7317_v29  ;;  %7348 = vtanh.f32 %v4237_v0  ;;  %v4239_v10 = vadd.f32 %v4238_v7, %v9168_v57 }
 0x6f7   : > { %v4441_v30 = vadd.f32 %v4440_v59, %v9165_v15  ;;  %v7325_v48 = vpop.eup %7324  ;;  %5476 = vst.msk [vmem:[%s8985_s20 + $0x6c] sm:$0xf] %vm5463_vm4, %v6010_v33  ;;  %v6002_v39 = vpack.c.bf16 %v7323_v1, %v7323_v1  ;;  %7350 = vtanh.f32 %v4449_v43  ;;  %v4242_v20 = vpop.f32.mrf.mxu0 }
 0x6f8   : > { %v6858_v36 = vpop.f32.mrf.mxu1  ;;  %v7327_v12 = vpop.eup %7326  ;;  %5467 = vst [vmem:[%s8985_s20 + $0x2c] sm:$0xff] %v6001_v16  ;;  %7352 = vtanh.f32 %v4239_v10  ;;  %v4243_v27 = vadd.f32 %v4242_v20, %v9160_v35 }
 0x6f9   : > { %v4462_v54 = vadd.f32 %v6858_v36, %v9165_v15  ;;  %v7329_v3 = vpop.eup %7328  ;;  %5468 = vst.msk [vmem:[%s8985_s20 + $0x34] sm:$0xf] %vm5463_vm4, %v6002_v39  ;;  %v6022_v23 = vpack.c.bf16 %v7327_v12, %v7327_v12  ;;  %7354 = vtanh.f32 %v4441_v30  ;;  %v4244_v25 = vpop.f32.mrf.mxu0 }
 0x6fa   : > { %v4453_v53 = vpop.f32.mrf.mxu1  ;;  %v7331_v21 = vpop.eup %7330  ;;  %v6005_v34 = vpack.c.bf16 %v7329_v3, %v7325_v48  ;;  %7356 = vtanh.f32 %v4243_v27  ;;  %v4245_v51 = vadd.f32 %v4244_v25, %v9168_v57 }
 0x6fb   : > { %v4454_v37 = vadd.f32 %v4453_v53, %v9165_v15  ;;  %v7333_v56 = vpop.eup %7332  ;;  %5488 = vst.msk [vmem:[%s8985_s20 + $0xc0] sm:$0xf] %vm5463_vm4, %v6022_v23  ;;  %v6014_v28 = vpack.c.bf16 %v7331_v21, %v7331_v21  ;;  %7358 = vtanh.f32 %v4462_v54  ;;  %v4246_v58 = vpop.f32.mrf.mxu0 }
 0x6fc   : > { %v6859_v6 = vpop.f32.mrf.mxu1  ;;  %v7335_v14 = vpop.eup %7334  ;;  %5471 = vst [vmem:[%s8985_s20 + $0x48] sm:$0xff] %v6005_v34  ;;  %7360 = vtanh.f32 %v4245_v51  ;;  %v4247_v2 = vadd.f32 %v4246_v58, %v9160_v35 }
 0x6fd   : > { %v4465_v31 = vadd.f32 %v6859_v6, %v9165_v15  ;;  %v7337_v42 = vpop.eup %7336  ;;  %5480 = vst.msk [vmem:[%s8985_s20 + $0x88] sm:$0xf] %vm5463_vm4, %v6014_v28  ;;  %v6026_v63 = vpack.c.bf16 %v7335_v14, %v7335_v14  ;;  %7362 = vtanh.f32 %v4454_v37  ;;  %v4248_v26 = vpop.f32.mrf.mxu0 }
 0x6fe   : > { %v4456_v55 = vpop.f32.mrf.mxu1  ;;  %v7339_v62 = vpop.eup %7338  ;;  %v6009_v38 = vpack.c.bf16 %v7337_v42, %v7333_v56  ;;  %7364 = vtanh.f32 %v4247_v2  ;;  %v4249_v13 = vadd.f32 %v4248_v26, %v9168_v57 }
 0x6ff   : > { %v4457_v41 = vadd.f32 %v4456_v55, %v9165_v15  ;;  %v7341_v4 = vpop.eup %7340  ;;  %5492 = vst.msk [vmem:[%s8985_s20 + $0xdc] sm:$0xf] %vm5463_vm4, %v6026_v63  ;;  %v6018_v8 = vpack.c.bf16 %v7339_v62, %v7339_v62  ;;  %7366 = vtanh.f32 %v4465_v31  ;;  %v4252_v60 = vpop.f32.mrf.mxu0 }
 0x700   : > { %v6862_v44 = vpop.f32.mrf.mxu1  ;;  %v7343_v11 = vpop.eup %7342  ;;  %5475 = vst [vmem:[%s8985_s20 + $0x64] sm:$0xff] %v6009_v38  ;;  %7368 = vtanh.f32 %v4249_v13  ;;  %v4253_v45 = vadd.f32 %v4252_v60, %v9160_v35 }
 0x701   : > { %v4478_v46 = vadd.f32 %v6862_v44, %v9165_v15  ;;  %v7345_v22 = vpop.eup %7344  ;;  %5484 = vst.msk [vmem:[%s8985_s20 + $0xa4] sm:$0xf] %vm5463_vm4, %v6018_v8  ;;  %v6038_v17 = vpack.c.bf16 %v7343_v11, %v7343_v11  ;;  %7370 = vtanh.f32 %v4457_v41  ;;  %v4254_v32 = vpop.f32.mrf.mxu0 }
 0x702   : > { %v4469_v52 = vpop.f32.mrf.mxu1  ;;  %v7347_v19 = vpop.eup %7346  ;;  %v6013_v9 = vpack.c.bf16 %v7345_v22, %v7341_v4  ;;  %7372 = vtanh.f32 %v4253_v45  ;;  %v4255_v49 = vadd.f32 %v4254_v32, %v9168_v57 }
 0x703   : > { %v4470_v5 = vadd.f32 %v4469_v52, %v9165_v15  ;;  %v7349_v61 = vpop.eup %7348  ;;  %5504 = vst.msk [vmem:[%s8985_s20 + $0x130] sm:$0xf] %vm5463_vm4, %v6038_v17  ;;  %v6030_v29 = vpack.c.bf16 %v7347_v19, %v7347_v19  ;;  %7374 = vtanh.f32 %v4478_v46  ;;  %v4256_v18 = vpop.f32.mrf.mxu0 }
 0x704   : > { %v6863_v50 = vpop.f32.mrf.mxu1  ;;  %v7351_v40 = vpop.eup %7350  ;;  %5479 = vst [vmem:[%s8985_s20 + $0x80] sm:$0xff] %v6013_v9  ;;  %7376 = vtanh.f32 %v4255_v49  ;;  %v4257_v47 = vadd.f32 %v4256_v18, %v9160_v35 }
 0x705   : > { %v4481_v0 = vadd.f32 %v6863_v50, %v9165_v15  ;;  %v7353_v43 = vpop.eup %7352  ;;  %5496 = vst.msk [vmem:[%s8985_s20 + $0xf8] sm:$0xf] %vm5463_vm4, %v6030_v29  ;;  %v6042_v24 = vpack.c.bf16 %v7351_v40, %v7351_v40  ;;  %7378 = vtanh.f32 %v4470_v5  ;;  %v4258_v33 = vpop.f32.mrf.mxu0 }
 0x706   : > { %v4472_v7 = vpop.f32.mrf.mxu1  ;;  %v7355_v59 = vpop.eup %7354  ;;  %v6017_v1 = vpack.c.bf16 %v7353_v43, %v7349_v61  ;;  %7380 = vtanh.f32 %v4257_v47  ;;  %v4259_v16 = vadd.f32 %v4258_v33, %v9168_v57 }
 0x707   : > { %v4473_v10 = vadd.f32 %v4472_v7, %v9165_v15  ;;  %v7357_v30 = vpop.eup %7356  ;;  %5508 = vst.msk [vmem:[%s8985_s20 + $0x14c] sm:$0xf] %vm5463_vm4, %v6042_v24  ;;  %v6034_v48 = vpack.c.bf16 %v7355_v59, %v7355_v59  ;;  %7382 = vtanh.f32 %v4481_v0  ;;  %v4262_v39 = vpop.f32.mrf.mxu0 }
 0x708   : > { %v6866_v20 = vpop.f32.mrf.mxu1  ;;  %v7359_v36 = vpop.eup %7358  ;;  %5483 = vst [vmem:[%s8985_s20 + $0x9c] sm:$0xff] %v6017_v1  ;;  %7384 = vtanh.f32 %v4259_v16  ;;  %v4263_v12 = vadd.f32 %v4262_v39, %v9160_v35 }
 0x709   : > { %v4494_v27 = vadd.f32 %v6866_v20, %v9165_v15  ;;  %v7361_v54 = vpop.eup %7360  ;;  %5500 = vst.msk [vmem:[%s8985_s20 + $0x114] sm:$0xf] %vm5463_vm4, %v6034_v48  ;;  %v6054_v3 = vpack.c.bf16 %v7359_v36, %v7359_v36  ;;  %7386 = vtanh.f32 %v4473_v10  ;;  %v4264_v23 = vpop.f32.mrf.mxu0 }
 0x70a   : > { %v4485_v25 = vpop.f32.mrf.mxu1  ;;  %v7363_v53 = vpop.eup %7362  ;;  %v6021_v21 = vpack.c.bf16 %v7361_v54, %v7357_v30  ;;  %7388 = vtanh.f32 %v4263_v12  ;;  %v4265_v34 = vadd.f32 %v4264_v23, %v9168_v57 }
 0x70b   : > { %v4486_v51 = vadd.f32 %v4485_v25, %v9165_v15  ;;  %v7365_v37 = vpop.eup %7364  ;;  %5520 = vst.msk [vmem:[%s8985_s20 + $0x1a0] sm:$0xf] %vm5463_vm4, %v6054_v3  ;;  %v6046_v56 = vpack.c.bf16 %v7363_v53, %v7363_v53  ;;  %7390 = vtanh.f32 %v4494_v27  ;;  %v4266_v28 = vpop.f32.mrf.mxu0 }
 0x70c   : > { %v6867_v58 = vpop.f32.mrf.mxu1  ;;  %v7367_v6 = vpop.eup %7366  ;;  %5487 = vst [vmem:[%s8985_s20 + $0xb8] sm:$0xff] %v6021_v21  ;;  %7392 = vtanh.f32 %v4265_v34  ;;  %v4267_v14 = vadd.f32 %v4266_v28, %v9160_v35 }
 0x70d   : > { %v4497_v2 = vadd.f32 %v6867_v58, %v9165_v15  ;;  %v7369_v31 = vpop.eup %7368  ;;  %5512 = vst.msk [vmem:[%s8985_s20 + $0x168] sm:$0xf] %vm5463_vm4, %v6046_v56  ;;  %v6058_v42 = vpack.c.bf16 %v7367_v6, %v7367_v6  ;;  %7394 = vtanh.f32 %v4486_v51  ;;  %v4268_v63 = vpop.f32.mrf.mxu0 }
 0x70e   : > { %v4488_v26 = vpop.f32.mrf.mxu1  ;;  %v7371_v55 = vpop.eup %7370  ;;  %v6025_v62 = vpack.c.bf16 %v7369_v31, %v7365_v37  ;;  %7396 = vtanh.f32 %v4267_v14  ;;  %v4269_v38 = vadd.f32 %v4268_v63, %v9168_v57 }
 0x70f   : > { %v4489_v13 = vadd.f32 %v4488_v26, %v9165_v15  ;;  %v7373_v41 = vpop.eup %7372  ;;  %5524 = vst.msk [vmem:[%s8985_s20 + $0x1bc] sm:$0xf] %vm5463_vm4, %v6058_v42  ;;  %v6050_v4 = vpack.c.bf16 %v7371_v55, %v7371_v55  ;;  %7398 = vtanh.f32 %v4497_v2  ;;  %v4272_v8 = vpop.f32.mrf.mxu0 }
 0x710   : > { %v6870_v60 = vpop.f32.mrf.mxu1  ;;  %v7375_v44 = vpop.eup %7374  ;;  %5491 = vst [vmem:[%s8985_s20 + $0xd4] sm:$0xff] %v6025_v62  ;;  %7400 = vtanh.f32 %v4269_v38  ;;  %v4273_v11 = vadd.f32 %v4272_v8, %v9160_v35 }
 0x711   : > { %v4510_v45 = vadd.f32 %v6870_v60, %v9165_v15  ;;  %v7377_v46 = vpop.eup %7376  ;;  %5516 = vst.msk [vmem:[%s8985_s20 + $0x184] sm:$0xf] %vm5463_vm4, %v6050_v4  ;;  %v6070_v22 = vpack.c.bf16 %v7375_v44, %v7375_v44  ;;  %7402 = vtanh.f32 %v4489_v13  ;;  %v4274_v17 = vpop.f32.mrf.mxu0 }
 0x712   : > { %v4501_v32 = vpop.f32.mrf.mxu1  ;;  %v7379_v52 = vpop.eup %7378  ;;  %v6029_v19 = vpack.c.bf16 %v7377_v46, %v7373_v41  ;;  %7404 = vtanh.f32 %v4273_v11  ;;  %v4275_v9 = vadd.f32 %v4274_v17, %v9168_v57 }
 0x713   : > { %v4502_v49 = vadd.f32 %v4501_v32, %v9165_v15  ;;  %v7381_v5 = vpop.eup %7380  ;;  %5536 = vst.msk [vmem:[%s8985_s20 + $0x210] sm:$0xf] %vm5463_vm4, %v6070_v22  ;;  %v6062_v61 = vpack.c.bf16 %v7379_v52, %v7379_v52  ;;  %7406 = vtanh.f32 %v4510_v45  ;;  %v4276_v29 = vpop.f32.mrf.mxu0 }
 0x714   : > { %v6871_v18 = vpop.f32.mrf.mxu1  ;;  %v7383_v50 = vpop.eup %7382  ;;  %5495 = vst [vmem:[%s8985_s20 + $0xf0] sm:$0xff] %v6029_v19  ;;  %7408 = vtanh.f32 %v4275_v9  ;;  %v4277_v40 = vadd.f32 %v4276_v29, %v9160_v35 }
 0x715   : > { %v4513_v47 = vadd.f32 %v6871_v18, %v9165_v15  ;;  %v7385_v0 = vpop.eup %7384  ;;  %5528 = vst.msk [vmem:[%s8985_s20 + $0x1d8] sm:$0xf] %vm5463_vm4, %v6062_v61  ;;  %v6074_v43 = vpack.c.bf16 %v7383_v50, %v7383_v50  ;;  %7410 = vtanh.f32 %v4502_v49  ;;  %v4278_v24 = vpop.f32.mrf.mxu0 }
 0x716   : > { %v4504_v33 = vpop.f32.mrf.mxu1  ;;  %v7387_v7 = vpop.eup %7386  ;;  %v6033_v59 = vpack.c.bf16 %v7385_v0, %v7381_v5  ;;  %7412 = vtanh.f32 %v4277_v40  ;;  %v4279_v1 = vadd.f32 %v4278_v24, %v9168_v57 }
 0x717   : > { %v4505_v16 = vadd.f32 %v4504_v33, %v9165_v15  ;;  %v7389_v10 = vpop.eup %7388  ;;  %5540 = vst.msk [vmem:[%s8985_s20 + $0x22c] sm:$0xf] %vm5463_vm4, %v6074_v43  ;;  %v6066_v30 = vpack.c.bf16 %v7387_v7, %v7387_v7  ;;  %7414 = vtanh.f32 %v4513_v47  ;;  %v4282_v48 = vpop.f32.mrf.mxu0 }
 0x718   : > { %v6874_v39 = vpop.f32.mrf.mxu1  ;;  %v7391_v20 = vpop.eup %7390  ;;  %5499 = vst [vmem:[%s8985_s20 + $0x10c] sm:$0xff] %v6033_v59  ;;  %7416 = vtanh.f32 %v4279_v1  ;;  %v4283_v36 = vadd.f32 %v4282_v48, %v9160_v35 }
 0x719   : > { %v4526_v12 = vadd.f32 %v6874_v39, %v9165_v15  ;;  %v7393_v27 = vpop.eup %7392  ;;  %5532 = vst.msk [vmem:[%s8985_s20 + $0x1f4] sm:$0xf] %vm5463_vm4, %v6066_v30  ;;  %v6086_v54 = vpack.c.bf16 %v7391_v20, %v7391_v20  ;;  %7418 = vtanh.f32 %v4505_v16  ;;  %v4284_v3 = vpop.f32.mrf.mxu0 }
 0x71a   : > { %v4517_v23 = vpop.f32.mrf.mxu1  ;;  %v7395_v25 = vpop.eup %7394  ;;  %v6037_v53 = vpack.c.bf16 %v7393_v27, %v7389_v10  ;;  %7420 = vtanh.f32 %v4283_v36  ;;  %v4285_v21 = vadd.f32 %v4284_v3, %v9168_v57 }
 0x71b   : > { %v4518_v34 = vadd.f32 %v4517_v23, %v9165_v15  ;;  %v7397_v51 = vpop.eup %7396  ;;  %5552 = vst.msk [vmem:[%s8985_s20 + $0x280] sm:$0xf] %vm5463_vm4, %v6086_v54  ;;  %v6078_v37 = vpack.c.bf16 %v7395_v25, %v7395_v25  ;;  %7422 = vtanh.f32 %v4526_v12  ;;  %v4286_v56 = vpop.f32.mrf.mxu0 }
 0x71c   : > { %v6875_v28 = vpop.f32.mrf.mxu1  ;;  %v7399_v58 = vpop.eup %7398  ;;  %5503 = vst [vmem:[%s8985_s20 + $0x128] sm:$0xff] %v6037_v53  ;;  %7424 = vtanh.f32 %v4285_v21  ;;  %v4287_v6 = vadd.f32 %v4286_v56, %v9160_v35 }
 0x71d   : > { %v4529_v14 = vadd.f32 %v6875_v28, %v9165_v15  ;;  %v7401_v2 = vpop.eup %7400  ;;  %5544 = vst.msk [vmem:[%s8985_s20 + $0x248] sm:$0xf] %vm5463_vm4, %v6078_v37  ;;  %v6090_v31 = vpack.c.bf16 %v7399_v58, %v7399_v58  ;;  %7426 = vtanh.f32 %v4518_v34  ;;  %v4288_v42 = vpop.f32.mrf.mxu0 }
 0x71e   : > { %v4520_v63 = vpop.f32.mrf.mxu1  ;;  %v7403_v26 = vpop.eup %7402  ;;  %v6041_v55 = vpack.c.bf16 %v7401_v2, %v7397_v51  ;;  %7428 = vtanh.f32 %v4287_v6  ;;  %v4289_v62 = vadd.f32 %v4288_v42, %v9168_v57 }
 0x71f   : > { %v4521_v38 = vadd.f32 %v4520_v63, %v9165_v15  ;;  %v7405_v13 = vpop.eup %7404  ;;  %5556 = vst.msk [vmem:[%s8985_s20 + $0x29c] sm:$0xf] %vm5463_vm4, %v6090_v31  ;;  %v6082_v41 = vpack.c.bf16 %v7403_v26, %v7403_v26  ;;  %7430 = vtanh.f32 %v4529_v14  ;;  %v4292_v4 = vpop.f32.mrf.mxu0 }
 0x720   : > { %v7407_v8 = vpop.eup %7406  ;;  %5507 = vst [vmem:[%s8985_s20 + $0x144] sm:$0xff] %v6041_v55  ;;  %7432 = vtanh.f32 %v4289_v62  ;;  %v4293_v60 = vadd.f32 %v4292_v4, %v9160_v35 }
 0x721   : > { %v7409_v44 = vpop.eup %7408  ;;  %5548 = vst.msk [vmem:[%s8985_s20 + $0x264] sm:$0xf] %vm5463_vm4, %v6082_v41  ;;  %v6102_v11 = vpack.c.bf16 %v7407_v8, %v7407_v8  ;;  %7434 = vtanh.f32 %v4521_v38  ;;  %v4294_v15 = vpop.f32.mrf.mxu0 }
 0x722   : > { %v7411_v45 = vpop.eup %7410  ;;  %v6045_v46 = vpack.c.bf16 %v7409_v44, %v7405_v13  ;;  %v4295_v22 = vadd.f32 %v4294_v15, %v9168_v57  ;;  %7436 = vtanh.f32 %v4293_v60 }
 0x723   : > { %v7413_v17 = vpop.eup %7412  ;;  %5568 = vst.msk [vmem:[%s8985_s20 + $0x2f0] sm:$0xf] %vm5463_vm4, %v6102_v11  ;;  %v6094_v32 = vpack.c.bf16 %v7411_v45, %v7411_v45  ;;  %v4296_v52 = vpop.f32.mrf.mxu0 }
 0x724   : > { %v7415_v19 = vpop.eup %7414  ;;  %5511 = vst [vmem:[%s8985_s20 + $0x160] sm:$0xff] %v6045_v46  ;;  %7438 = vtanh.f32 %v4295_v22  ;;  %v4297_v9 = vadd.f32 %v4296_v52, %v9160_v35 }
 0x725   : > { %v7417_v49 = vpop.eup %7416  ;;  %5560 = vst.msk [vmem:[%s8985_s20 + $0x2b8] sm:$0xf] %vm5463_vm4, %v6094_v32  ;;  %v6106_v5 = vpack.c.bf16 %v7415_v19, %v7415_v19  ;;  %v4298_v61 = vpop.f32.mrf.mxu0 }
 0x726   : > { %v7419_v29 = vpop.eup %7418  ;;  %v6049_v18 = vpack.c.bf16 %v7417_v49, %v7413_v17  ;;  %v4299_v50 = vadd.f32 %v4298_v61, %v9168_v57  ;;  %7440 = vtanh.f32 %v4297_v9 }
 0x727   : > { %v7421_v40 = vpop.eup %7420  ;;  %5572 = vst.msk [vmem:[%s8985_s20 + $0x30c] sm:$0xf] %vm5463_vm4, %v6106_v5  ;;  %v6098_v47 = vpack.c.bf16 %v7419_v29, %v7419_v29  ;;  %v4302_v0 = vpop.f32.mrf.mxu0 }
 0x728   : > { %v7423_v43 = vpop.eup %7422  ;;  %5515 = vst [vmem:[%s8985_s20 + $0x17c] sm:$0xff] %v6049_v18  ;;  %7442 = vtanh.f32 %v4299_v50  ;;  %v4303_v24 = vadd.f32 %v4302_v0, %v9160_v35 }
 0x729   : > { %v7425_v33 = vpop.eup %7424  ;;  %5564 = vst.msk [vmem:[%s8985_s20 + $0x2d4] sm:$0xf] %vm5463_vm4, %v6098_v47  ;;  %v6118_v7 = vpack.c.bf16 %v7423_v43, %v7423_v43  ;;  %v4304_v59 = vpop.f32.mrf.mxu0 }
 0x72a   : > { %v7427_v1 = vpop.eup %7426  ;;  %v6053_v16 = vpack.c.bf16 %v7425_v33, %v7421_v40  ;;  %v4305_v10 = vadd.f32 %v4304_v59, %v9168_v57  ;;  %7444 = vtanh.f32 %v4303_v24 }
 0x72b   : > { %v7429_v30 = vpop.eup %7428  ;;  %5584 = vst.msk [vmem:[%s8985_s20 + $0x360] sm:$0xf] %vm5463_vm4, %v6118_v7  ;;  %v6110_v48 = vpack.c.bf16 %v7427_v1, %v7427_v1  ;;  %v4306_v39 = vpop.f32.mrf.mxu0 }
 0x72c   : > { %v7431_v20 = vpop.eup %7430  ;;  %5519 = vst [vmem:[%s8985_s20 + $0x198] sm:$0xff] %v6053_v16  ;;  %7446 = vtanh.f32 %v4305_v10  ;;  %v4307_v36 = vadd.f32 %v4306_v39, %v9160_v35 }
 0x72d   : > { %v7433_v12 = vpop.eup %7432  ;;  %5576 = vst.msk [vmem:[%s8985_s20 + $0x328] sm:$0xf] %vm5463_vm4, %v6110_v48  ;;  %v6122_v27 = vpack.c.bf16 %v7431_v20, %v7431_v20  ;;  %v4308_v54 = vpop.f32.mrf.mxu0 }
 0x72e   : > { %v7435_v3 = vpop.eup %7434  ;;  %v6057_v23 = vpack.c.bf16 %v7433_v12, %v7429_v30  ;;  %v4309_v25 = vadd.f32 %v4308_v54, %v9168_v57  ;;  %7448 = vtanh.f32 %v4307_v36 }
 0x72f   : > { %5588 = vst.msk [vmem:[%s8985_s20 + $0x37c] sm:$0xf] %vm5463_vm4, %v6122_v27  ;;  %v6114_v53 = vpack.c.bf16 %v7435_v3, %v7435_v3  ;;  %v4312_v21 = vpop.f32.mrf.mxu0  ;;  %v7437_v34 = vpop.eup %7436 }
 0x730   : > { %5523 = vst [vmem:[%s8985_s20 + $0x1b4] sm:$0xff] %v6057_v23  ;;  %7450 = vtanh.f32 %v4309_v25  ;;  %v4313_v51 = vadd.f32 %v4312_v21, %v9160_v35 }
 0x731   : > { %v7439_v37 = vpop.eup %7438  ;;  %5580 = vst.msk [vmem:[%s8985_s20 + $0x344] sm:$0xf] %vm5463_vm4, %v6114_v53  ;;  %v4314_v56 = vpop.f32.mrf.mxu0 }
 0x732   : > { %v6061_v28 = vpack.c.bf16 %v7439_v37, %v7437_v34  ;;  %v4315_v58 = vadd.f32 %v4314_v56, %v9168_v57  ;;  %7452 = vtanh.f32 %v4313_v51 }
 0x733   : > { %v4316_v6 = vpop.f32.mrf.mxu0  ;;  %v7441_v14 = vpop.eup %7440 }
 0x734   : > { %5527 = vst [vmem:[%s8985_s20 + $0x1d0] sm:$0xff] %v6061_v28  ;;  %7454 = vtanh.f32 %v4315_v58  ;;  %v4317_v2 = vadd.f32 %v4316_v6, %v9160_v35 }
 0x735   : > { %v7443_v31 = vpop.eup %7442  ;;  %v4318_v42 = vpop.f32.mrf.mxu0 }
 0x736   : > { %v6065_v63 = vpack.c.bf16 %v7443_v31, %v7441_v14  ;;  %v4319_v26 = vadd.f32 %v4318_v42, %v9168_v57  ;;  %7456 = vtanh.f32 %v4317_v2 }
 0x737   : > { %v4322_v55 = vpop.f32.mrf.mxu0  ;;  %v7445_v62 = vpop.eup %7444 }
 0x738   : > { %5531 = vst [vmem:[%s8985_s20 + $0x1ec] sm:$0xff] %v6065_v63  ;;  %7458 = vtanh.f32 %v4319_v26  ;;  %v4323_v38 = vadd.f32 %v4322_v55, %v9160_v35 }
 0x739   : > { %v7447_v13 = vpop.eup %7446  ;;  %v4324_v41 = vpop.f32.mrf.mxu0 }
 0x73a   : > { %v6069_v4 = vpack.c.bf16 %v7447_v13, %v7445_v62  ;;  %v4325_v8 = vadd.f32 %v4324_v41, %v9168_v57  ;;  %7460 = vtanh.f32 %v4323_v38 }
 0x73b   : > { %v4326_v60 = vpop.f32.mrf.mxu0  ;;  %v7449_v44 = vpop.eup %7448 }
 0x73c   : > { %5535 = vst [vmem:[%s8985_s20 + $0x208] sm:$0xff] %v6069_v4  ;;  %7462 = vtanh.f32 %v4325_v8  ;;  %v4327_v11 = vadd.f32 %v4326_v60, %v9160_v35 }
 0x73d   : > { %v7451_v15 = vpop.eup %7450  ;;  %v4328_v45 = vpop.f32.mrf.mxu0 }
 0x73e   : > { %v6073_v46 = vpack.c.bf16 %v7451_v15, %v7449_v44  ;;  %v4329_v22 = vadd.f32 %v4328_v45, %v9168_v57  ;;  %7464 = vtanh.f32 %v4327_v11 }
 0x73f   : > { %v4332_v17 = vpop.f32.mrf.mxu0  ;;  %v7453_v32 = vpop.eup %7452 }
 0x740   : > { %5539 = vst [vmem:[%s8985_s20 + $0x224] sm:$0xff] %v6073_v46  ;;  %7466 = vtanh.f32 %v4329_v22  ;;  %v4333_v52 = vadd.f32 %v4332_v17, %v9160_v35 }
 0x741   : > { %v7455_v19 = vpop.eup %7454  ;;  %v4334_v9 = vpop.f32.mrf.mxu0 }
 0x742   : > { %v6077_v49 = vpack.c.bf16 %v7455_v19, %v7453_v32  ;;  %v4335_v5 = vadd.f32 %v4334_v9, %v9168_v57  ;;  %7468 = vtanh.f32 %v4333_v52 }
 0x743   : > { %v4336_v61 = vpop.f32.mrf.mxu0  ;;  %v7457_v29 = vpop.eup %7456 }
 0x744   : > { %5543 = vst [vmem:[%s8985_s20 + $0x240] sm:$0xff] %v6077_v49  ;;  %7470 = vtanh.f32 %v4335_v5  ;;  %v4337_v18 = vadd.f32 %v4336_v61, %v9160_v35 }
 0x745   : > { %v7459_v50 = vpop.eup %7458  ;;  %v4338_v40 = vpop.f32.mrf.mxu0 }
 0x746   : > { %v6081_v47 = vpack.c.bf16 %v7459_v50, %v7457_v29  ;;  %v4339_v0 = vadd.f32 %v4338_v40, %v9168_v57  ;;  %7472 = vtanh.f32 %v4337_v18 }
 0x747   : > { %v4342_v43 = vpop.f32.mrf.mxu0  ;;  %v7461_v24 = vpop.eup %7460 }
 0x748   : > { %5547 = vst [vmem:[%s8985_s20 + $0x25c] sm:$0xff] %v6081_v47  ;;  %7474 = vtanh.f32 %v4339_v0  ;;  %v4343_v33 = vadd.f32 %v4342_v43, %v9160_v35 }
 0x749   : > { %v7463_v7 = vpop.eup %7462  ;;  %v4344_v59 = vpop.f32.mrf.mxu0 }
 0x74a   : > { %v6085_v1 = vpack.c.bf16 %v7463_v7, %v7461_v24  ;;  %v4345_v16 = vadd.f32 %v4344_v59, %v9168_v57  ;;  %7476 = vtanh.f32 %v4343_v33 }
 0x74b   : > { %v4346_v10 = vpop.f32.mrf.mxu0  ;;  %v7465_v30 = vpop.eup %7464 }
 0x74c   : > { %5551 = vst [vmem:[%s8985_s20 + $0x278] sm:$0xff] %v6085_v1  ;;  %7478 = vtanh.f32 %v4345_v16  ;;  %v4347_v48 = vadd.f32 %v4346_v10, %v9160_v35 }
 0x74d   : > { %v7467_v39 = vpop.eup %7466  ;;  %v4348_v20 = vpop.f32.mrf.mxu0 }
 0x74e   : > { %v6089_v36 = vpack.c.bf16 %v7467_v39, %v7465_v30  ;;  %v4349_v12 = vadd.f32 %v4348_v20, %v9168_v57  ;;  %7480 = vtanh.f32 %v4347_v48 }
 0x74f   : > { %v4352_v27 = vpop.f32.mrf.mxu0  ;;  %v7469_v54 = vpop.eup %7468 }
 0x750   : > { %5555 = vst [vmem:[%s8985_s20 + $0x294] sm:$0xff] %v6089_v36  ;;  %7482 = vtanh.f32 %v4349_v12  ;;  %v4353_v3 = vadd.f32 %v4352_v27, %v9160_v35 }
 0x751   : > { %v7471_v23 = vpop.eup %7470  ;;  %v4354_v25 = vpop.f32.mrf.mxu0 }
 0x752   : > { %v6093_v53 = vpack.c.bf16 %v7471_v23, %v7469_v54  ;;  %v4355_v21 = vadd.f32 %v4354_v25, %v9168_v57  ;;  %7484 = vtanh.f32 %v4353_v3 }
 0x753   : > { %v4356_v34 = vpop.f32.mrf.mxu0  ;;  %v7473_v51 = vpop.eup %7472 }
 0x754   : > { %5559 = vst [vmem:[%s8985_s20 + $0x2b0] sm:$0xff] %v6093_v53  ;;  %7486 = vtanh.f32 %v4355_v21  ;;  %v4357_v37 = vadd.f32 %v4356_v34, %v9160_v35 }
 0x755   : > { %v7475_v56 = vpop.eup %7474  ;;  %v4358_v28 = vpop.f32.mrf.mxu0 }
 0x756   : > { %v6097_v58 = vpack.c.bf16 %v7475_v56, %v7473_v51  ;;  %v4359_v6 = vadd.f32 %v4358_v28, %v9168_v57  ;;  %7488 = vtanh.f32 %v4357_v37 }
 0x757   : > { %v4362_v14 = vpop.f32.mrf.mxu0  ;;  %v7477_v2 = vpop.eup %7476 }
 0x758   : > { %5563 = vst [vmem:[%s8985_s20 + $0x2cc] sm:$0xff] %v6097_v58  ;;  %7490 = vtanh.f32 %v4359_v6  ;;  %v4363_v31 = vadd.f32 %v4362_v14, %v9160_v35 }
 0x759   : > { %v7479_v42 = vpop.eup %7478  ;;  %v4364_v63 = vpop.f32.mrf.mxu0 }
 0x75a   : > { %v6101_v26 = vpack.c.bf16 %v7479_v42, %v7477_v2  ;;  %v4365_v55 = vadd.f32 %v4364_v63, %v9168_v57  ;;  %7492 = vtanh.f32 %v4363_v31 }
 0x75b   : > { %v4366_v62 = vpop.f32.mrf.mxu0  ;;  %v7481_v38 = vpop.eup %7480 }
 0x75c   : > { %5567 = vst [vmem:[%s8985_s20 + $0x2e8] sm:$0xff] %v6101_v26  ;;  %7494 = vtanh.f32 %v4365_v55  ;;  %v4367_v13 = vadd.f32 %v4366_v62, %v9160_v35 }
 0x75d   : > { %v7483_v41 = vpop.eup %7482  ;;  %v4368_v4 = vpop.f32.mrf.mxu0 }
 0x75e   : > { %v6105_v8 = vpack.c.bf16 %v7483_v41, %v7481_v38  ;;  %v4369_v60 = vadd.f32 %v4368_v4, %v9168_v57  ;;  %7496 = vtanh.f32 %v4367_v13 }
 0x75f   : > { %v7485_v44 = vpop.eup %7484 }
 0x760   : > { %5571 = vst [vmem:[%s8985_s20 + $0x304] sm:$0xff] %v6105_v8  ;;  %7498 = vtanh.f32 %v4369_v60 }
 0x761   : > { %v7487_v11 = vpop.eup %7486 }
 0x762   : > { %v6109_v15 = vpack.c.bf16 %v7487_v11, %v7485_v44 }
 0x763   : > { %v7489_v45 = vpop.eup %7488 }
 0x764   : > { %5575 = vst [vmem:[%s8985_s20 + $0x320] sm:$0xff] %v6109_v15 }
 0x765   : > { %v7491_v46 = vpop.eup %7490 }
 0x766   : > { %v6113_v22 = vpack.c.bf16 %v7491_v46, %v7489_v45 }
 0x767   : > { %v7493_v17 = vpop.eup %7492 }
 0x768   : > { %5579 = vst [vmem:[%s8985_s20 + $0x33c] sm:$0xff] %v6113_v22 }
 0x769   : > { %v7495_v35 = vpop.eup %7494 }
 0x76a   : > { %v6117_v32 = vpack.c.bf16 %v7495_v35, %v7493_v17 }
 0x76b   : > { %v7497_v52 = vpop.eup %7496 }
 0x76c   : > { %5583 = vst [vmem:[%s8985_s20 + $0x358] sm:$0xff] %v6117_v32 }
 0x76d   : > { %v7499_v19 = vpop.eup %7498 }
 0x76e   : > { %v6121_v57 = vpack.c.bf16 %v7499_v19, %v7497_v52 }
 0x770   : > { %5587 = vst [vmem:[%s8985_s20 + $0x374] sm:$0xff] %v6121_v57 }
 0x771 PF: > { %s25_s18 = sadd.s32 1, %s7507_s18  }
 0x772   : > { %p22_p4 = scmp.ge.s32.totalorder %s25_s18, 4  }
 0x774   :  { %24 = sbr.rel (!%p22_p4) target bundleno = 1 (0x1), region = 110 }

</bundles_post_ra>
